<compile_context>
chip_gen: v6e
topology: v6e:2x2x1
jax: 0.10.0
libtpu: 0.0.40
codegen_flags: <defaults>
</compile_context>

<pallas_src>
import functools

import numpy as np
import jax
import jax.numpy as jnp
from jax.experimental import pallas as pl
from jax.experimental.pallas import tpu as pltpu

# ----- model hyper-parameters (small, consistent with the module) -----
HIDDEN = 32
NUM_HEADS = 4
HEAD_DIM = HIDDEN // NUM_HEADS
NUM_RBF = 16
NUM_LAYERS = 2
MAX_Z = 16
CUTOFF_LOWER = 0.0
CUTOFF_UPPER = 10.0
LN_EPS = 1e-5

# ----- packed-slab row layouts -----
# global slab [G_ROWS, HIDDEN]
G_EMB = 0
G_NBEMB = MAX_Z
G_WDIST = 2 * MAX_Z
G_WCOMB = 2 * MAX_Z + NUM_RBF
G_BDIST = G_WCOMB + 2 * HIDDEN
G_BCOMB = G_BDIST + 1
G_OUTG = G_BCOMB + 1
G_OUTB = G_OUTG + 1
G_MEANS = G_OUTB + 1
G_BETAS = G_MEANS + 1
G_ROWS = G_BETAS + 1                      # 118

# per-layer H-column slab [LH_ROWS, HIDDEN]
LH_W1X = 0
LH_W2 = HIDDEN
LH_W1T = 2 * HIDDEN
LH_B1 = LH_W1T + 1
LH_B2 = LH_B1 + 1
LH_LNG = LH_B2 + 1
LH_LNB = LH_LNG + 1
LH_ROWS = LH_LNB + 1                      # 69

# per-layer wide slab [LW_ROWS, LW_COLS]
LW_WQKV = 0
LW_BQKV = HIDDEN
LW_WO = LW_BQKV + 1
LW_BO = LW_WO + HIDDEN
LW_WVEC = LW_BO + 1
LW_WDKDV = LW_WVEC + 3 * HIDDEN
LW_BDKDV = LW_WDKDV + NUM_RBF
LW_ROWS = LW_BDKDV + 1                    # 179
LW_COLS = 9 * HIDDEN                      # 288


# ======================= small helpers =======================

def _silu(v):
    return v * jax.nn.sigmoid(v)


def _layernorm(v, g, b):
    mu = jnp.mean(v, axis=-1, keepdims=True)
    var = jnp.mean((v - mu) ** 2, axis=-1, keepdims=True)
    return (v - mu) * jax.lax.rsqrt(var + LN_EPS) * g + b


# ======================= fused Pallas kernel =======================

def fused_forward_kernel(idxc_ref,      # [L, 4] int32: cols = src | dst | z | pad
                         dstrow_ref,    # [1, E] int32: dst (row orientation, for scatter)
                         geom_ref,      # [E, 8] f32:  evec(3) | d^2 | cutoff | pad(3)
                         t_ref,         # [N, 1] f32
                         gslab_ref,     # [G_ROWS, H] f32 global weights
                         lh_ref,        # [NUM_LAYERS*LH_ROWS, H] f32 per-layer weights
                         lw_ref,        # [NUM_LAYERS*LW_ROWS, LW_COLS] f32 per-layer weights
                         out_ref,       # [N, 4H] f32: x | vec_x | vec_y | vec_z
                         *, N, E):
    H = HIDDEN
    R = NUM_RBF
    HD = HEAD_DIM
    NH = NUM_HEADS
    f32 = jnp.float32
    i32 = jnp.int32

    def mm(a, b):
        return jnp.dot(a, b, preferred_element_type=f32)

    def iota(shape, dim):
        return jax.lax.broadcasted_iota(i32, shape, dim)

    # ---- indices -> one-hot gather / scatter matrices (built in-kernel) ----
    src = idxc_ref[0:E, 0:1]                                   # [E,1] i32
    dst = idxc_ref[0:E, 1:2]                                   # [E,1] i32
    zc = idxc_ref[0:N, 2:3]                                    # [N,1] i32
    dst_row = dstrow_ref[...]                                  # [1,E] i32

    gsrc = (iota((E, N), 1) == src).astype(f32)                # [E,N] gather @ source
    gdst = (iota((E, N), 1) == dst).astype(f32)                # [E,N] gather @ destination
    scat = (iota((N, E), 0) == dst_row).astype(f32)            # [N,E] scatter-add (== gdst^T)
    zoh = (iota((N, MAX_Z), 1) == zc).astype(f32)              # [N,MAX_Z] one-hot atomic numbers
    nonself = (src != dst).astype(f32)                         # [E,1]

    # ---- loop-invariant lane-layout constants (iota comparisons, no concats) ----
    r_h, c_h = iota((H, NH), 0), iota((H, NH), 1)
    hmat = ((r_h >= c_h * HD) & (r_h < c_h * HD + HD)).astype(f32)          # [H,NH]  per-head sum
    r_t, c_t = iota((NH, H), 0), iota((NH, H), 1)
    hmat_t = ((c_t >= r_t * HD) & (c_t < r_t * HD + HD)).astype(f32)        # [NH,H]  per-head bcast
    r3, c3 = iota((H, 3 * H), 0), iota((H, 3 * H), 1)
    rep3 = ((c3 == r3) | (c3 == r3 + H) | (c3 == r3 + 2 * H)).astype(f32)   # [H,3H]  repeat x3
    r_s, c_s = iota((3 * H, H), 0), iota((3 * H, H), 1)
    sum3 = ((r_s == c_s) | (r_s == c_s + H) | (r_s == c_s + 2 * H)).astype(f32)  # [3H,H] spatial sum
    r_d, c_d = iota((3, 3 * H), 0), iota((3, 3 * H), 1)
    sel3 = ((c_d >= r_d * H) & (c_d < r_d * H + H)).astype(f32)             # [3,3H]  expand d_ij

    # ---- geometry / edge features ----
    geom = geom_ref[...]
    evec = geom[:, 0:3]
    d = geom[:, 3:4]                  # squared distance (matches model_dynamics)
    cut = geom[:, 4:5]                # cosine cutoff

    means = gslab_ref[G_MEANS:G_MEANS + 1, 0:R]
    betas = gslab_ref[G_BETAS:G_BETAS + 1, 0:R]
    alpha = 5.0 / (CUTOFF_UPPER - CUTOFF_LOWER)
    edge_attr = cut * jnp.exp(
        -betas * (jnp.exp(alpha * (CUTOFF_LOWER - d)) - means) ** 2)        # [E,R]

    denom = nonself * d + (1.0 - nonself)                                   # self-loops -> 1
    dij_rep = mm(evec / denom, sel3)                                        # [E,3H]

    t = t_ref[...]                                                          # [N,1]

    # ---- atom embedding + neighbor embedding ----
    x = mm(zoh, gslab_ref[G_EMB:G_EMB + MAX_Z, :])                          # [N,H]
    wdist = (mm(edge_attr, gslab_ref[G_WDIST:G_WDIST + R, :])
             + gslab_ref[G_BDIST:G_BDIST + 1, :])                           # [E,H]
    xj = mm(gsrc, mm(zoh, gslab_ref[G_NBEMB:G_NBEMB + MAX_Z, :]))           # [E,H]
    nb_agg = mm(scat, xj * wdist * (cut * nonself))                         # [N,H]
    x = (mm(x, gslab_ref[G_WCOMB:G_WCOMB + H, :])
         + mm(nb_agg, gslab_ref[G_WCOMB + H:G_WCOMB + 2 * H, :])
         + gslab_ref[G_BCOMB:G_BCOMB + 1, :])

    # equivariant features, lane-packed [vec_x | vec_y | vec_z]
    vec = jnp.zeros((N, 3 * H), f32)

    for l in range(NUM_LAYERS):
        hb = l * LH_ROWS
        wb = l * LW_ROWS

        # --- mixing MLP over cat([x, t]) with split weight (no 33-lane concat)
        h1 = _silu(mm(x, lh_ref[hb + LH_W1X:hb + LH_W1X + H, :])
                   + t * lh_ref[hb + LH_W1T:hb + LH_W1T + 1, :]
                   + lh_ref[hb + LH_B1:hb + LH_B1 + 1, :])
        xm = mm(h1, lh_ref[hb + LH_W2:hb + LH_W2 + H, :]) + lh_ref[hb + LH_B2:hb + LH_B2 + 1, :]
        xln = _layernorm(xm, lh_ref[hb + LH_LNG:hb + LH_LNG + 1, :],
                         lh_ref[hb + LH_LNB:hb + LH_LNB + 1, :])

        # --- fused q|k|v projection ([N,5H], single matmul)
        qkv = (mm(xln, lw_ref[wb + LW_WQKV:wb + LW_WQKV + H, 0:5 * H])
               + lw_ref[wb + LW_BQKV:wb + LW_BQKV + 1, 0:5 * H])

        # --- block-diagonal vec projection: all 3 spatial planes x 3 outputs in one matmul
        vp = mm(vec, lw_ref[wb + LW_WVEC:wb + LW_WVEC + 3 * H, 0:9 * H])    # [N,9H]
        vec_dot = mm(vp[:, 0:3 * H] * vp[:, 3 * H:6 * H], sum3)             # [N,H]
        vec3 = vp[:, 6 * H:9 * H]                                            # [N,3H]

        # --- fused dk|dv projection (lane-dense [E,4H]=[E,128])
        dkdv = _silu(mm(edge_attr, lw_ref[wb + LW_WDKDV:wb + LW_WDKDV + R, 0:4 * H])
                     + lw_ref[wb + LW_BDKDV:wb + LW_BDKDV + 1, 0:4 * H])

        # --- gathers (one-hot matmuls on the MXU)
        q_i = mm(gdst, qkv[:, 0:H])                                          # [E,H]
        kv_j = mm(gsrc, qkv[:, H:5 * H])                                     # [E,4H] [k|vx|v1|v2]
        vec_j = mm(gsrc, vec)                                                # [E,3H]

        # --- one full-vreg multiply: [k*dk | vx*dvx | v1*dv1 | v2*dv2]
        prod = kv_j * dkdv

        # --- attention weights (per-head reduce / broadcast via resident constants)
        attn = mm(_silu(mm(q_i * prod[:, 0:H], hmat)) * cut, hmat_t)         # [E,H]

        # --- edge messages
        x_msg = prod[:, H:2 * H] * attn                                      # [E,H]
        vec_msg = (vec_j * mm(prod[:, 2 * H:3 * H], rep3)
                   + mm(prod[:, 3 * H:4 * H], rep3) * dij_rep)               # [E,3H]

        # --- scatter-add aggregation
        x_agg = mm(scat, x_msg)                                              # [N,H]
        vec_agg = mm(scat, vec_msg)                                          # [N,3H]

        # --- output projection on the *aggregated* features (as in the reference)
        o = (mm(x_agg, lw_ref[wb + LW_WO:wb + LW_WO + H, 0:3 * H])
             + lw_ref[wb + LW_BO:wb + LW_BO + 1, 0:3 * H])                   # [N,3H]

        x = x + vec_dot * o[:, H:2 * H] + o[:, 2 * H:3 * H]
        vec = vec + vec3 * mm(o[:, 0:H], rep3) + vec_agg

    x_out = _layernorm(x, gslab_ref[G_OUTG:G_OUTG + 1, :], gslab_ref[G_OUTB:G_OUTB + 1, :])
    out_ref[:, 0:H] = x_out
    out_ref[:, H:4 * H] = vec


# ======================= wrapper =======================

def torchmd_et_forward(params, z, t, pos, batch, edge_index):
    N = z.shape[0]
    E = edge_index.shape[1]
    H = HIDDEN
    src = edge_index[0]
    dst = edge_index[1]

    # ---- tiny one-time JAX glue: edge geometry + packed index arrays ----
    evec = (pos[src] - pos[dst]).astype(jnp.float32)                         # [E,3]
    d = jnp.sum(evec ** 2, axis=-1, keepdims=True)                           # [E,1] squared dist
    # TODO(synk): cosine cutoff (jnp.cos) stays as one fused XLA op in the wrapper
    # instead of relying on trig lowering inside the Mosaic kernel.
    cut = 0.5 * (jnp.cos(d * (np.pi / CUTOFF_UPPER)) + 1.0) \
        * (d < CUTOFF_UPPER).astype(jnp.float32)
    geom = jnp.concatenate([evec, d, cut, jnp.zeros((E, 3), jnp.float32)], axis=1)   # [E,8]

    L = max(N, E)
    src_i = src.astype(jnp.int32)
    dst_i = dst.astype(jnp.int32)
    z_i = z.astype(jnp.int32)
    idxc = jnp.zeros((L, 4), jnp.int32)
    idxc = idxc.at[:E, 0].set(src_i).at[:E, 1].set(dst_i).at[:N, 2].set(z_i)
    dst_row = dst_i[None, :]                                                 # [1,E]

    kernel = functools.partial(fused_forward_kernel, N=N, E=E)
    vmem_spec = pl.BlockSpec(memory_space=pltpu.MemorySpace.VMEM)

    out = pl.pallas_call(
        kernel,
        out_shape=jax.ShapeDtypeStruct((N, 4 * H), jnp.float32),
        in_specs=[vmem_spec] * 7,
        out_specs=vmem_spec,
    )(idxc, dst_row, geom, t.astype(jnp.float32),
      params['gslab'], params['lh'], params['lw'])

    x = out[:, :H]
    vec = out[:, H:].reshape(N, 3, H)
    return x, vec, z, pos, batch


# ======================= deterministic parameter init (packed slabs) =======================

def init_params(key):
    H, R, L = HIDDEN, NUM_RBF, NUM_LAYERS
    ks = iter(jax.random.split(key, 64))

    def W(shape, fan_in):
        lim = 1.0 / np.sqrt(fan_in)
        return np.asarray(jax.random.uniform(next(ks), shape, jnp.float32, -lim, lim))

    def zeros(*s):
        return np.zeros(s, np.float32)

    def ones(*s):
        return np.ones(s, np.float32)

    def pad_cols(a, cols):
        out = np.zeros((a.shape[0], cols), np.float32)
        out[:, :a.shape[1]] = a
        return out

    # ---- global slab [G_ROWS, H] ----
    emb = np.asarray(0.1 * jax.random.normal(next(ks), (MAX_Z, H), jnp.float32))
    nb_emb = np.asarray(0.1 * jax.random.normal(next(ks), (MAX_Z, H), jnp.float32))
    nb_wdist = W((R, H), R)
    nb_wcomb = W((2 * H, H), 2 * H)
    start = float(np.exp(-CUTOFF_UPPER + CUTOFF_LOWER))
    means_row = zeros(1, H)
    means_row[0, :R] = np.linspace(start, 1.0, R, dtype=np.float32)
    betas_row = zeros(1, H)
    betas_row[0, :R] = (2.0 / R * (1.0 - start)) ** -2
    gslab = np.concatenate(
        [emb, nb_emb, nb_wdist, nb_wcomb,
         zeros(1, H), zeros(1, H),        # nb_bdist, nb_bcomb
         ones(1, H), zeros(1, H),         # out_norm gamma / beta
         means_row, betas_row], axis=0)
    assert gslab.shape == (G_ROWS, H)

    # ---- per-layer slabs ----
    lh_blocks, lw_blocks = [], []
    for _ in range(L):
        mix_w1x = W((H, H), H + 1)
        mix_w1t = W((1, H), H + 1)
        mix_w2 = W((H, H), H)
        lh_blocks.append(np.concatenate(
            [mix_w1x, mix_w2, mix_w1t,
             zeros(1, H), zeros(1, H),    # mix_b1, mix_b2
             ones(1, H), zeros(1, H)],    # ln_g, ln_b
            axis=0))

        wqkv = W((H, 5 * H), H)
        wo = W((H, 3 * H), H)
        wvec = W((H, 3 * H), H)           # vec_proj (no bias)
        wdkdv = W((R, 4 * H), R)

        # block-diagonal vec projection: [3H, 9H], output layout [vp1 xyz | vp2 xyz | vp3 xyz]
        wbd = np.zeros((3 * H, 9 * H), np.float32)
        for s in range(3):
            for g in range(3):
                wbd[s * H:(s + 1) * H, g * 3 * H + s * H: g * 3 * H + (s + 1) * H] = \
                    wvec[:, g * H:(g + 1) * H]

        lw_blocks.append(np.concatenate(
            [pad_cols(wqkv, LW_COLS), pad_cols(zeros(1, 5 * H), LW_COLS),
             pad_cols(wo, LW_COLS), pad_cols(zeros(1, 3 * H), LW_COLS),
             wbd,
             pad_cols(wdkdv, LW_COLS), pad_cols(zeros(1, 4 * H), LW_COLS)], axis=0))

    lh = np.concatenate(lh_blocks, axis=0)
    lw = np.concatenate(lw_blocks, axis=0)
    assert lh.shape == (L * LH_ROWS, H)
    assert lw.shape == (L * LW_ROWS, LW_COLS)

    return {'gslab': jnp.asarray(gslab), 'lh': jnp.asarray(lh), 'lw': jnp.asarray(lw)}


# ======================= main =======================

if __name__ == "__main__":
    key = jax.random.PRNGKey(0)
    kz, kt, kp, ke1, ke2, kparam = jax.random.split(key, 6)

    N, E = 8, 16
    z = jax.random.randint(kz, (N,), 1, MAX_Z)
    t = jax.random.uniform(kt, (N, 1), jnp.float32)
    pos = jax.random.normal(kp, (N, 3), jnp.float32)
    batch = jnp.zeros((N,), jnp.int32)
    src = jax.random.randint(ke1, (E,), 0, N)
    dst = jax.random.randint(ke2, (E,), 0, N)
    edge_index = jnp.stack([src, dst], axis=0)

    params = init_params(kparam)

    fwd = jax.jit(torchmd_et_forward)
    x, vec, z_out, pos_out, batch_out = fwd(params, z, t, pos, batch, edge_index)
    jax.block_until_ready((x, vec))

    assert x.shape == (N, HIDDEN)
    assert vec.shape == (N, 3, HIDDEN)
    assert bool(jnp.all(jnp.isfinite(x))) and bool(jnp.all(jnp.isfinite(vec)))
    print("KERNEL_OK")
</pallas_src>

<mosaic_0001>
module attributes {stable_mosaic.version = 11 : i64} {
  func.func @fused_forward_kernel(%arg0: memref<16x4xi32, #tpu.memory_space<vmem>>, %arg1: memref<1x16xi32, #tpu.memory_space<vmem>>, %arg2: memref<16x8xf32, #tpu.memory_space<vmem>>, %arg3: memref<8x1xf32, #tpu.memory_space<vmem>>, %arg4: memref<118x32xf32, #tpu.memory_space<vmem>>, %arg5: memref<138x32xf32, #tpu.memory_space<vmem>>, %arg6: memref<358x288xf32, #tpu.memory_space<vmem>>, %arg7: memref<8x128xf32, #tpu.memory_space<vmem>>) attributes {dimension_semantics = [], scalar_prefetch = 0 : i64, scratch_operands = 0 : i64, tpu.core_type = #tpu.core_type<tc>} {
    %c0 = arith.constant 0 : index
    %c0_0 = arith.constant 0 : index
    %0 = vector.load %arg0[%c0, %c0_0] : memref<16x4xi32, #tpu.memory_space<vmem>>, vector<16x1xi32>
    %c0_1 = arith.constant 0 : index
    %c1 = arith.constant 1 : index
    %1 = vector.load %arg0[%c0_1, %c1] : memref<16x4xi32, #tpu.memory_space<vmem>>, vector<16x1xi32>
    %c0_2 = arith.constant 0 : index
    %c2 = arith.constant 2 : index
    %2 = vector.load %arg0[%c0_2, %c2] : memref<16x4xi32, #tpu.memory_space<vmem>>, vector<8x1xi32>
    %c0_3 = arith.constant 0 : index
    %c0_4 = arith.constant 0 : index
    %3 = vector.load %arg1[%c0_3, %c0_4] : memref<1x16xi32, #tpu.memory_space<vmem>>, vector<1x16xi32>
    %4 = tpu.iota {dimensions = array<i32: 1>} : vector<16x8xi32>
    %5 = vector.broadcast %0 : vector<16x1xi32> to vector<16x8xi32>
    %6 = arith.cmpi eq, %4, %5 : vector<16x8xi32>
    %7 = arith.extui %6 : vector<16x8xi1> to vector<16x8xi32>
    %8 = arith.sitofp %7 : vector<16x8xi32> to vector<16x8xf32>
    %9 = tpu.iota {dimensions = array<i32: 1>} : vector<16x8xi32>
    %10 = vector.broadcast %1 : vector<16x1xi32> to vector<16x8xi32>
    %11 = arith.cmpi eq, %9, %10 : vector<16x8xi32>
    %12 = arith.extui %11 : vector<16x8xi1> to vector<16x8xi32>
    %13 = arith.sitofp %12 : vector<16x8xi32> to vector<16x8xf32>
    %14 = tpu.iota {dimensions = array<i32: 0>} : vector<8x16xi32>
    %15 = vector.broadcast %3 : vector<1x16xi32> to vector<8x16xi32>
    %16 = arith.cmpi eq, %14, %15 : vector<8x16xi32>
    %17 = arith.extui %16 : vector<8x16xi1> to vector<8x16xi32>
    %18 = arith.sitofp %17 : vector<8x16xi32> to vector<8x16xf32>
    %19 = tpu.iota {dimensions = array<i32: 1>} : vector<8x16xi32>
    %20 = vector.broadcast %2 : vector<8x1xi32> to vector<8x16xi32>
    %21 = arith.cmpi eq, %19, %20 : vector<8x16xi32>
    %22 = arith.extui %21 : vector<8x16xi1> to vector<8x16xi32>
    %23 = arith.sitofp %22 : vector<8x16xi32> to vector<8x16xf32>
    %24 = arith.cmpi ne, %0, %1 : vector<16x1xi32>
    %25 = arith.extui %24 : vector<16x1xi1> to vector<16x1xi32>
    %26 = arith.sitofp %25 : vector<16x1xi32> to vector<16x1xf32>
    %27 = tpu.iota {dimensions = array<i32: 0>} : vector<32x4xi32>
    %28 = tpu.iota {dimensions = array<i32: 1>} : vector<32x4xi32>
    %c8_i32 = arith.constant 8 : i32
    %29 = vector.broadcast %c8_i32 : i32 to vector<32x4xi32>
    %30 = arith.muli %28, %29 : vector<32x4xi32>
    %31 = arith.cmpi sge, %27, %30 : vector<32x4xi32>
    %c8_i32_5 = arith.constant 8 : i32
    %32 = vector.broadcast %c8_i32_5 : i32 to vector<32x4xi32>
    %33 = arith.muli %28, %32 : vector<32x4xi32>
    %c8_i32_6 = arith.constant 8 : i32
    %34 = vector.broadcast %c8_i32_6 : i32 to vector<32x4xi32>
    %35 = arith.addi %33, %34 : vector<32x4xi32>
    %36 = arith.cmpi slt, %27, %35 : vector<32x4xi32>
    %37 = arith.andi %31, %36 : vector<32x4xi1>
    %38 = arith.extui %37 : vector<32x4xi1> to vector<32x4xi32>
    %39 = arith.sitofp %38 : vector<32x4xi32> to vector<32x4xf32>
    %40 = tpu.iota {dimensions = array<i32: 0>} : vector<4x32xi32>
    %41 = tpu.iota {dimensions = array<i32: 1>} : vector<4x32xi32>
    %c8_i32_7 = arith.constant 8 : i32
    %42 = vector.broadcast %c8_i32_7 : i32 to vector<4x32xi32>
    %43 = arith.muli %40, %42 : vector<4x32xi32>
    %44 = arith.cmpi sge, %41, %43 : vector<4x32xi32>
    %c8_i32_8 = arith.constant 8 : i32
    %45 = vector.broadcast %c8_i32_8 : i32 to vector<4x32xi32>
    %46 = arith.muli %40, %45 : vector<4x32xi32>
    %c8_i32_9 = arith.constant 8 : i32
    %47 = vector.broadcast %c8_i32_9 : i32 to vector<4x32xi32>
    %48 = arith.addi %46, %47 : vector<4x32xi32>
    %49 = arith.cmpi slt, %41, %48 : vector<4x32xi32>
    %50 = arith.andi %44, %49 : vector<4x32xi1>
    %51 = arith.extui %50 : vector<4x32xi1> to vector<4x32xi32>
    %52 = arith.sitofp %51 : vector<4x32xi32> to vector<4x32xf32>
    %53 = tpu.iota {dimensions = array<i32: 0>} : vector<32x96xi32>
    %54 = tpu.iota {dimensions = array<i32: 1>} : vector<32x96xi32>
    %55 = arith.cmpi eq, %54, %53 : vector<32x96xi32>
    %c32_i32 = arith.constant 32 : i32
    %56 = vector.broadcast %c32_i32 : i32 to vector<32x96xi32>
    %57 = arith.addi %53, %56 : vector<32x96xi32>
    %58 = arith.cmpi eq, %54, %57 : vector<32x96xi32>
    %59 = arith.ori %55, %58 : vector<32x96xi1>
    %c64_i32 = arith.constant 64 : i32
    %60 = vector.broadcast %c64_i32 : i32 to vector<32x96xi32>
    %61 = arith.addi %53, %60 : vector<32x96xi32>
    %62 = arith.cmpi eq, %54, %61 : vector<32x96xi32>
    %63 = arith.ori %59, %62 : vector<32x96xi1>
    %64 = arith.extui %63 : vector<32x96xi1> to vector<32x96xi32>
    %65 = arith.sitofp %64 : vector<32x96xi32> to vector<32x96xf32>
    %66 = tpu.iota {dimensions = array<i32: 0>} : vector<96x32xi32>
    %67 = tpu.iota {dimensions = array<i32: 1>} : vector<96x32xi32>
    %68 = arith.cmpi eq, %66, %67 : vector<96x32xi32>
    %c32_i32_10 = arith.constant 32 : i32
    %69 = vector.broadcast %c32_i32_10 : i32 to vector<96x32xi32>
    %70 = arith.addi %67, %69 : vector<96x32xi32>
    %71 = arith.cmpi eq, %66, %70 : vector<96x32xi32>
    %72 = arith.ori %68, %71 : vector<96x32xi1>
    %c64_i32_11 = arith.constant 64 : i32
    %73 = vector.broadcast %c64_i32_11 : i32 to vector<96x32xi32>
    %74 = arith.addi %67, %73 : vector<96x32xi32>
    %75 = arith.cmpi eq, %66, %74 : vector<96x32xi32>
    %76 = arith.ori %72, %75 : vector<96x32xi1>
    %77 = arith.extui %76 : vector<96x32xi1> to vector<96x32xi32>
    %78 = arith.sitofp %77 : vector<96x32xi32> to vector<96x32xf32>
    %79 = tpu.iota {dimensions = array<i32: 0>} : vector<3x96xi32>
    %80 = tpu.iota {dimensions = array<i32: 1>} : vector<3x96xi32>
    %c32_i32_12 = arith.constant 32 : i32
    %81 = vector.broadcast %c32_i32_12 : i32 to vector<3x96xi32>
    %82 = arith.muli %79, %81 : vector<3x96xi32>
    %83 = arith.cmpi sge, %80, %82 : vector<3x96xi32>
    %c32_i32_13 = arith.constant 32 : i32
    %84 = vector.broadcast %c32_i32_13 : i32 to vector<3x96xi32>
    %85 = arith.muli %79, %84 : vector<3x96xi32>
    %c32_i32_14 = arith.constant 32 : i32
    %86 = vector.broadcast %c32_i32_14 : i32 to vector<3x96xi32>
    %87 = arith.addi %85, %86 : vector<3x96xi32>
    %88 = arith.cmpi slt, %80, %87 : vector<3x96xi32>
    %89 = arith.andi %83, %88 : vector<3x96xi1>
    %90 = arith.extui %89 : vector<3x96xi1> to vector<3x96xi32>
    %91 = arith.sitofp %90 : vector<3x96xi32> to vector<3x96xf32>
    %c0_15 = arith.constant 0 : index
    %c0_16 = arith.constant 0 : index
    %92 = vector.load %arg2[%c0_15, %c0_16] : memref<16x8xf32, #tpu.memory_space<vmem>>, vector<16x8xf32>
    %93 = vector.extract_strided_slice %92 {offsets = [0, 0], sizes = [16, 3], strides = [1, 1]} : vector<16x8xf32> to vector<16x3xf32>
    %94 = vector.extract_strided_slice %92 {offsets = [0, 3], sizes = [16, 1], strides = [1, 1]} : vector<16x8xf32> to vector<16x1xf32>
    %95 = vector.extract_strided_slice %92 {offsets = [0, 4], sizes = [16, 1], strides = [1, 1]} : vector<16x8xf32> to vector<16x1xf32>
    %c116 = arith.constant 116 : index
    %c0_17 = arith.constant 0 : index
    %96 = vector.load %arg4[%c116, %c0_17] : memref<118x32xf32, #tpu.memory_space<vmem>>, vector<1x16xf32>
    %c117 = arith.constant 117 : index
    %c0_18 = arith.constant 0 : index
    %97 = vector.load %arg4[%c117, %c0_18] : memref<118x32xf32, #tpu.memory_space<vmem>>, vector<1x16xf32>
    %cst = arith.constant 0.000000e+00 : f32
    %98 = vector.broadcast %cst : f32 to vector<1x16xf32>
    %99 = arith.subf %98, %97 : vector<1x16xf32>
    %cst_19 = arith.constant 0.000000e+00 : f32
    %100 = vector.broadcast %cst_19 : f32 to vector<16x1xf32>
    %101 = arith.subf %100, %94 : vector<16x1xf32>
    %cst_20 = arith.constant 5.000000e-01 : f32
    %102 = vector.broadcast %cst_20 : f32 to vector<16x1xf32>
    %103 = arith.mulf %102, %101 : vector<16x1xf32>
    %104 = math.exp %103 : vector<16x1xf32>
    %105 = vector.broadcast %104 : vector<16x1xf32> to vector<16x16xf32>
    %106 = vector.broadcast %96 : vector<1x16xf32> to vector<16x16xf32>
    %107 = arith.subf %105, %106 : vector<16x16xf32>
    %108 = arith.mulf %107, %107 : vector<16x16xf32>
    %109 = vector.broadcast %99 : vector<1x16xf32> to vector<16x16xf32>
    %110 = arith.mulf %109, %108 : vector<16x16xf32>
    %111 = math.exp %110 : vector<16x16xf32>
    %112 = vector.broadcast %95 : vector<16x1xf32> to vector<16x16xf32>
    %113 = arith.mulf %112, %111 : vector<16x16xf32>
    %114 = arith.mulf %26, %94 : vector<16x1xf32>
    %cst_21 = arith.constant 1.000000e+00 : f32
    %115 = vector.broadcast %cst_21 : f32 to vector<16x1xf32>
    %116 = arith.subf %115, %26 : vector<16x1xf32>
    %117 = arith.addf %114, %116 : vector<16x1xf32>
    %118 = vector.broadcast %117 : vector<16x1xf32> to vector<16x3xf32>
    %119 = arith.divf %93, %118 : vector<16x3xf32>
    %cst_22 = arith.constant dense<0.000000e+00> : vector<16x96xf32>
    %120 = tpu.matmul %119, %91, %cst_22 {dimension_numbers = #tpu.dot_dimension_numbers<[1], [0], [0], [1], [0, 0, 1, 1], [], []>} : vector<16x3xf32>, vector<3x96xf32>, vector<16x96xf32> -> vector<16x96xf32>
    %c0_23 = arith.constant 0 : index
    %c0_24 = arith.constant 0 : index
    %121 = vector.load %arg3[%c0_23, %c0_24] : memref<8x1xf32, #tpu.memory_space<vmem>>, vector<8x1xf32>
    %c0_25 = arith.constant 0 : index
    %c0_26 = arith.constant 0 : index
    %122 = vector.load %arg4[%c0_25, %c0_26] : memref<118x32xf32, #tpu.memory_space<vmem>>, vector<16x32xf32>
    %cst_27 = arith.constant dense<0.000000e+00> : vector<8x32xf32>
    %123 = tpu.matmul %23, %122, %cst_27 {dimension_numbers = #tpu.dot_dimension_numbers<[1], [0], [0], [1], [0, 0, 1, 1], [], []>} : vector<8x16xf32>, vector<16x32xf32>, vector<8x32xf32> -> vector<8x32xf32>
    %c32 = arith.constant 32 : index
    %c0_28 = arith.constant 0 : index
    %124 = vector.load %arg4[%c32, %c0_28] : memref<118x32xf32, #tpu.memory_space<vmem>>, vector<16x32xf32>
    %cst_29 = arith.constant dense<0.000000e+00> : vector<16x32xf32>
    %125 = tpu.matmul %113, %124, %cst_29 {dimension_numbers = #tpu.dot_dimension_numbers<[1], [0], [0], [1], [0, 0, 1, 1], [], []>} : vector<16x16xf32>, vector<16x32xf32>, vector<16x32xf32> -> vector<16x32xf32>
    %c112 = arith.constant 112 : index
    %c0_30 = arith.constant 0 : index
    %126 = vector.load %arg4[%c112, %c0_30] : memref<118x32xf32, #tpu.memory_space<vmem>>, vector<1x32xf32>
    %127 = vector.broadcast %126 : vector<1x32xf32> to vector<16x32xf32>
    %128 = arith.addf %125, %127 : vector<16x32xf32>
    %c16 = arith.constant 16 : index
    %c0_31 = arith.constant 0 : index
    %129 = vector.load %arg4[%c16, %c0_31] : memref<118x32xf32, #tpu.memory_space<vmem>>, vector<16x32xf32>
    %cst_32 = arith.constant dense<0.000000e+00> : vector<8x32xf32>
    %130 = tpu.matmul %23, %129, %cst_32 {dimension_numbers = #tpu.dot_dimension_numbers<[1], [0], [0], [1], [0, 0, 1, 1], [], []>} : vector<8x16xf32>, vector<16x32xf32>, vector<8x32xf32> -> vector<8x32xf32>
    %cst_33 = arith.constant dense<0.000000e+00> : vector<16x32xf32>
    %131 = tpu.matmul %8, %130, %cst_33 {dimension_numbers = #tpu.dot_dimension_numbers<[1], [0], [0], [1], [0, 0, 1, 1], [], []>} : vector<16x8xf32>, vector<8x32xf32>, vector<16x32xf32> -> vector<16x32xf32>
    %132 = arith.mulf %131, %128 : vector<16x32xf32>
    %133 = arith.mulf %95, %26 : vector<16x1xf32>
    %134 = vector.broadcast %133 : vector<16x1xf32> to vector<16x32xf32>
    %135 = arith.mulf %132, %134 : vector<16x32xf32>
    %cst_34 = arith.constant dense<0.000000e+00> : vector<8x32xf32>
    %136 = tpu.matmul %18, %135, %cst_34 {dimension_numbers = #tpu.dot_dimension_numbers<[1], [0], [0], [1], [0, 0, 1, 1], [], []>} : vector<8x16xf32>, vector<16x32xf32>, vector<8x32xf32> -> vector<8x32xf32>
    %c48 = arith.constant 48 : index
    %c0_35 = arith.constant 0 : index
    %137 = vector.load %arg4[%c48, %c0_35] : memref<118x32xf32, #tpu.memory_space<vmem>>, vector<32x32xf32>
    %cst_36 = arith.constant dense<0.000000e+00> : vector<8x32xf32>
    %138 = tpu.matmul %123, %137, %cst_36 {dimension_numbers = #tpu.dot_dimension_numbers<[1], [0], [0], [1], [0, 0, 1, 1], [], []>} : vector<8x32xf32>, vector<32x32xf32>, vector<8x32xf32> -> vector<8x32xf32>
    %c80 = arith.constant 80 : index
    %c0_37 = arith.constant 0 : index
    %139 = vector.load %arg4[%c80, %c0_37] : memref<118x32xf32, #tpu.memory_space<vmem>>, vector<32x32xf32>
    %cst_38 = arith.constant dense<0.000000e+00> : vector<8x32xf32>
    %140 = tpu.matmul %136, %139, %cst_38 {dimension_numbers = #tpu.dot_dimension_numbers<[1], [0], [0], [1], [0, 0, 1, 1], [], []>} : vector<8x32xf32>, vector<32x32xf32>, vector<8x32xf32> -> vector<8x32xf32>
    %141 = arith.addf %138, %140 : vector<8x32xf32>
    %c113 = arith.constant 113 : index
    %c0_39 = arith.constant 0 : index
    %142 = vector.load %arg4[%c113, %c0_39] : memref<118x32xf32, #tpu.memory_space<vmem>>, vector<1x32xf32>
    %143 = vector.broadcast %142 : vector<1x32xf32> to vector<8x32xf32>
    %144 = arith.addf %141, %143 : vector<8x32xf32>
    %cst_40 = arith.constant 0.000000e+00 : f32
    %145 = vector.broadcast %cst_40 : f32 to vector<8x96xf32>
    %c0_41 = arith.constant 0 : index
    %c0_42 = arith.constant 0 : index
    %146 = vector.load %arg5[%c0_41, %c0_42] : memref<138x32xf32, #tpu.memory_space<vmem>>, vector<32x32xf32>
    %cst_43 = arith.constant dense<0.000000e+00> : vector<8x32xf32>
    %147 = tpu.matmul %144, %146, %cst_43 {dimension_numbers = #tpu.dot_dimension_numbers<[1], [0], [0], [1], [0, 0, 1, 1], [], []>} : vector<8x32xf32>, vector<32x32xf32>, vector<8x32xf32> -> vector<8x32xf32>
    %c64 = arith.constant 64 : index
    %c0_44 = arith.constant 0 : index
    %148 = vector.load %arg5[%c64, %c0_44] : memref<138x32xf32, #tpu.memory_space<vmem>>, vector<1x32xf32>
    %149 = vector.broadcast %121 : vector<8x1xf32> to vector<8x32xf32>
    %150 = vector.broadcast %148 : vector<1x32xf32> to vector<8x32xf32>
    %151 = arith.mulf %149, %150 : vector<8x32xf32>
    %152 = arith.addf %147, %151 : vector<8x32xf32>
    %c65 = arith.constant 65 : index
    %c0_45 = arith.constant 0 : index
    %153 = vector.load %arg5[%c65, %c0_45] : memref<138x32xf32, #tpu.memory_space<vmem>>, vector<1x32xf32>
    %154 = vector.broadcast %153 : vector<1x32xf32> to vector<8x32xf32>
    %155 = arith.addf %152, %154 : vector<8x32xf32>
    %156 = arith.negf %155 : vector<8x32xf32>
    %157 = math.exp %156 : vector<8x32xf32>
    %cst_46 = arith.constant 1.000000e+00 : f32
    %158 = vector.broadcast %cst_46 : f32 to vector<8x32xf32>
    %159 = arith.addf %158, %157 : vector<8x32xf32>
    %160 = arith.divf %158, %159 : vector<8x32xf32>
    %161 = arith.mulf %155, %160 : vector<8x32xf32>
    %c32_47 = arith.constant 32 : index
    %c0_48 = arith.constant 0 : index
    %162 = vector.load %arg5[%c32_47, %c0_48] : memref<138x32xf32, #tpu.memory_space<vmem>>, vector<32x32xf32>
    %cst_49 = arith.constant dense<0.000000e+00> : vector<8x32xf32>
    %163 = tpu.matmul %161, %162, %cst_49 {dimension_numbers = #tpu.dot_dimension_numbers<[1], [0], [0], [1], [0, 0, 1, 1], [], []>} : vector<8x32xf32>, vector<32x32xf32>, vector<8x32xf32> -> vector<8x32xf32>
    %c66 = arith.constant 66 : index
    %c0_50 = arith.constant 0 : index
    %164 = vector.load %arg5[%c66, %c0_50] : memref<138x32xf32, #tpu.memory_space<vmem>>, vector<1x32xf32>
    %165 = vector.broadcast %164 : vector<1x32xf32> to vector<8x32xf32>
    %166 = arith.addf %163, %165 : vector<8x32xf32>
    %c67 = arith.constant 67 : index
    %c0_51 = arith.constant 0 : index
    %167 = vector.load %arg5[%c67, %c0_51] : memref<138x32xf32, #tpu.memory_space<vmem>>, vector<1x32xf32>
    %c68 = arith.constant 68 : index
    %c0_52 = arith.constant 0 : index
    %168 = vector.load %arg5[%c68, %c0_52] : memref<138x32xf32, #tpu.memory_space<vmem>>, vector<1x32xf32>
    %cst_53 = arith.constant dense<0.000000e+00> : vector<8xf32>
    %169 = vector.multi_reduction <add>, %166, %cst_53 [1] : vector<8x32xf32> to vector<8xf32>
    %170 = vector.shape_cast %169 : vector<8xf32> to vector<8x1xf32>
    %cst_54 = arith.constant 3.200000e+01 : f32
    %171 = vector.broadcast %cst_54 : f32 to vector<8x1xf32>
    %172 = arith.divf %170, %171 : vector<8x1xf32>
    %173 = vector.broadcast %172 : vector<8x1xf32> to vector<8x32xf32>
    %174 = arith.subf %166, %173 : vector<8x32xf32>
    %175 = arith.mulf %174, %174 : vector<8x32xf32>
    %cst_55 = arith.constant dense<0.000000e+00> : vector<8xf32>
    %176 = vector.multi_reduction <add>, %175, %cst_55 [1] : vector<8x32xf32> to vector<8xf32>
    %177 = vector.shape_cast %176 : vector<8xf32> to vector<8x1xf32>
    %cst_56 = arith.constant 3.200000e+01 : f32
    %178 = vector.broadcast %cst_56 : f32 to vector<8x1xf32>
    %179 = arith.divf %177, %178 : vector<8x1xf32>
    %180 = vector.broadcast %172 : vector<8x1xf32> to vector<8x32xf32>
    %181 = arith.subf %166, %180 : vector<8x32xf32>
    %cst_57 = arith.constant 9.99999974E-6 : f32
    %182 = vector.broadcast %cst_57 : f32 to vector<8x1xf32>
    %183 = arith.addf %179, %182 : vector<8x1xf32>
    %184 = math.rsqrt %183 : vector<8x1xf32>
    %185 = vector.broadcast %184 : vector<8x1xf32> to vector<8x32xf32>
    %186 = arith.mulf %181, %185 : vector<8x32xf32>
    %187 = vector.broadcast %167 : vector<1x32xf32> to vector<8x32xf32>
    %188 = arith.mulf %186, %187 : vector<8x32xf32>
    %189 = vector.broadcast %168 : vector<1x32xf32> to vector<8x32xf32>
    %190 = arith.addf %188, %189 : vector<8x32xf32>
    %c0_58 = arith.constant 0 : index
    %c0_59 = arith.constant 0 : index
    %191 = vector.load %arg6[%c0_58, %c0_59] : memref<358x288xf32, #tpu.memory_space<vmem>>, vector<32x160xf32>
    %cst_60 = arith.constant dense<0.000000e+00> : vector<8x160xf32>
    %192 = tpu.matmul %190, %191, %cst_60 {dimension_numbers = #tpu.dot_dimension_numbers<[1], [0], [0], [1], [0, 0, 1, 1], [], []>} : vector<8x32xf32>, vector<32x160xf32>, vector<8x160xf32> -> vector<8x160xf32>
    %c32_61 = arith.constant 32 : index
    %c0_62 = arith.constant 0 : index
    %193 = vector.load %arg6[%c32_61, %c0_62] : memref<358x288xf32, #tpu.memory_space<vmem>>, vector<1x160xf32>
    %194 = vector.broadcast %193 : vector<1x160xf32> to vector<8x160xf32>
    %195 = arith.addf %192, %194 : vector<8x160xf32>
    %c66_63 = arith.constant 66 : index
    %c0_64 = arith.constant 0 : index
    %196 = vector.load %arg6[%c66_63, %c0_64] : memref<358x288xf32, #tpu.memory_space<vmem>>, vector<96x288xf32>
    %cst_65 = arith.constant dense<0.000000e+00> : vector<8x288xf32>
    %197 = tpu.matmul %145, %196, %cst_65 {dimension_numbers = #tpu.dot_dimension_numbers<[1], [0], [0], [1], [0, 0, 1, 1], [], []>} : vector<8x96xf32>, vector<96x288xf32>, vector<8x288xf32> -> vector<8x288xf32>
    %198 = vector.extract_strided_slice %197 {offsets = [0, 0], sizes = [8, 96], strides = [1, 1]} : vector<8x288xf32> to vector<8x96xf32>
    %199 = vector.extract_strided_slice %197 {offsets = [0, 96], sizes = [8, 96], strides = [1, 1]} : vector<8x288xf32> to vector<8x96xf32>
    %200 = arith.mulf %198, %199 : vector<8x96xf32>
    %cst_66 = arith.constant dense<0.000000e+00> : vector<8x32xf32>
    %201 = tpu.matmul %200, %78, %cst_66 {dimension_numbers = #tpu.dot_dimension_numbers<[1], [0], [0], [1], [0, 0, 1, 1], [], []>} : vector<8x96xf32>, vector<96x32xf32>, vector<8x32xf32> -> vector<8x32xf32>
    %202 = vector.extract_strided_slice %197 {offsets = [0, 192], sizes = [8, 96], strides = [1, 1]} : vector<8x288xf32> to vector<8x96xf32>
    %c162 = arith.constant 162 : index
    %c0_67 = arith.constant 0 : index
    %203 = vector.load %arg6[%c162, %c0_67] : memref<358x288xf32, #tpu.memory_space<vmem>>, vector<16x128xf32>
    %cst_68 = arith.constant dense<0.000000e+00> : vector<16x128xf32>
    %204 = tpu.matmul %113, %203, %cst_68 {dimension_numbers = #tpu.dot_dimension_numbers<[1], [0], [0], [1], [0, 0, 1, 1], [], []>} : vector<16x16xf32>, vector<16x128xf32>, vector<16x128xf32> -> vector<16x128xf32>
    %c178 = arith.constant 178 : index
    %c0_69 = arith.constant 0 : index
    %205 = vector.load %arg6[%c178, %c0_69] : memref<358x288xf32, #tpu.memory_space<vmem>>, vector<1x128xf32>
    %206 = vector.broadcast %205 : vector<1x128xf32> to vector<16x128xf32>
    %207 = arith.addf %204, %206 : vector<16x128xf32>
    %208 = arith.negf %207 : vector<16x128xf32>
    %209 = math.exp %208 : vector<16x128xf32>
    %cst_70 = arith.constant 1.000000e+00 : f32
    %210 = vector.broadcast %cst_70 : f32 to vector<16x128xf32>
    %211 = arith.addf %210, %209 : vector<16x128xf32>
    %212 = arith.divf %210, %211 : vector<16x128xf32>
    %213 = arith.mulf %207, %212 : vector<16x128xf32>
    %214 = vector.extract_strided_slice %195 {offsets = [0, 0], sizes = [8, 32], strides = [1, 1]} : vector<8x160xf32> to vector<8x32xf32>
    %cst_71 = arith.constant dense<0.000000e+00> : vector<16x32xf32>
    %215 = tpu.matmul %13, %214, %cst_71 {dimension_numbers = #tpu.dot_dimension_numbers<[1], [0], [0], [1], [0, 0, 1, 1], [], []>} : vector<16x8xf32>, vector<8x32xf32>, vector<16x32xf32> -> vector<16x32xf32>
    %216 = vector.extract_strided_slice %195 {offsets = [0, 32], sizes = [8, 128], strides = [1, 1]} : vector<8x160xf32> to vector<8x128xf32>
    %cst_72 = arith.constant dense<0.000000e+00> : vector<16x128xf32>
    %217 = tpu.matmul %8, %216, %cst_72 {dimension_numbers = #tpu.dot_dimension_numbers<[1], [0], [0], [1], [0, 0, 1, 1], [], []>} : vector<16x8xf32>, vector<8x128xf32>, vector<16x128xf32> -> vector<16x128xf32>
    %cst_73 = arith.constant dense<0.000000e+00> : vector<16x96xf32>
    %218 = tpu.matmul %8, %145, %cst_73 {dimension_numbers = #tpu.dot_dimension_numbers<[1], [0], [0], [1], [0, 0, 1, 1], [], []>} : vector<16x8xf32>, vector<8x96xf32>, vector<16x96xf32> -> vector<16x96xf32>
    %219 = arith.mulf %217, %213 : vector<16x128xf32>
    %220 = vector.extract_strided_slice %219 {offsets = [0, 0], sizes = [16, 32], strides = [1, 1]} : vector<16x128xf32> to vector<16x32xf32>
    %221 = arith.mulf %215, %220 : vector<16x32xf32>
    %cst_74 = arith.constant dense<0.000000e+00> : vector<16x4xf32>
    %222 = tpu.matmul %221, %39, %cst_74 {dimension_numbers = #tpu.dot_dimension_numbers<[1], [0], [0], [1], [0, 0, 1, 1], [], []>} : vector<16x32xf32>, vector<32x4xf32>, vector<16x4xf32> -> vector<16x4xf32>
    %223 = arith.negf %222 : vector<16x4xf32>
    %224 = math.exp %223 : vector<16x4xf32>
    %cst_75 = arith.constant 1.000000e+00 : f32
    %225 = vector.broadcast %cst_75 : f32 to vector<16x4xf32>
    %226 = arith.addf %225, %224 : vector<16x4xf32>
    %227 = arith.divf %225, %226 : vector<16x4xf32>
    %228 = arith.mulf %222, %227 : vector<16x4xf32>
    %229 = vector.broadcast %95 : vector<16x1xf32> to vector<16x4xf32>
    %230 = arith.mulf %228, %229 : vector<16x4xf32>
    %cst_76 = arith.constant dense<0.000000e+00> : vector<16x32xf32>
    %231 = tpu.matmul %230, %52, %cst_76 {dimension_numbers = #tpu.dot_dimension_numbers<[1], [0], [0], [1], [0, 0, 1, 1], [], []>} : vector<16x4xf32>, vector<4x32xf32>, vector<16x32xf32> -> vector<16x32xf32>
    %232 = vector.extract_strided_slice %219 {offsets = [0, 32], sizes = [16, 32], strides = [1, 1]} : vector<16x128xf32> to vector<16x32xf32>
    %233 = arith.mulf %232, %231 : vector<16x32xf32>
    %234 = vector.extract_strided_slice %219 {offsets = [0, 64], sizes = [16, 32], strides = [1, 1]} : vector<16x128xf32> to vector<16x32xf32>
    %cst_77 = arith.constant dense<0.000000e+00> : vector<16x96xf32>
    %235 = tpu.matmul %234, %65, %cst_77 {dimension_numbers = #tpu.dot_dimension_numbers<[1], [0], [0], [1], [0, 0, 1, 1], [], []>} : vector<16x32xf32>, vector<32x96xf32>, vector<16x96xf32> -> vector<16x96xf32>
    %236 = arith.mulf %218, %235 : vector<16x96xf32>
    %237 = vector.extract_strided_slice %219 {offsets = [0, 96], sizes = [16, 32], strides = [1, 1]} : vector<16x128xf32> to vector<16x32xf32>
    %cst_78 = arith.constant dense<0.000000e+00> : vector<16x96xf32>
    %238 = tpu.matmul %237, %65, %cst_78 {dimension_numbers = #tpu.dot_dimension_numbers<[1], [0], [0], [1], [0, 0, 1, 1], [], []>} : vector<16x32xf32>, vector<32x96xf32>, vector<16x96xf32> -> vector<16x96xf32>
    %239 = arith.mulf %238, %120 : vector<16x96xf32>
    %240 = arith.addf %236, %239 : vector<16x96xf32>
    %cst_79 = arith.constant dense<0.000000e+00> : vector<8x32xf32>
    %241 = tpu.matmul %18, %233, %cst_79 {dimension_numbers = #tpu.dot_dimension_numbers<[1], [0], [0], [1], [0, 0, 1, 1], [], []>} : vector<8x16xf32>, vector<16x32xf32>, vector<8x32xf32> -> vector<8x32xf32>
    %cst_80 = arith.constant dense<0.000000e+00> : vector<8x96xf32>
    %242 = tpu.matmul %18, %240, %cst_80 {dimension_numbers = #tpu.dot_dimension_numbers<[1], [0], [0], [1], [0, 0, 1, 1], [], []>} : vector<8x16xf32>, vector<16x96xf32>, vector<8x96xf32> -> vector<8x96xf32>
    %c33 = arith.constant 33 : index
    %c0_81 = arith.constant 0 : index
    %243 = vector.load %arg6[%c33, %c0_81] : memref<358x288xf32, #tpu.memory_space<vmem>>, vector<32x96xf32>
    %cst_82 = arith.constant dense<0.000000e+00> : vector<8x96xf32>
    %244 = tpu.matmul %241, %243, %cst_82 {dimension_numbers = #tpu.dot_dimension_numbers<[1], [0], [0], [1], [0, 0, 1, 1], [], []>} : vector<8x32xf32>, vector<32x96xf32>, vector<8x96xf32> -> vector<8x96xf32>
    %c65_83 = arith.constant 65 : index
    %c0_84 = arith.constant 0 : index
    %245 = vector.load %arg6[%c65_83, %c0_84] : memref<358x288xf32, #tpu.memory_space<vmem>>, vector<1x96xf32>
    %246 = vector.broadcast %245 : vector<1x96xf32> to vector<8x96xf32>
    %247 = arith.addf %244, %246 : vector<8x96xf32>
    %248 = vector.extract_strided_slice %247 {offsets = [0, 32], sizes = [8, 32], strides = [1, 1]} : vector<8x96xf32> to vector<8x32xf32>
    %249 = arith.mulf %201, %248 : vector<8x32xf32>
    %250 = arith.addf %144, %249 : vector<8x32xf32>
    %251 = vector.extract_strided_slice %247 {offsets = [0, 64], sizes = [8, 32], strides = [1, 1]} : vector<8x96xf32> to vector<8x32xf32>
    %252 = arith.addf %250, %251 : vector<8x32xf32>
    %253 = vector.extract_strided_slice %247 {offsets = [0, 0], sizes = [8, 32], strides = [1, 1]} : vector<8x96xf32> to vector<8x32xf32>
    %cst_85 = arith.constant dense<0.000000e+00> : vector<8x96xf32>
    %254 = tpu.matmul %253, %65, %cst_85 {dimension_numbers = #tpu.dot_dimension_numbers<[1], [0], [0], [1], [0, 0, 1, 1], [], []>} : vector<8x32xf32>, vector<32x96xf32>, vector<8x96xf32> -> vector<8x96xf32>
    %255 = arith.mulf %202, %254 : vector<8x96xf32>
    %256 = arith.addf %145, %255 : vector<8x96xf32>
    %257 = arith.addf %256, %242 : vector<8x96xf32>
    %c69 = arith.constant 69 : index
    %c0_86 = arith.constant 0 : index
    %258 = vector.load %arg5[%c69, %c0_86] : memref<138x32xf32, #tpu.memory_space<vmem>>, vector<32x32xf32>
    %cst_87 = arith.constant dense<0.000000e+00> : vector<8x32xf32>
    %259 = tpu.matmul %252, %258, %cst_87 {dimension_numbers = #tpu.dot_dimension_numbers<[1], [0], [0], [1], [0, 0, 1, 1], [], []>} : vector<8x32xf32>, vector<32x32xf32>, vector<8x32xf32> -> vector<8x32xf32>
    %c133 = arith.constant 133 : index
    %c0_88 = arith.constant 0 : index
    %260 = vector.load %arg5[%c133, %c0_88] : memref<138x32xf32, #tpu.memory_space<vmem>>, vector<1x32xf32>
    %261 = vector.broadcast %121 : vector<8x1xf32> to vector<8x32xf32>
    %262 = vector.broadcast %260 : vector<1x32xf32> to vector<8x32xf32>
    %263 = arith.mulf %261, %262 : vector<8x32xf32>
    %264 = arith.addf %259, %263 : vector<8x32xf32>
    %c134 = arith.constant 134 : index
    %c0_89 = arith.constant 0 : index
    %265 = vector.load %arg5[%c134, %c0_89] : memref<138x32xf32, #tpu.memory_space<vmem>>, vector<1x32xf32>
    %266 = vector.broadcast %265 : vector<1x32xf32> to vector<8x32xf32>
    %267 = arith.addf %264, %266 : vector<8x32xf32>
    %268 = arith.negf %267 : vector<8x32xf32>
    %269 = math.exp %268 : vector<8x32xf32>
    %cst_90 = arith.constant 1.000000e+00 : f32
    %270 = vector.broadcast %cst_90 : f32 to vector<8x32xf32>
    %271 = arith.addf %270, %269 : vector<8x32xf32>
    %272 = arith.divf %270, %271 : vector<8x32xf32>
    %273 = arith.mulf %267, %272 : vector<8x32xf32>
    %c101 = arith.constant 101 : index
    %c0_91 = arith.constant 0 : index
    %274 = vector.load %arg5[%c101, %c0_91] : memref<138x32xf32, #tpu.memory_space<vmem>>, vector<32x32xf32>
    %cst_92 = arith.constant dense<0.000000e+00> : vector<8x32xf32>
    %275 = tpu.matmul %273, %274, %cst_92 {dimension_numbers = #tpu.dot_dimension_numbers<[1], [0], [0], [1], [0, 0, 1, 1], [], []>} : vector<8x32xf32>, vector<32x32xf32>, vector<8x32xf32> -> vector<8x32xf32>
    %c135 = arith.constant 135 : index
    %c0_93 = arith.constant 0 : index
    %276 = vector.load %arg5[%c135, %c0_93] : memref<138x32xf32, #tpu.memory_space<vmem>>, vector<1x32xf32>
    %277 = vector.broadcast %276 : vector<1x32xf32> to vector<8x32xf32>
    %278 = arith.addf %275, %277 : vector<8x32xf32>
    %c136 = arith.constant 136 : index
    %c0_94 = arith.constant 0 : index
    %279 = vector.load %arg5[%c136, %c0_94] : memref<138x32xf32, #tpu.memory_space<vmem>>, vector<1x32xf32>
    %c137 = arith.constant 137 : index
    %c0_95 = arith.constant 0 : index
    %280 = vector.load %arg5[%c137, %c0_95] : memref<138x32xf32, #tpu.memory_space<vmem>>, vector<1x32xf32>
    %cst_96 = arith.constant dense<0.000000e+00> : vector<8xf32>
    %281 = vector.multi_reduction <add>, %278, %cst_96 [1] : vector<8x32xf32> to vector<8xf32>
    %282 = vector.shape_cast %281 : vector<8xf32> to vector<8x1xf32>
    %cst_97 = arith.constant 3.200000e+01 : f32
    %283 = vector.broadcast %cst_97 : f32 to vector<8x1xf32>
    %284 = arith.divf %282, %283 : vector<8x1xf32>
    %285 = vector.broadcast %284 : vector<8x1xf32> to vector<8x32xf32>
    %286 = arith.subf %278, %285 : vector<8x32xf32>
    %287 = arith.mulf %286, %286 : vector<8x32xf32>
    %cst_98 = arith.constant dense<0.000000e+00> : vector<8xf32>
    %288 = vector.multi_reduction <add>, %287, %cst_98 [1] : vector<8x32xf32> to vector<8xf32>
    %289 = vector.shape_cast %288 : vector<8xf32> to vector<8x1xf32>
    %cst_99 = arith.constant 3.200000e+01 : f32
    %290 = vector.broadcast %cst_99 : f32 to vector<8x1xf32>
    %291 = arith.divf %289, %290 : vector<8x1xf32>
    %292 = vector.broadcast %284 : vector<8x1xf32> to vector<8x32xf32>
    %293 = arith.subf %278, %292 : vector<8x32xf32>
    %cst_100 = arith.constant 9.99999974E-6 : f32
    %294 = vector.broadcast %cst_100 : f32 to vector<8x1xf32>
    %295 = arith.addf %291, %294 : vector<8x1xf32>
    %296 = math.rsqrt %295 : vector<8x1xf32>
    %297 = vector.broadcast %296 : vector<8x1xf32> to vector<8x32xf32>
    %298 = arith.mulf %293, %297 : vector<8x32xf32>
    %299 = vector.broadcast %279 : vector<1x32xf32> to vector<8x32xf32>
    %300 = arith.mulf %298, %299 : vector<8x32xf32>
    %301 = vector.broadcast %280 : vector<1x32xf32> to vector<8x32xf32>
    %302 = arith.addf %300, %301 : vector<8x32xf32>
    %c179 = arith.constant 179 : index
    %c0_101 = arith.constant 0 : index
    %303 = vector.load %arg6[%c179, %c0_101] : memref<358x288xf32, #tpu.memory_space<vmem>>, vector<32x160xf32>
    %cst_102 = arith.constant dense<0.000000e+00> : vector<8x160xf32>
    %304 = tpu.matmul %302, %303, %cst_102 {dimension_numbers = #tpu.dot_dimension_numbers<[1], [0], [0], [1], [0, 0, 1, 1], [], []>} : vector<8x32xf32>, vector<32x160xf32>, vector<8x160xf32> -> vector<8x160xf32>
    %c211 = arith.constant 211 : index
    %c0_103 = arith.constant 0 : index
    %305 = vector.load %arg6[%c211, %c0_103] : memref<358x288xf32, #tpu.memory_space<vmem>>, vector<1x160xf32>
    %306 = vector.broadcast %305 : vector<1x160xf32> to vector<8x160xf32>
    %307 = arith.addf %304, %306 : vector<8x160xf32>
    %c245 = arith.constant 245 : index
    %c0_104 = arith.constant 0 : index
    %308 = vector.load %arg6[%c245, %c0_104] : memref<358x288xf32, #tpu.memory_space<vmem>>, vector<96x288xf32>
    %cst_105 = arith.constant dense<0.000000e+00> : vector<8x288xf32>
    %309 = tpu.matmul %257, %308, %cst_105 {dimension_numbers = #tpu.dot_dimension_numbers<[1], [0], [0], [1], [0, 0, 1, 1], [], []>} : vector<8x96xf32>, vector<96x288xf32>, vector<8x288xf32> -> vector<8x288xf32>
    %310 = vector.extract_strided_slice %309 {offsets = [0, 0], sizes = [8, 96], strides = [1, 1]} : vector<8x288xf32> to vector<8x96xf32>
    %311 = vector.extract_strided_slice %309 {offsets = [0, 96], sizes = [8, 96], strides = [1, 1]} : vector<8x288xf32> to vector<8x96xf32>
    %312 = arith.mulf %310, %311 : vector<8x96xf32>
    %cst_106 = arith.constant dense<0.000000e+00> : vector<8x32xf32>
    %313 = tpu.matmul %312, %78, %cst_106 {dimension_numbers = #tpu.dot_dimension_numbers<[1], [0], [0], [1], [0, 0, 1, 1], [], []>} : vector<8x96xf32>, vector<96x32xf32>, vector<8x32xf32> -> vector<8x32xf32>
    %314 = vector.extract_strided_slice %309 {offsets = [0, 192], sizes = [8, 96], strides = [1, 1]} : vector<8x288xf32> to vector<8x96xf32>
    %c341 = arith.constant 341 : index
    %c0_107 = arith.constant 0 : index
    %315 = vector.load %arg6[%c341, %c0_107] : memref<358x288xf32, #tpu.memory_space<vmem>>, vector<16x128xf32>
    %cst_108 = arith.constant dense<0.000000e+00> : vector<16x128xf32>
    %316 = tpu.matmul %113, %315, %cst_108 {dimension_numbers = #tpu.dot_dimension_numbers<[1], [0], [0], [1], [0, 0, 1, 1], [], []>} : vector<16x16xf32>, vector<16x128xf32>, vector<16x128xf32> -> vector<16x128xf32>
    %c357 = arith.constant 357 : index
    %c0_109 = arith.constant 0 : index
    %317 = vector.load %arg6[%c357, %c0_109] : memref<358x288xf32, #tpu.memory_space<vmem>>, vector<1x128xf32>
    %318 = vector.broadcast %317 : vector<1x128xf32> to vector<16x128xf32>
    %319 = arith.addf %316, %318 : vector<16x128xf32>
    %320 = arith.negf %319 : vector<16x128xf32>
    %321 = math.exp %320 : vector<16x128xf32>
    %cst_110 = arith.constant 1.000000e+00 : f32
    %322 = vector.broadcast %cst_110 : f32 to vector<16x128xf32>
    %323 = arith.addf %322, %321 : vector<16x128xf32>
    %324 = arith.divf %322, %323 : vector<16x128xf32>
    %325 = arith.mulf %319, %324 : vector<16x128xf32>
    %326 = vector.extract_strided_slice %307 {offsets = [0, 0], sizes = [8, 32], strides = [1, 1]} : vector<8x160xf32> to vector<8x32xf32>
    %cst_111 = arith.constant dense<0.000000e+00> : vector<16x32xf32>
    %327 = tpu.matmul %13, %326, %cst_111 {dimension_numbers = #tpu.dot_dimension_numbers<[1], [0], [0], [1], [0, 0, 1, 1], [], []>} : vector<16x8xf32>, vector<8x32xf32>, vector<16x32xf32> -> vector<16x32xf32>
    %328 = vector.extract_strided_slice %307 {offsets = [0, 32], sizes = [8, 128], strides = [1, 1]} : vector<8x160xf32> to vector<8x128xf32>
    %cst_112 = arith.constant dense<0.000000e+00> : vector<16x128xf32>
    %329 = tpu.matmul %8, %328, %cst_112 {dimension_numbers = #tpu.dot_dimension_numbers<[1], [0], [0], [1], [0, 0, 1, 1], [], []>} : vector<16x8xf32>, vector<8x128xf32>, vector<16x128xf32> -> vector<16x128xf32>
    %cst_113 = arith.constant dense<0.000000e+00> : vector<16x96xf32>
    %330 = tpu.matmul %8, %257, %cst_113 {dimension_numbers = #tpu.dot_dimension_numbers<[1], [0], [0], [1], [0, 0, 1, 1], [], []>} : vector<16x8xf32>, vector<8x96xf32>, vector<16x96xf32> -> vector<16x96xf32>
    %331 = arith.mulf %329, %325 : vector<16x128xf32>
    %332 = vector.extract_strided_slice %331 {offsets = [0, 0], sizes = [16, 32], strides = [1, 1]} : vector<16x128xf32> to vector<16x32xf32>
    %333 = arith.mulf %327, %332 : vector<16x32xf32>
    %cst_114 = arith.constant dense<0.000000e+00> : vector<16x4xf32>
    %334 = tpu.matmul %333, %39, %cst_114 {dimension_numbers = #tpu.dot_dimension_numbers<[1], [0], [0], [1], [0, 0, 1, 1], [], []>} : vector<16x32xf32>, vector<32x4xf32>, vector<16x4xf32> -> vector<16x4xf32>
    %335 = arith.negf %334 : vector<16x4xf32>
    %336 = math.exp %335 : vector<16x4xf32>
    %cst_115 = arith.constant 1.000000e+00 : f32
    %337 = vector.broadcast %cst_115 : f32 to vector<16x4xf32>
    %338 = arith.addf %337, %336 : vector<16x4xf32>
    %339 = arith.divf %337, %338 : vector<16x4xf32>
    %340 = arith.mulf %334, %339 : vector<16x4xf32>
    %341 = vector.broadcast %95 : vector<16x1xf32> to vector<16x4xf32>
    %342 = arith.mulf %340, %341 : vector<16x4xf32>
    %cst_116 = arith.constant dense<0.000000e+00> : vector<16x32xf32>
    %343 = tpu.matmul %342, %52, %cst_116 {dimension_numbers = #tpu.dot_dimension_numbers<[1], [0], [0], [1], [0, 0, 1, 1], [], []>} : vector<16x4xf32>, vector<4x32xf32>, vector<16x32xf32> -> vector<16x32xf32>
    %344 = vector.extract_strided_slice %331 {offsets = [0, 32], sizes = [16, 32], strides = [1, 1]} : vector<16x128xf32> to vector<16x32xf32>
    %345 = arith.mulf %344, %343 : vector<16x32xf32>
    %346 = vector.extract_strided_slice %331 {offsets = [0, 64], sizes = [16, 32], strides = [1, 1]} : vector<16x128xf32> to vector<16x32xf32>
    %cst_117 = arith.constant dense<0.000000e+00> : vector<16x96xf32>
    %347 = tpu.matmul %346, %65, %cst_117 {dimension_numbers = #tpu.dot_dimension_numbers<[1], [0], [0], [1], [0, 0, 1, 1], [], []>} : vector<16x32xf32>, vector<32x96xf32>, vector<16x96xf32> -> vector<16x96xf32>
    %348 = arith.mulf %330, %347 : vector<16x96xf32>
    %349 = vector.extract_strided_slice %331 {offsets = [0, 96], sizes = [16, 32], strides = [1, 1]} : vector<16x128xf32> to vector<16x32xf32>
    %cst_118 = arith.constant dense<0.000000e+00> : vector<16x96xf32>
    %350 = tpu.matmul %349, %65, %cst_118 {dimension_numbers = #tpu.dot_dimension_numbers<[1], [0], [0], [1], [0, 0, 1, 1], [], []>} : vector<16x32xf32>, vector<32x96xf32>, vector<16x96xf32> -> vector<16x96xf32>
    %351 = arith.mulf %350, %120 : vector<16x96xf32>
    %352 = arith.addf %348, %351 : vector<16x96xf32>
    %cst_119 = arith.constant dense<0.000000e+00> : vector<8x32xf32>
    %353 = tpu.matmul %18, %345, %cst_119 {dimension_numbers = #tpu.dot_dimension_numbers<[1], [0], [0], [1], [0, 0, 1, 1], [], []>} : vector<8x16xf32>, vector<16x32xf32>, vector<8x32xf32> -> vector<8x32xf32>
    %cst_120 = arith.constant dense<0.000000e+00> : vector<8x96xf32>
    %354 = tpu.matmul %18, %352, %cst_120 {dimension_numbers = #tpu.dot_dimension_numbers<[1], [0], [0], [1], [0, 0, 1, 1], [], []>} : vector<8x16xf32>, vector<16x96xf32>, vector<8x96xf32> -> vector<8x96xf32>
    %c212 = arith.constant 212 : index
    %c0_121 = arith.constant 0 : index
    %355 = vector.load %arg6[%c212, %c0_121] : memref<358x288xf32, #tpu.memory_space<vmem>>, vector<32x96xf32>
    %cst_122 = arith.constant dense<0.000000e+00> : vector<8x96xf32>
    %356 = tpu.matmul %353, %355, %cst_122 {dimension_numbers = #tpu.dot_dimension_numbers<[1], [0], [0], [1], [0, 0, 1, 1], [], []>} : vector<8x32xf32>, vector<32x96xf32>, vector<8x96xf32> -> vector<8x96xf32>
    %c244 = arith.constant 244 : index
    %c0_123 = arith.constant 0 : index
    %357 = vector.load %arg6[%c244, %c0_123] : memref<358x288xf32, #tpu.memory_space<vmem>>, vector<1x96xf32>
    %358 = vector.broadcast %357 : vector<1x96xf32> to vector<8x96xf32>
    %359 = arith.addf %356, %358 : vector<8x96xf32>
    %360 = vector.extract_strided_slice %359 {offsets = [0, 32], sizes = [8, 32], strides = [1, 1]} : vector<8x96xf32> to vector<8x32xf32>
    %361 = arith.mulf %313, %360 : vector<8x32xf32>
    %362 = arith.addf %252, %361 : vector<8x32xf32>
    %363 = vector.extract_strided_slice %359 {offsets = [0, 64], sizes = [8, 32], strides = [1, 1]} : vector<8x96xf32> to vector<8x32xf32>
    %364 = arith.addf %362, %363 : vector<8x32xf32>
    %365 = vector.extract_strided_slice %359 {offsets = [0, 0], sizes = [8, 32], strides = [1, 1]} : vector<8x96xf32> to vector<8x32xf32>
    %cst_124 = arith.constant dense<0.000000e+00> : vector<8x96xf32>
    %366 = tpu.matmul %365, %65, %cst_124 {dimension_numbers = #tpu.dot_dimension_numbers<[1], [0], [0], [1], [0, 0, 1, 1], [], []>} : vector<8x32xf32>, vector<32x96xf32>, vector<8x96xf32> -> vector<8x96xf32>
    %367 = arith.mulf %314, %366 : vector<8x96xf32>
    %368 = arith.addf %257, %367 : vector<8x96xf32>
    %369 = arith.addf %368, %354 : vector<8x96xf32>
    %c114 = arith.constant 114 : index
    %c0_125 = arith.constant 0 : index
    %370 = vector.load %arg4[%c114, %c0_125] : memref<118x32xf32, #tpu.memory_space<vmem>>, vector<1x32xf32>
    %c115 = arith.constant 115 : index
    %c0_126 = arith.constant 0 : index
    %371 = vector.load %arg4[%c115, %c0_126] : memref<118x32xf32, #tpu.memory_space<vmem>>, vector<1x32xf32>
    %cst_127 = arith.constant dense<0.000000e+00> : vector<8xf32>
    %372 = vector.multi_reduction <add>, %364, %cst_127 [1] : vector<8x32xf32> to vector<8xf32>
    %373 = vector.shape_cast %372 : vector<8xf32> to vector<8x1xf32>
    %cst_128 = arith.constant 3.200000e+01 : f32
    %374 = vector.broadcast %cst_128 : f32 to vector<8x1xf32>
    %375 = arith.divf %373, %374 : vector<8x1xf32>
    %376 = vector.broadcast %375 : vector<8x1xf32> to vector<8x32xf32>
    %377 = arith.subf %364, %376 : vector<8x32xf32>
    %378 = arith.mulf %377, %377 : vector<8x32xf32>
    %cst_129 = arith.constant dense<0.000000e+00> : vector<8xf32>
    %379 = vector.multi_reduction <add>, %378, %cst_129 [1] : vector<8x32xf32> to vector<8xf32>
    %380 = vector.shape_cast %379 : vector<8xf32> to vector<8x1xf32>
    %cst_130 = arith.constant 3.200000e+01 : f32
    %381 = vector.broadcast %cst_130 : f32 to vector<8x1xf32>
    %382 = arith.divf %380, %381 : vector<8x1xf32>
    %383 = vector.broadcast %375 : vector<8x1xf32> to vector<8x32xf32>
    %384 = arith.subf %364, %383 : vector<8x32xf32>
    %cst_131 = arith.constant 9.99999974E-6 : f32
    %385 = vector.broadcast %cst_131 : f32 to vector<8x1xf32>
    %386 = arith.addf %382, %385 : vector<8x1xf32>
    %387 = math.rsqrt %386 : vector<8x1xf32>
    %388 = vector.broadcast %387 : vector<8x1xf32> to vector<8x32xf32>
    %389 = arith.mulf %384, %388 : vector<8x32xf32>
    %390 = vector.broadcast %370 : vector<1x32xf32> to vector<8x32xf32>
    %391 = arith.mulf %389, %390 : vector<8x32xf32>
    %392 = vector.broadcast %371 : vector<1x32xf32> to vector<8x32xf32>
    %393 = arith.addf %391, %392 : vector<8x32xf32>
    %c0_132 = arith.constant 0 : index
    %c0_133 = arith.constant 0 : index
    %394 = vector.load %arg7[%c0_132, %c0_133] : memref<8x128xf32, #tpu.memory_space<vmem>>, vector<8x32xf32>
    tpu.vector_store %arg7[%c0_132, %c0_133], %393 {strides = array<i32>} : memref<8x128xf32, #tpu.memory_space<vmem>>, vector<8x32xf32>,
    %c0_134 = arith.constant 0 : index
    %c32_135 = arith.constant 32 : index
    %395 = vector.load %arg7[%c0_134, %c32_135] : memref<8x128xf32, #tpu.memory_space<vmem>>, vector<8x96xf32>
    tpu.vector_store %arg7[%c0_134, %c32_135], %369 {strides = array<i32>} : memref<8x128xf32, #tpu.memory_space<vmem>>, vector<8x96xf32>,
    return
  }
}

</mosaic_0001>

<bundles_post_ra>
// kernel: torchmd_et_forward.1
= control target key start
LH: loop header
LB: loop body
LE: loop exit
PB: predicated region body
PF: predicated region fallthrough
CT: control target
= control target key end

     0   :  { %v5477_v0 = vmov 2   ;;  %v5478_v4 = vmov 0.0   ;;  %s5479_s30 = smov 127   ;;  %vm7004_vm0 = vmmov 0   ;;  %v5481_v12 = vmov 3   ;;  %s5485_s17 = smov 4   ;;  %s6993_s0 = inlined_call_operand.vmem [shape: s32[16,4], index: 0, kind: input, shape index: {}]   ;;  %s6994_s2 = inlined_call_operand.vmem [shape: f32[16,8], index: 2, kind: input, shape index: {}]   ;;  %s6995_s4 = inlined_call_operand.vmem [shape: f32[118,32], index: 4, kind: input, shape index: {}]   ;;  %s6996_s1 = inlined_call_operand.vmem [shape: s32[1,16], index: 1, kind: input, shape index: {}]   ;;  %s6997_s5 = inlined_call_operand.vmem [shape: f32[138,32], index: 5, kind: input, shape index: {}]   ;;  %s6998_s3 = inlined_call_operand.vmem [shape: f32[8,1], index: 3, kind: input, shape index: {}]   ;;  %s6999_s6 = inlined_call_operand.vmem [shape: f32[358,288], index: 6, kind: input, shape index: {}]   ;;  %s7000_s7 = inlined_call_operand.vmem [shape: f32[8,128], index: 7, kind: output, shape index: {}]  }
   0x1   :  { %5405 = vset.pattern.permute.xlu0 %v5477_v0  ;;  %v5534_v1 = vld [vmem:[%s6993_s0] sm:$0xff]  ;;  %v5539_v2 = vld [vmem:[%s6993_s0 + $0x8] sm:$0xff]  ;;  %4992 = vmatprep.subr.mxu1 %v5478_v4  ;;  %v5483_v17 = vmov 0   ;;  %v5484_v18 = vmov 4   ;;  %v29_v19 = vlaneseq  ;;  %vm7003_vm1 = vcmask 130048   ;;  %v578_v23 = vld [vmem:[%s6995_s4 + $0x18] sm:$0xff] }
   0x2   :  { %v5544_v3 = vld [vmem:[%s6994_s2] sm:$0xff]  ;;  %65 = vperm.xlu0 %5405, %v5534_v1   ;;  %72 = vrot.lane.b32.xlu1 %v5539_v2, %s5479_s30  ;;  %v5553_v6 = vld [vmem:[%s6994_s2 + $0x8] sm:$0xff]  ;;  %s5482_s2 = smov 125   ;;  %v577_v25 = vld [vmem:[%s6995_s4 + $0x10] sm:$0xff]  ;;  %vm7002_vm7 = vcmask 1042432   ;;  %vm326_vm9 = vcmask 23552  }
   0x3   :  { %v252_v5 = vsub.f32 0.0, %v5544_v3  ;;  %v414_v7 = vld [vmem:[%s6995_s4 + $0x8] sm:$0xff]  ;;  %v413_v8 = vld [vmem:[%s6995_s4] sm:$0xff]  ;;  %v253_v9 = vsub.f32 0.0, %v5553_v6  ;;  %4996 = vmatprep.mubr.msk.f32.mxu1 %vm7004_vm0, %v5478_v4  ;;  %5406 = vset.pattern.permute.xlu1 %v5481_v12  ;;  %v5573_v20 = vand.u32 127, %v29_v19  ;;  %v5598_v37 = vshrl.u32 %v29_v19, 7 }
   0x4   :  { %4993 = vmatpush3.msra.mxu1 %v414_v7  ;;  %v490_v41 = vld [vmem:[%s6995_s4 + $0x28] sm:$0xff]  ;;  %v4639_v42 = vld [vmem:[%s6995_s4 + $0x74] ss:$0 sm:$0xff]  ;;  %v250_v43 = vld [vmem:[%s6995_s4 + $0x75] sm:$0x1]  ;;  %vm7001_vm11 = vcmask 64512  }
   0x5   :  { %v254_v10 = vmul.f32 0.5, %v252_v5  ;;  %4994 = vmatprep.subr.mxu1 %v5478_v4  ;;  %v255_v11 = vmul.f32 0.5, %v253_v9  ;;  %v240_v38 = vmul.u32 32, %v5598_v37  ;;  %v251_v46 = vsub.f32 0.0, %v250_v43  ;;  %s5488_s18 = smov 32   ;;  %s5490_s21 = smov 64  }
   0x6   :  { %4995 = vmatpush3.msra.mxu1 %v413_v8  ;;  %70 = vrot.lane.b32.xlu0 %v5534_v1, %s5479_s30  ;;  %v5616_v47 = vsub.s32 0, %v5598_v37  ;;  %vm7007_vm14 = vcmask 261120   ;;  %vm1371_vm15 = vcmask 1045504  }
   0x7   :  { %v256_v13 = vmul.f32 1.442695, %v254_v10  ;;  %300 = vrot.lane.b32.xlu1 %v5544_v3, %s5482_s2  ;;  %v258_v14 = vmul.f32 1.442695, %v255_v11  ;;  %5006 = vmatprep.subr.mxu1 %v5478_v4  ;;  %vm241_vm5 = vcmp.ge.s32.totalorder %v5573_v20, %v240_v38  ;;  %v242_v39 = vadd.s32 32, %v240_v38 }
   0x8   :  { %5407 = vset.pattern.permute.xlu0 %v5481_v12  ;;  %v281_v50 = vrot.slane %v251_v46, %v5616_v47  ;;  %v489_v12 = vld [vmem:[%s6995_s4 + $0x20] sm:$0xff]  ;;  %v829_v46 = vld [vmem:[%s6995_s4 + $0x38] sm:$0xff] }
   0x9   :  { %5419 = vpow2.f32 %v256_v13  ;;  %vm243_vm6 = vcmp.lt.s32.totalorder %v5573_v20, %v242_v39 }
   0xa   :  { %5421 = vpow2.f32 %v258_v14  ;;  %302 = vrot.lane.b32.xlu0 %v5553_v6, %s5482_s2  ;;  %vm244_vm8 = vmand %vm241_vm5, %vm243_vm6 }
   0xb   :  { %v4638_v40 = vsel %vm244_vm8, 1.0, %v5478_v4 }
   0xc   :  { %4987 = vmatprep.subr.msk.mxu0 %vm7002_vm7, %v4638_v40 }
   0xd   :  { %4988 = vmatpush3.msk.msra.mxu0 %vm7002_vm7, %v4638_v40 }
   0xe   :  { %4999 = vmatprep.subr.mxu0 %v490_v41 }
  0x16   :  { %v5420_v15 = vpop.eup %5419 }
  0x17   :  { %v5422_v16 = vpop.eup %5421  ;;  %262 = vperm.xlu1 %5406, %v5420_v15  }
  0x18   :  { %267 = vperm.xlu0 %5407, %v5422_v16  }
  0x1b   :  { %5408 = vset.pattern.permute.xlu1 %v5483_v17 }
  0x1c   :  { %5409 = vset.pattern.permute.xlu0 %v5484_v18 }
  0x1d   :  { %290 = vperm.xlu0 %5409, %v5544_v3  }
  0x21   :  { %5412 = vset.pattern.permute.xlu0 %v5483_v17 }
  0x22   :  { %35 = vperm.xlu0 %5412, %v5539_v2  }
  0x26   :  { %5413 = vset.pattern.permute.xlu0 %v5484_v18 }
  0x74   :  { %v73_v21 = vpop.permute.xlu1 %72 }
  0x75   :  { %vm75_vm3 = vcmp.ne.s32.totalorder %v5539_v2, %v73_v21 }
  0x76   :  { %v4616_v26 = vsel %vm75_vm3, 1.0, %v5478_v4 }
  0x77   :  { %v309_v30 = vsub.f32 1.0, %v4616_v26 }
  0x79   :  { %v301_v28 = vpop.permute.xlu1 %300 }
  0x7d   :  { %v66_v22 = vpop.permute.xlu0 %65 }
  0x7e   :  { %vm67_vm2 = vcmp.eq.s32.totalorder %v5573_v20, %v66_v22 }
  0x7f   :  { %v4614_v24 = vsel %vm67_vm2, 1.0, %v5478_v4 }
  0x80   :  { %4997 = vmatmul.mubr.msk.f32.vlgmr.msra.gmra.mxu1 %vm7003_vm1, %v4614_v24 }
  0x81   :  { %5007 = vmatpush3.msra.mxu1 %v578_v23  ;;  %5010 = vmatprep.mubr.msk.f32.mxu1 %vm7004_vm0, %v5478_v4  ;;  %v71_v27 = vpop.permute.xlu0 %70  ;;  %v835_v23 = vld [vmem:[%s6995_s4 + $0x68] sm:$0xff] }
  0x82   :  { %5008 = vmatprep.subr.mxu1 %v5478_v4  ;;  %vm74_vm4 = vcmp.ne.s32.totalorder %v5534_v1, %v71_v27 }
  0x83   :  { %5009 = vmatpush3.msra.mxu1 %v577_v25  ;;  %v4615_v29 = vsel %vm74_vm4, 1.0, %v5478_v4  ;;  %v833_v25 = vld [vmem:[%s6995_s4 + $0x58] sm:$0xff]  ;;  %vm7006_vm4 = vcmask 785408  }
  0x84   :  { %5011 = vmatmul.mubr.msk.f32.vlgmr.msra.gmra.mxu1 %vm7003_vm1, %v4614_v24  ;;  %v308_v31 = vsub.f32 1.0, %v4615_v29  ;;  %v306_v32 = vmul.f32 %v4615_v29, %v301_v28  ;;  %5018 = vmatprep.subr.mxu1 %v5478_v4  ;;  %v834_v24 = vld [vmem:[%s6995_s4 + $0x60] sm:$0xff] }
  0x85   :  { %v303_v33 = vpop.permute.xlu0 %302  ;;  %5022 = vmatprep.mubr.msk.f32.mxu1 %vm7004_vm0, %v5478_v4 }
  0x86   :  { %v310_v34 = vadd.f32 %v308_v31, %v306_v32  ;;  %v307_v35 = vmul.f32 %v4616_v26, %v303_v33  ;;  %v4612_v32 = vld [vmem:[%s6996_s1] ss:$0 sm:$0xff] }
  0x87   :  { %vm61_vm13 = vcmp.eq.s32.totalorder %v5598_v37, %v4612_v32 }
  0x88   :  { %v311_v36 = vadd.f32 %v309_v30, %v307_v35  ;;  %314 = vperm.xlu1 %5408, %v310_v34   ;;  %v5680_v43 = vsel %vm61_vm13, 1.0, %v5478_v4 }
  0x8c   :  { %319 = vperm.xlu1 %5408, %v311_v36  }
  0x90   :  { %5410 = vset.pattern.permute.xlu1 %v5484_v18 }
  0x91   :  { %295 = vperm.xlu1 %5410, %v5553_v6  }
  0x92   :  { %v263_v44 = vpop.permute.xlu1 %262 }
  0x93   :  { %v268_v45 = vpop.permute.xlu0 %267  ;;  %v274_v48 = vsub.f32 %v263_v44, %v4639_v42  ;;  %v831_v44 = vld [vmem:[%s6995_s4 + $0x48] sm:$0xff] }
  0x94   :  { %v275_v49 = vsub.f32 %v268_v45, %v4639_v42  ;;  %v830_v45 = vld [vmem:[%s6995_s4 + $0x40] sm:$0xff] }
  0x95   :  { %5411 = vset.pattern.permute.xlu1 %v5483_v17  ;;  %v276_v51 = vmul.f32 %v274_v48, %v274_v48  ;;  %v828_v48 = vld [vmem:[%s6995_s4 + $0x30] sm:$0xff] }
  0x96   :  { %32 = vperm.xlu1 %5411, %v5534_v1   ;;  %v277_v52 = vmul.f32 %v275_v49, %v275_v49  ;;  %v832_v49 = vld [vmem:[%s6995_s4 + $0x50] sm:$0xff] }
  0x97   :  { %v282_v53 = vmul.f32 %v281_v50, %v276_v51 }
  0x98   :  { %v283_v54 = vmul.f32 %v281_v50, %v277_v52  ;;  %v5622_v0 = vpop.permute.xlu0 %290  ;;  %v992_v50 = vld [vmem:[%s6997_s5 + $0x18] sm:$0xff] }
  0x99   :  { %v284_v55 = vmul.f32 1.442695, %v282_v53 }
  0x9a   :  { %737 = vrot.lane.b32.xlu1 %v4616_v26, %s5485_s17  ;;  %v286_v57 = vmul.f32 1.442695, %v283_v54 }
  0x9b   :  { %5414 = vset.pattern.permute.xlu1 %v5484_v18 }
  0x9d   :  { %v36_v16 = vpop.permute.xlu0 %35 }
  0x9e   :  { %735 = vrot.lane.b32.xlu1 %v4615_v29, %s5485_s17  ;;  %vm38_vm12 = vcmp.eq.s32.totalorder %v5573_v20, %v36_v16  ;;  %v4644_v29 = vld [vmem:[%s6995_s4 + $0x70] ss:$0 sm:$0xff]  ;;  %s5487_s17 = smov 96  }
 0x103   :  { %v315_v56 = vpop.permute.xlu1 %314 }
 0x104   :  { %5423 = vrcp.f32 %v315_v56  ;;  %v990_v56 = vld [vmem:[%s6997_s5 + $0x8] sm:$0xff] }
 0x105   :  { %5425 = vpow2.f32 %v284_v55  ;;  %v991_v55 = vld [vmem:[%s6997_s5 + $0x10] sm:$0xff] }
 0x106   :  { %5427 = vpow2.f32 %v286_v57  ;;  %v989_v57 = vld [vmem:[%s6997_s5] sm:$0xff] }
 0x107   :  { %v320_v58 = vpop.permute.xlu1 %319 }
 0x108   :  { %5429 = vrcp.f32 %v320_v58  ;;  %v412_v58 = vld [vmem:[%s6998_s3] sm:$0xff] }
 0x10c   :  { %v5619_v59 = vpop.permute.xlu1 %295 }
 0x111   :  { %v5424_v60 = vpop.eup %5423  ;;  %v33_v61 = vpop.permute.xlu1 %32 }
 0x112   :  { %v5426_v62 = vpop.eup %5425  ;;  %v323_v63 = vmul.f32 %v5424_v60, %v5544_v3  ;;  %vm37_vm10 = vcmp.eq.s32.totalorder %v5573_v20, %v33_v61  ;;  %v4653_v61 = vld [vmem:[%s6995_s4 + $0x71] ss:$0 sm:$0xff] }
 0x113   :  { %v5428_v5 = vpop.eup %5427  ;;  %v5625_v9 = vmul.f32 %v5426_v62, %v5622_v0  ;;  %v5639_v15 = vsel %vm37_vm10, 1.0, %v5478_v4 }
 0x114   :  { %4989 = vmatprep.mubr.msk.f32.mxu0 %vm326_vm9, %v323_v63  ;;  %v5634_v13 = vmul.f32 %v5428_v5, %v5619_v59 }
 0x115   :  { %v5430_v7 = vpop.eup %5429  ;;  %v738_v8 = vpop.permute.xlu1 %737 }
 0x116   :  { %v742_v10 = vmul.f32 %v738_v8, %v5553_v6  ;;  %v325_v11 = vmul.f32 %v5430_v7, %v5553_v6  ;;  %v1093_v7 = vld [vmem:[%s6997_s5 + $0x38] sm:$0xff]  ;;  %v1092_v8 = vld [vmem:[%s6997_s5 + $0x30] sm:$0xff] }
 0x118   :  { %750 = vperm.xlu0 %5413, %v742_v10   ;;  %4990 = vmatmul.mubr.msk.f32.vlgmr.msra.gmra.mxu0 %vm326_vm9, %v325_v11  ;;  %v1091_v10 = vld [vmem:[%s6997_s5 + $0x28] sm:$0xff]  ;;  %v1090_v11 = vld [vmem:[%s6997_s5 + $0x20] sm:$0xff] }
 0x119   :  { %v736_v14 = vpop.permute.xlu1 %735  ;;  %5000 = vmatpush3.msra.mxu0 %v490_v41  ;;  %5003 = vmatprep.mubr.msk.f32.mxu0 %vm7003_vm1, %v5625_v9 }
 0x11a   :  { %v741_v6 = vmul.f32 %v736_v14, %v5544_v3  ;;  %5001 = vmatprep.subr.mxu0 %v489_v12  ;;  %v5649_v3 = vsel %vm38_vm12, 1.0, %v5478_v4 }
 0x11b   :  { %5002 = vmatpush3.msra.mxu0 %v489_v12  ;;  %v4654_v12 = vld [vmem:[%s6997_s5 + $0x40] ss:$0 sm:$0xff] }
 0x11c   :  { %745 = vperm.xlu1 %5414, %v741_v6   ;;  %5004 = vmatmul.mubr.msk.f32.vlgmr.msra.gmra.mxu0 %vm7003_vm1, %v5634_v13 }
 0x11d   :  { %5015 = vmatprep.mubr.msk.f32.mxu0 %vm7001_vm11, %v5639_v15 }
 0x120   :  { %5415 = vset.pattern.permute.xlu1 %v5483_v17 }
 0x121   :  { %996 = vperm.xlu1 %5415, %v412_v58  }
 0x140   :  { %v485_v18 = vpop.f32.mrf.mxu1 }
 0x142   :  { %v4998_v19 = vpop.f32.mrf.mxu1 }
 0x144   :  { %v645_v21 = vpop.f32.mrf.mxu1 }
 0x145   :  { %5013 = vmatprep.subr.mxu0 %v645_v21 }
 0x146   :  { %v5012_v22 = vpop.f32.mrf.mxu1  ;;  %5014 = vmatpush3.msra.mxu0 %v645_v21 }
 0x147   :  { %5016 = vmatmul.mubr.msk.f32.vlgmr.msra.gmra.mxu0 %vm7001_vm11, %v5649_v3  ;;  %5025 = vmatprep.subr.mxu0 %v5478_v4 }
 0x148   :  { %5033 = vmatprep.mubr.msk.f32.mxu0 %vm7004_vm0, %v5478_v4  ;;  %5026 = vmatpush3.msra.mxu0 %v835_v23 }
 0x149   :  { %5027 = vmatprep.subr.mxu0 %v5478_v4 }
 0x14a   :  { %5028 = vmatpush3.msra.mxu0 %v834_v24 }
 0x14b   :  { %5029 = vmatprep.subr.mxu0 %v5478_v4 }
 0x14c   :  { %5030 = vmatpush3.msra.mxu0 %v833_v25 }
 0x14d   :  { %5031 = vmatprep.subr.mxu0 %v5478_v4 }
 0x14e   :  { %5032 = vmatpush3.msra.mxu0 %v832_v49  ;;  %v1199_v49 = vld [vmem:[%s6999_s6 + $0x8] sm:$0xff] }
 0x14f   :  { %5047 = vmatprep.subr.mxu0 %v5478_v4 }
 0x193   :  { %v751_v36 = vpop.permute.xlu0 %750 }
 0x197   :  { %v746_v41 = vpop.permute.xlu1 %745 }
 0x19c   :  { %v5758_v14 = vpop.permute.xlu1 %996 }
 0x19d   :  { %v1003_v6 = vmul.f32 %v4654_v12, %v5758_v14 }
 0x1d8   :  { %v5668_v26 = vpop.f32.mrf.mxu0 }
 0x1da   :  { %v5670_v27 = vpop.f32.mrf.mxu0 }
 0x1dc   :  { %v5005_v28 = vpop.f32.mrf.mxu0 }
 0x1dd   :  { %v574_v31 = vadd.f32 %v5005_v28, %v4644_v29 }
 0x1de   :  { %v568_v30 = vpop.f32.mrf.mxu0 }
 0x1df   :  { %v569_v34 = vadd.f32 %v4644_v29, %v568_v30  ;;  %v4658_v30 = vld [vmem:[%s6997_s5 + $0x42] ss:$0 sm:$0xff] }
 0x207   :  { %v5017_v33 = vpop.f32.mrf.mxu0 }
 0x208   :  { %v732_v35 = vmul.f32 %v5017_v33, %v574_v31 }
 0x209   :  { %v722_v38 = vpop.f32.mrf.mxu0 }
 0x20a   :  { %v754_v39 = vmul.f32 %v751_v36, %v732_v35  ;;  %v731_v40 = vmul.f32 %v722_v38, %v569_v34 }
 0x20c   :  { %v753_v42 = vmul.f32 %v746_v41, %v731_v40  ;;  %5019 = vmatpush3.msra.mxu1 %v754_v39  ;;  %v1205_v41 = vld [vmem:[%s6999_s6 + $0x50] sm:$0xff] }
 0x20d   :  { %5020 = vmatprep.subr.mxu1 %v5478_v4 }
 0x20e   :  { %5021 = vmatpush3.msra.mxu1 %v753_v42  ;;  %v1204_v42 = vld [vmem:[%s6999_s6 + $0x48] sm:$0xff] }
 0x20f   :  { %5023 = vmatmul.mubr.msk.f32.vlgmr.msra.gmra.mxu1 %vm7003_vm1, %v5680_v43  ;;  %5036 = vmatprep.subr.mxu1 %v5478_v4 }
 0x210   :  { %5037 = vmatpush3.msra.mxu1 %v831_v44  ;;  %5044 = vmatprep.mubr.msk.f32.mxu1 %vm7004_vm0, %v5478_v4  ;;  %v1203_v44 = vld [vmem:[%s6999_s6 + $0x38] sm:$0xff] }
 0x211   :  { %5038 = vmatprep.subr.mxu1 %v5478_v4 }
 0x212   :  { %5039 = vmatpush3.msra.mxu1 %v830_v45  ;;  %v1202_v45 = vld [vmem:[%s6999_s6 + $0x30] sm:$0xff] }
 0x213   :  { %5040 = vmatprep.subr.mxu1 %v5478_v4 }
 0x214   :  { %5041 = vmatpush3.msra.mxu1 %v829_v46  ;;  %v1201_v46 = vld [vmem:[%s6999_s6 + $0x20] sm:$0xff] }
 0x215   :  { %5042 = vmatprep.subr.mxu1 %v5478_v4 }
 0x216   :  { %5043 = vmatpush3.msra.mxu1 %v828_v48  ;;  %v1200_v48 = vld [vmem:[%s6999_s6 + $0x18] sm:$0xff] }
 0x217   :  { %5045 = vmatmul.mubr.msk.f32.vlgmr.msra.gmra.mxu1 %vm7007_vm14, %v485_v18  ;;  %5058 = vmatprep.subr.mxu1 %v5478_v4  ;;  %v4656_v18 = vld [vmem:[%s6997_s5 + $0x41] ss:$0 sm:$0xff] }
 0x218   :  { %5066 = vmatprep.mubr.msk.f32.mxu1 %vm7004_vm0, %v5478_v4  ;;  %5059 = vmatpush3.msra.mxu1 %v1093_v7 }
 0x219   :  { %5060 = vmatprep.subr.mxu1 %v5478_v4 }
 0x21a   :  { %5061 = vmatpush3.msra.mxu1 %v1092_v8  ;;  %v1319_v8 = vld [vmem:[%s6999_s6 + $0x190] sm:$0xff] }
 0x21b   :  { %5062 = vmatprep.subr.mxu1 %v5478_v4 }
 0x21c   :  { %5063 = vmatpush3.msra.mxu1 %v1091_v10 }
 0x21d   :  { %5064 = vmatprep.subr.mxu1 %v5478_v4 }
 0x21e   :  { %5065 = vmatpush3.msra.mxu1 %v1090_v11 }
 0x2cf   :  { %v824_v51 = vpop.f32.mrf.mxu1 }
 0x2d0   :  { %5034 = vmatmul.mubr.msk.f32.vlgmr.msra.gmra.mxu0 %vm7007_vm14, %v824_v51  ;;  %v5486_v51 = vmov 1  }
 0x2d1   :  { %v5024_v52 = vpop.f32.mrf.mxu1  ;;  %5048 = vmatpush3.msra.mxu0 %v992_v50  ;;  %5055 = vmatprep.mubr.msk.f32.mxu0 %vm7004_vm0, %v5478_v4  ;;  %v1198_v50 = vld [vmem:[%s6999_s6] sm:$0xff] }
 0x2d2   :  { %5049 = vmatprep.subr.mxu0 %v5478_v4  ;;  %5416 = vset.pattern.permute.xlu0 %v5486_v51 }
 0x2d3   :  { %5050 = vmatpush3.msra.mxu0 %v991_v55  ;;  %5417 = vset.pattern.permute.xlu1 %v5486_v51  ;;  %v1328_v55 = vld [vmem:[%s6999_s6 + $0x1d8] sm:$0xff] }
 0x2d4   :  { %5051 = vmatprep.subr.mxu0 %v5478_v4  ;;  %v1439_v58 = vrot.slane %v1328_v55, 2 }
 0x2d5   :  { %5052 = vmatpush3.msra.mxu0 %v990_v56  ;;  %v1331_v56 = vld [vmem:[%s6999_s6 + $0x1f0] sm:$0x3] }
 0x2d6   :  { %5053 = vmatprep.subr.mxu0 %v5478_v4 }
 0x2d7   :  { %v979_v53 = vpop.f32.mrf.mxu1  ;;  %5054 = vmatpush3.msra.mxu0 %v989_v57 }
 0x2d8   :  { %1246 = vmatprep.subr.mxu0 %v1205_v41  ;;  %v1295_v41 = vld [vmem:[%s6999_s6 + $0xd0] sm:$0xfc] }
 0x2d9   :  { %v5046_v54 = vpop.f32.mrf.mxu1 }
 0x390   :  { %v906_v60 = vpop.f32.mrf.mxu0 }
 0x391   :  { %v980_v62 = vadd.f32 %v979_v53, %v906_v60  ;;  %v1445_v60 = vrot.slane %v1331_v56, 2 }
 0x392   :  { %v5035_v63 = vpop.f32.mrf.mxu0 }
 0x393   :  { %v5735_v5 = vadd.f32 %v4653_v61, %v980_v62  ;;  %v4661_v61 = vld [vmem:[%s6997_s5 + $0x44] ss:$0 sm:$0xff]  ;;  %v1322_v62 = vld [vmem:[%s6999_s6 + $0x1a8] sm:$0xff]  ;;  %v1446_v11 = vsel %vm1371_vm15, %v1439_v58, %v1445_v60 }
 0x394   :  { %v1427_v12 = vrot.slane %v1322_v62, 2  ;;  %v1326_v60 = vld [vmem:[%s6999_s6 + $0x1c8] sm:$0xff] }
 0x395   :  { %5056 = vmatmul.mubr.msk.f32.vlgmr.msra.gmra.mxu0 %vm7007_vm14, %v5735_v5 }
 0x396   :  { %1286 = vmatprep.mubr.f32.mxu0 %v5478_v4  ;;  %1247 = vmatpush1.msra.mxu0 %v1204_v42 }
 0x397   :  { %1248 = vmatprep.subr.mxu0 %v1203_v44 }
 0x398   :  { %1249 = vmatpush1.msra.mxu0 %v1202_v45  ;;  %v1711_v45 = vld [vmem:[%s6999_s6 + $0x1f8] sm:$0xff] }
 0x399   :  { %1250 = vmatprep.subr.mxu0 %v1201_v46  ;;  %v1712_v46 = vld [vmem:[%s6999_s6 + $0x210] sm:$0x3]  ;;  %v1718_v51 = vrot.slane %v1711_v45, 2  ;;  %v1308_v45 = vld [vmem:[%s6999_s6 + $0x138] sm:$0xff] }
 0x39a   :  { %1251 = vmatpush1.msra.mxu0 %v1200_v48 }
 0x39b   :  { %1252 = vmatprep.subr.mxu0 %v1199_v49  ;;  %v1378_v49 = vrot.slane %v1295_v41, 2  ;;  %v1309_v41 = vld [vmem:[%s6999_s6 + $0x140] sm:$0xff] }
 0x39c   :  { %1253 = vmatpush1.msra.mxu0 %v1198_v50  ;;  %v1710_v50 = vld [vmem:[%s6999_s6 + $0x1e0] sm:$0xfc] }
 0x39d   :  { %5069 = vmatprep.subr.mxu0 %v5478_v4 }
 0x455   :  { %v1073_v16 = vpop.f32.mrf.mxu0 }
 0x456   :  { %v1074_v19 = vadd.f32 %v1073_v16, %v1003_v6  ;;  %v1316_v6 = vld [vmem:[%s6999_s6 + $0x178] sm:$0xff] }
 0x457   :  { %v5057_v21 = vpop.f32.mrf.mxu0 }
 0x458   :  { %v1082_v22 = vadd.f32 %v4656_v18, %v1074_v19  ;;  %v1421_v18 = vrot.slane %v1319_v8, 2  ;;  %v1313_v19 = vld [vmem:[%s6999_s6 + $0x160] sm:$0xff]  ;;  %v1324_v8 = vld [vmem:[%s6999_s6 + $0x1b8] sm:$0xff] }
 0x45a   :  { %v4657_v23 = vmul.f32 -1.442695, %v1082_v22 }
 0x45c   :  { %5431 = vpow2.f32 %v4657_v23  ;;  %v1310_v23 = vld [vmem:[%s6999_s6 + $0x148] sm:$0xff] }
 0x469   :  { %v5432_v24 = vpop.eup %5431 }
 0x46a   :  { %v1086_v25 = vadd.f32 1.0, %v5432_v24  ;;  %v1428_v24 = vsel %vm1371_vm15, %v1421_v18, %v1427_v12 }
 0x46c   :  { %5433 = vrcp.f32 %v1086_v25  ;;  %v1409_v25 = vrot.slane %v1313_v19, 2 }
 0x479   :  { %v5434_v28 = vpop.eup %5433 }
 0x47a   :  { %v1089_v29 = vmul.f32 %v5434_v28, %v1082_v22  ;;  %v1415_v22 = vrot.slane %v1316_v6, 2  ;;  %v1307_v28 = vld [vmem:[%s6999_s6 + $0x130] sm:$0xff]  ;;  %v1321_v6 = vld [vmem:[%s6999_s6 + $0x1a0] sm:$0xff] }
 0x47c   :  { %5067 = vmatmul.mubr.msk.f32.vlgmr.msra.gmra.mxu1 %vm7007_vm14, %v1089_v29  ;;  %v1422_v29 = vsel %vm1371_vm15, %v1415_v22, %v1421_v18 }
 0x47d   :  { %1551 = vmatprep.mubr.f32.mxu1 %v5478_v4 }
 0x53c   :  { %v1168_v31 = vpop.f32.mrf.mxu1 }
 0x53d   :  { %v1169_v32 = vadd.f32 %v4658_v30, %v1168_v31  ;;  %v1403_v30 = vrot.slane %v1310_v23, 2  ;;  %v1304_v31 = vld [vmem:[%s6999_s6 + $0x118] sm:$0xff]  ;;  %v1318_v23 = vld [vmem:[%s6999_s6 + $0x188] sm:$0xff] }
 0x53e   :  { %v5068_v33 = vpop.f32.mrf.mxu1 }
 0x53f   :  { %v1174_v34 = vsel %vm7007_vm14, %v1169_v32, 0.0  ;;  %v1397_v33 = vrot.slane %v1307_v28, 2 }
 0x540   :  { %1175 = vadd.xlane.f32.xlu0 %v1174_v34  ;;  %v1301_v34 = vld [vmem:[%s6999_s6 + $0x100] sm:$0xff] }
 0x556   :  { %44 = vperm.xlu0 %5416, %v5534_v1   ;;  %v4660_v1 = vld [vmem:[%s6997_s5 + $0x43] ss:$0 sm:$0xff] }
 0x55a   :  { %5418 = vset.pattern.permute.xlu0 %v5483_v17 }
 0x5c9   :  { %v1176_v35 = vpop.xlane.xlu0 %1175 }
 0x5ca   :  { %v1178_v36 = vmul.f32 0.03125, %v1176_v35  ;;  %v1410_v35 = vsel %vm1371_vm15, %v1403_v30, %v1409_v25 }
 0x5cc   :  { %v1179_v38 = vsub.f32 %v1169_v32, %v1178_v36  ;;  %v1416_v32 = vsel %vm1371_vm15, %v1409_v25, %v1415_v22  ;;  %v1391_v36 = vrot.slane %v1304_v31, 2  ;;  %v1315_v25 = vld [vmem:[%s6999_s6 + $0x170] sm:$0xff] }
 0x5ce   :  { %v1180_v39 = vmul.f32 %v1179_v38, %v1179_v38  ;;  %v1398_v42 = vsel %vm1371_vm15, %v1391_v36, %v1397_v33 }
 0x5d0   :  { %v1181_v40 = vsel %vm7007_vm14, %v1180_v39, 0.0  ;;  %v1404_v39 = vsel %vm1371_vm15, %v1397_v33, %v1403_v30  ;;  %v1419_v30 = vrot.slane %v1318_v23, 2  ;;  %v1312_v33 = vld [vmem:[%s6999_s6 + $0x158] sm:$0xff]  ;;  %v1293_v23 = vld [vmem:[%s6999_s6 + $0xc0] sm:$0xfc] }
 0x5d1   :  { %1182 = vadd.xlane.f32.xlu1 %v1181_v40  ;;  %v1385_v40 = vrot.slane %v1301_v34, 2 }
 0x5d3   :  { %v1392_v48 = vsel %vm1371_vm15, %v1385_v40, %v1391_v36  ;;  %v1413_v36 = vrot.slane %v1315_v25, 2 }
 0x5e2   :  { %47 = vperm.xlu1 %5417, %v5539_v2   ;;  %v1325_v2 = vld [vmem:[%s6999_s6 + $0x1c0] sm:$0xff] }
 0x5e3   :  { %v1433_v7 = vrot.slane %v1325_v2, 2 }
 0x5e5   :  { %v1440_v16 = vsel %vm1371_vm15, %v1433_v7, %v1439_v58  ;;  %v1434_v21 = vsel %vm1371_vm15, %v1427_v12, %v1433_v7  ;;  %v1330_v58 = vld [vmem:[%s6999_s6 + $0x1e8] sm:$0x3]  ;;  %v1435_v7 = vrot.slane %v1326_v60, 2  ;;  %v1323_v12 = vld [vmem:[%s6999_s6 + $0x1b0] sm:$0xff]  ;;  %v1300_v60 = vld [vmem:[%s6999_s6 + $0xf8] sm:$0xff] }
 0x5e6   :  { %v1443_v62 = vrot.slane %v1330_v58, 2  ;;  %v1429_v19 = vrot.slane %v1323_v12, 2  ;;  %v1383_v12 = vrot.slane %v1300_v60, 2  ;;  %v5489_v60 = vmov 1.0  }
 0x5e8   :  { %v1436_v34 = vsel %vm1371_vm15, %v1429_v19, %v1435_v7 }
 0x65a   :  { %v1183_v52 = vpop.xlane.xlu1 %1182 }
 0x65b   :  { %v1184_v53 = vmul.f32 0.03125, %v1183_v52  ;;  %v1720_v52 = vrot.slane %v1712_v46, 2 }
 0x65d   :  { %v1185_v54 = vadd.f32 1e-05, %v1184_v53  ;;  %v1721_v56 = vsel %vm1371_vm15, %v1718_v51, %v1720_v52  ;;  %v1305_v52 = vld [vmem:[%s6999_s6 + $0x120] sm:$0xff] }
 0x65e   :  { %v1393_v58 = vrot.slane %v1305_v52, 2 }
 0x65f   :  { %5435 = vrsqrt.f32 %v1185_v54  ;;  %v1717_v54 = vrot.slane %v1710_v50, 2  ;;  %v1420_v50 = vsel %vm1371_vm15, %v1413_v36, %v1419_v30 }
 0x66c   :  { %v5436_v57 = vpop.eup %5435 }
 0x66d   :  { %v1187_v17 = vmul.f32 %v5436_v57, %v1179_v38  ;;  %v1298_v38 = vld [vmem:[%s6999_s6 + $0xe8] sm:$0xff]  ;;  %v1719_v57 = vsel %vm1371_vm15, %v1717_v54, %v1718_v51  ;;  %v1401_v51 = vrot.slane %v1309_v41, 2  ;;  %v1399_v54 = vrot.slane %v1308_v45, 2 }
 0x66e   :  { %v1379_v44 = vrot.slane %v1298_v38, 2  ;;  %v1311_v38 = vld [vmem:[%s6999_s6 + $0x150] sm:$0xff] }
 0x66f   :  { %v1192_v63 = vmul.f32 %v4660_v1, %v1187_v17  ;;  %v45_v1 = vpop.permute.xlu0 %44  ;;  %v1327_v17 = vld [vmem:[%s6999_s6 + $0x1d0] sm:$0xff] }
 0x670   :  { %v1386_v53 = vsel %vm1371_vm15, %v1379_v44, %v1385_v40  ;;  %v1380_v55 = vsel %vm1371_vm15, %v1378_v49, %v1379_v44  ;;  %vm49_vm2 = vcmp.eq.s32.totalorder %v5573_v20, %v45_v1  ;;  %v1407_v44 = vrot.slane %v1312_v33, 2  ;;  %v1306_v49 = vld [vmem:[%s6999_s6 + $0x128] sm:$0xff] }
 0x671   :  { %v1197_v10 = vadd.f32 %v4661_v61, %v1192_v63  ;;  %v5888_v2 = vsel %vm49_vm2, 1.0, %v5478_v4  ;;  %v1437_v61 = vrot.slane %v1327_v17, 2  ;;  %v1329_v63 = vld [vmem:[%s6999_s6 + $0x1e0] sm:$0x3]  ;;  %v1302_v1 = vld [vmem:[%s6999_s6 + $0x108] sm:$0xff] }
 0x673   :  { %4663 = vmatmul.mubr.msk.f32.vlgmr.msra.gmra.mxu0 %vm7007_vm14, %v1197_v10  ;;  %v1441_v10 = vrot.slane %v1329_v63, 2  ;;  %v1444_v18 = vsel %vm1371_vm15, %v1437_v61, %v1443_v62  ;;  %v1299_v63 = vld [vmem:[%s6999_s6 + $0xf0] sm:$0xff] }
 0x674   :  { %5070 = vmatpush3.msra.mxu0 %v1446_v11  ;;  %5093 = vmatprep.mubr.msk.f32.mxu0 %vm7004_vm0, %v5478_v4  ;;  %v1431_v11 = vrot.slane %v1324_v8, 2  ;;  %v1387_v8 = vrot.slane %v1302_v1, 2 }
 0x675   :  { %5071 = vmatprep.subr.mxu0 %v5478_v4  ;;  %1495 = vmatprep.subr.mxu1 %v1444_v18  ;;  %v1442_v28 = vsel %vm1371_vm15, %v1435_v7, %v1441_v10  ;;  %v1297_v10 = vld [vmem:[%s6999_s6 + $0xe0] sm:$0xff]  ;;  %v1381_v18 = vrot.slane %v1299_v63, 2  ;;  %v7029_v63 = vmov 0 }
 0x676   :  { %5072 = vmatpush3.msra.mxu0 %v1440_v16  ;;  %v1320_v16 = vld [vmem:[%s6999_s6 + $0x198] sm:$0xff]  ;;  %1496 = vmatpush1.msra.mxu1 %v1442_v28 }
 0x677   :  { %5073 = vmatprep.subr.mxu0 %v5478_v4  ;;  %v1423_v22 = vrot.slane %v1320_v16, 2  ;;  %v1400_v16 = vsel %vm1371_vm15, %v1393_v58, %v1399_v54 }
 0x678   :  { %5074 = vmatpush3.msra.mxu0 %v1434_v21  ;;  %v1425_v21 = vrot.slane %v1321_v6, 2  ;;  %v1296_v6 = vld [vmem:[%s6999_s6 + $0xd8] sm:$0xff] }
 0x679   :  { %5075 = vmatprep.subr.mxu0 %v5478_v4  ;;  %v1373_v25 = vrot.slane %v1296_v6, 2  ;;  %v151_v6 = vadd.s32 72, %v5598_v37 }
 0x67a   :  { %5076 = vmatpush3.msra.mxu0 %v1428_v24  ;;  %v1317_v24 = vld [vmem:[%s6999_s6 + $0x180] sm:$0xff] }
 0x67b   :  { %5077 = vmatprep.subr.mxu0 %v5478_v4  ;;  %v1417_v31 = vrot.slane %v1317_v24, 2  ;;  %v1394_v24 = vsel %vm1371_vm15, %v1387_v8, %v1393_v58  ;;  %v1382_v33 = vsel %vm1371_vm15, %v1373_v25, %v1381_v18  ;;  %v7025_v58 = vmov 0 }
 0x67c   :  { %5078 = vmatpush3.msra.mxu0 %v1422_v29  ;;  %v1438_v29 = vsel %vm1371_vm15, %v1431_v11, %v1437_v61  ;;  %v1408_v61 = vsel %vm1371_vm15, %v1401_v51, %v1407_v44 }
 0x67d   :  { %5079 = vmatprep.subr.mxu0 %v5478_v4  ;;  %1497 = vmatprep.subr.mxu1 %v1438_v29  ;;  %v1424_v46 = vsel %vm1371_vm15, %v1417_v31, %v1423_v22 }
 0x67e   :  { %5080 = vmatpush3.msra.mxu0 %v1416_v32  ;;  %v1314_v32 = vld [vmem:[%s6999_s6 + $0x168] sm:$0xff]  ;;  %1498 = vmatpush1.msra.mxu1 %v1436_v34 }
 0x67f   :  { %5081 = vmatprep.subr.mxu0 %v5478_v4  ;;  %v1411_v40 = vrot.slane %v1314_v32, 2 }
 0x680   :  { %5082 = vmatpush3.msra.mxu0 %v1410_v35  ;;  %v1432_v35 = vsel %vm1371_vm15, %v1425_v21, %v1431_v11 }
 0x681   :  { %5083 = vmatprep.subr.mxu0 %v5478_v4  ;;  %1499 = vmatprep.subr.mxu1 %v1432_v35 }
 0x682   :  { %5084 = vmatpush3.msra.mxu0 %v1404_v39  ;;  %v1430_v39 = vsel %vm1371_vm15, %v1423_v22, %v1429_v19  ;;  %v1294_v19 = vld [vmem:[%s6999_s6 + $0xc8] sm:$0xfc]  ;;  %v1376_v22 = vrot.slane %v1297_v10, 2  ;;  %v166_v10 = vadd.s32 32, %v5573_v20 }
 0x683   :  { %5085 = vmatprep.subr.mxu0 %v5478_v4  ;;  %1500 = vmatpush1.msra.mxu1 %v1430_v39  ;;  %v1375_v29 = vrot.slane %v1294_v19, 2  ;;  %v150_v19 = vadd.s32 56, %v5598_v37 }
 0x684   :  { %5086 = vmatpush3.msra.mxu0 %v1398_v42  ;;  %v1426_v42 = vsel %vm1371_vm15, %v1419_v30, %v1425_v21  ;;  %v1388_v30 = vsel %vm1371_vm15, %v1381_v18, %v1387_v8  ;;  %v1384_v32 = vsel %vm1371_vm15, %v1376_v22, %v1383_v12  ;;  %v153_v8 = vadd.s32 88, %v5598_v37 }
 0x685   :  { %5087 = vmatprep.subr.mxu0 %v5478_v4  ;;  %1501 = vmatprep.subr.mxu1 %v1426_v42  ;;  %v1377_v34 = vsel %vm1371_vm15, %v1375_v29, %v1376_v22 }
 0x686   :  { %5088 = vmatpush3.msra.mxu0 %v1392_v48  ;;  %v1405_v48 = vrot.slane %v1311_v38, 2  ;;  %1502 = vmatpush1.msra.mxu1 %v1424_v46  ;;  %v48_v38 = vpop.permute.xlu1 %47 }
 0x687   :  { %5089 = vmatprep.subr.mxu0 %v5478_v4  ;;  %1503 = vmatprep.subr.mxu1 %v1420_v50  ;;  %vm50_vm3 = vcmp.eq.s32.totalorder %v5573_v20, %v48_v38 }
 0x688   :  { %5090 = vmatpush3.msra.mxu0 %v1386_v53  ;;  %v1418_v53 = vsel %vm1371_vm15, %v1411_v40, %v1417_v31  ;;  %v1412_v17 = vsel %vm1371_vm15, %v1405_v48, %v1411_v40  ;;  %v1406_v7 = vsel %vm1371_vm15, %v1399_v54, %v1405_v48  ;;  %v1372_v31 = vrot.slane %v1293_v23, 2 }
 0x689   :  { %5091 = vmatprep.subr.mxu0 %v5478_v4  ;;  %1504 = vmatpush1.msra.mxu1 %v1418_v53  ;;  %v1215_v40 = vsub.s32 1, %v5598_v37  ;;  %v6007_v46 = vsel %vm50_vm3, 1.0, %v5478_v4  ;;  %v148_v23 = vadd.s32 40, %v5598_v37 }
 0x68a   :  { %5092 = vmatpush3.msra.mxu0 %v1380_v55  ;;  %v1303_v55 = vld [vmem:[%s6999_s6 + $0x110] sm:$0xff]  ;;  %v1374_v35 = vsel %vm1371_vm15, %v1372_v31, %v1373_v25  ;;  %v116_v25 = vadd.s32 32, %v5598_v37 }
 0x68b   :  { %5094 = vmatmul.mubr.f32.vlgmr.msra.gmra.mxu0 %v5478_v4  ;;  %5123 = vmatprep.subr.mxu0 %v1721_v56  ;;  %v1389_v62 = vrot.slane %v1303_v55, 2 }
 0x68c   :  { %5124 = vmatpush3.msra.mxu0 %v1721_v56  ;;  %5127 = vmatprep.mubr.msk.f32.mxu0 %vm7003_vm1, %v5625_v9  ;;  %v1414_v56 = vsel %vm1371_vm15, %v1407_v44, %v1413_v36  ;;  %v4662_v36 = vld [vmem:[%s6999_s6 + $0x60] ss:$8 sm:$0x3] }
 0x68d   :  { %5125 = vmatprep.subr.mxu0 %v1719_v57  ;;  %1505 = vmatprep.subr.mxu1 %v1414_v56  ;;  %v1390_v28 = vsel %vm1371_vm15, %v1383_v12, %v1389_v62  ;;  %v1212_v39 = vrot.slane %v4662_v36, %v5616_v47  ;;  %v1216_v44 = vrot.slane %v4662_v36, %v1215_v40  ;;  %v83_v56 = vmul.u32 8, %v5573_v20 }
 0x68e   :  { %5126 = vmatpush3.msra.mxu0 %v1719_v57  ;;  %v1395_v57 = vrot.slane %v1306_v49, 2  ;;  %1506 = vmatpush1.msra.mxu1 %v1412_v17  ;;  %v6041_v17 = vadd.s32 16, %v5598_v37  ;;  %v152_v12 = vadd.s32 80, %v5598_v37 }
 0x68f   :  { %5128 = vmatmul.mubr.msk.f32.vlgmr.msra.gmra.mxu0 %vm7003_vm1, %v5634_v13  ;;  %1507 = vmatprep.subr.mxu1 %v1408_v61  ;;  %v88_v1 = vadd.s32 8, %v83_v56  ;;  %v6053_v61 = vadd.s32 8, %v5598_v37  ;;  %vm84_vm3 = vcmp.ge.s32.totalorder %v5598_v37, %v83_v56  ;;  %vm163_vm1 = vcmp.eq.s32.totalorder %v151_v6, %v5573_v20 }
 0x690   :  { %5132 = vmatprep.mubr.msk.f32.mxu0 %vm7001_vm11, %v5888_v2  ;;  %v1402_v11 = vsel %vm1371_vm15, %v1395_v57, %v1401_v51  ;;  %1508 = vmatpush1.msra.mxu1 %v1406_v7  ;;  %v1396_v21 = vsel %vm1371_vm15, %v1389_v62, %v1395_v57  ;;  %v6036_v57 = vadd.s32 24, %v5598_v37  ;;  %vm86_vm9 = vcmp.ge.s32.totalorder %v6041_v17, %v83_v56 }
 0x691   :  { %1509 = vmatprep.subr.mxu1 %v1402_v11  ;;  %vm91_vm10 = vcmp.lt.s32.totalorder %v6041_v17, %v88_v1  ;;  %v7027_v62 = vmov 0  ;;  %vm85_vm13 = vcmp.ge.s32.totalorder %v6053_v61, %v83_v56  ;;  %vm90_vm15 = vcmp.lt.s32.totalorder %v6053_v61, %v88_v1 }
 0x692   :  { %1510 = vmatpush1.msra.mxu1 %v1400_v16  ;;  %vm87_vm5 = vcmp.ge.s32.totalorder %v6036_v57, %v83_v56  ;;  %vm92_vm6 = vcmp.lt.s32.totalorder %v6036_v57, %v88_v1  ;;  %vm6058_vm12 = vmand %vm86_vm9, %vm91_vm10  ;;  %v7031_v7 = vmov 0  ;;  %v191_v11 = vadd.s32 64, %v5573_v20 }
 0x693   :  { %1511 = vmatprep.subr.mxu1 %v1396_v21  ;;  %vm6043_vm8 = vmand %vm87_vm5, %vm92_vm6  ;;  %v7028_v62 = vsel %vm6058_vm12, 4294967295, %v7027_v62  ;;  %vm89_vm5 = vcmp.lt.s32.totalorder %v5598_v37, %v88_v1  ;;  %v128_v16 = vadd.s32 64, %v5598_v37  ;;  %vm165_vm9 = vcmp.eq.s32.totalorder %v153_v8, %v5573_v20 }
 0x694   :  { %1512 = vmatpush1.msra.mxu1 %v1394_v24  ;;  %v7026_v58 = vsel %vm6043_vm8, 4294967295, %v7025_v58  ;;  %vm6070_vm2 = vmand %vm85_vm13, %vm90_vm15  ;;  %vm178_vm10 = vcmp.eq.s32.totalorder %v153_v8, %v166_v10  ;;  %vm203_vm13 = vcmp.eq.s32.totalorder %v153_v8, %v191_v11  ;;  %vm164_vm15 = vcmp.eq.s32.totalorder %v152_v12, %v5573_v20 }
 0x695   :  { %1513 = vmatprep.subr.mxu1 %v1390_v28  ;;  %v7030_v63 = vsel %vm6070_vm2, 4294967295, %v7029_v63  ;;  %vm6082_vm6 = vmand %vm84_vm3, %vm89_vm5  ;;  %vm177_vm5 = vcmp.eq.s32.totalorder %v152_v12, %v166_v10  ;;  %vm201_vm14 = vcmp.eq.s32.totalorder %v151_v6, %v191_v11  ;;  %v149_v21 = vadd.s32 48, %v5598_v37 }
 0x696   :  { %1514 = vmatpush1.msra.mxu1 %v1388_v30  ;;  %v7032_v7 = vsel %vm6082_vm6, 4294967295, %v7031_v7  ;;  %vm190_vm3 = vmor %vm165_vm9, %vm178_vm10  ;;  %vm162_vm10 = vcmp.eq.s32.totalorder %v128_v16, %v5573_v20  ;;  %v7039_v28 = vmov 0 }
 0x697   :  { %1515 = vmatprep.subr.mxu1 %v1384_v32  ;;  %vm6100_vm7 = vmor %vm190_vm3, %vm203_vm13  ;;  %vm175_vm13 = vcmp.eq.s32.totalorder %v128_v16, %v166_v10  ;;  %v7047_v32 = vmov 0 }
 0x698   :  { %1516 = vmatpush1.msra.mxu1 %v1382_v33 }
 0x699   :  { %1517 = vmatprep.subr.mxu1 %v1377_v34 }
 0x69a   :  { %1518 = vmatpush1.msra.mxu1 %v1374_v35 }
 0x69b   :  { %1552 = vmatmul.mubr.f32.vlgmr.msra.gmra.mxu1 %v5478_v4  ;;  %5096 = vmatprep.subr.mxu1 %v5478_v4 }
 0x69c   :  { %5120 = vmatprep.mubr.msk.f32.mxu1 %vm7004_vm0, %v5478_v4  ;;  %vm176_vm0 = vcmp.eq.s32.totalorder %v151_v6, %v166_v10  ;;  %5097 = vmatpush3.msk.msra.mxu1 %vm6100_vm7, %v5489_v60 }
 0x69d   :  { %5098 = vmatprep.subr.mxu1 %v5478_v4  ;;  %vm188_vm3 = vmor %vm163_vm1, %vm176_vm0  ;;  %vm159_vm1 = vcmp.eq.s32.totalorder %v148_v23, %v5573_v20 }
 0x733   :  { %v1288_v41 = vpop.f32.mrf.mxu0 }
 0x734   :  { %v1289_v42 = vadd.f32 %v1288_v41, %v1212_v39  ;;  %v1713_v41 = vld [vmem:[%s6999_s6 + $0x212] ss:$0 sm:$0xff] }
 0x735   :  { %v1290_v45 = vpop.f32.mrf.mxu0 }
 0x736   :  { %1896 = vrot.lane.b32.xlu1 %v1289_v42, %s5487_s17  ;;  %5130 = vmatprep.subr.mxu0 %v1289_v42  ;;  %v1291_v48 = vadd.f32 %v1290_v45, %v1216_v44 }
 0x737   :  { %5131 = vmatpush3.msra.mxu0 %v1289_v42 }
 0x738   :  { %5133 = vmatmul.mubr.msk.f32.vlgmr.msra.gmra.mxu0 %vm7001_vm11, %v6007_v46 }
 0x739   :  { %5137 = vmatprep.mubr.msk.f32.mxu0 %vm7001_vm11, %v5639_v15 }
 0x73a   :  { %1898 = vrot.lane.b32.xlu1 %v1291_v48, %s5487_s17 }
 0x74b   :  { %v6015_v49 = vpop.f32.mrf.mxu0 }
 0x74d   :  { %v5095_v50 = vpop.f32.mrf.mxu0 }
 0x74f   :  { %v5129_v39 = vpop.f32.mrf.mxu0 }
 0x750   :  { %v1796_v44 = vadd.f32 %v5129_v39, %v1713_v41 }
 0x751   :  { %v1790_v42 = vpop.f32.mrf.mxu0 }
 0x752   :  { %v1791_v45 = vadd.f32 %v1790_v42, %v1713_v41  ;;  %v4680_v48 = vmul.f32 -1.442695, %v1796_v44 }
 0x754   :  { %v4679_v50 = vmul.f32 -1.442695, %v1791_v45  ;;  %5437 = vpow2.f32 %v4680_v48 }
 0x756   :  { %5439 = vpow2.f32 %v4679_v50 }
 0x75b   :  { %v6026_v54 = vpop.f32.mrf.mxu1 }
 0x75c   :  { %1630 = vrot.lane.b32.xlu1 %v6026_v54, %s5488_s18 }
 0x75d   :  { %v6030_v55 = vpop.f32.mrf.mxu1 }
 0x760   :  { %1632 = vrot.lane.b32.xlu1 %v6030_v55, %s5488_s18 }
 0x7a8   :  { %v1897_v51 = vpop.permute.xlu1 %1896 }
 0x7ac   :  { %v1899_v52 = vpop.permute.xlu1 %1898 }
 0x7ad   :  { %v1900_v53 = vsel %vm7006_vm4, %v1897_v51, %v1899_v52  ;;  %vm189_vm4 = vmor %vm164_vm15, %vm177_vm5  ;;  %vm200_vm15 = vcmp.eq.s32.totalorder %v128_v16, %v191_v11  ;;  %v5438_v51 = vpop.eup %5437 }
 0x7ae   :  { %5135 = vmatprep.subr.mxu0 %v1900_v53  ;;  %vm6121_vm5 = vmor %vm188_vm3, %vm201_vm14  ;;  %vm172_vm14 = vcmp.eq.s32.totalorder %v148_v23, %v166_v10  ;;  %v5440_v52 = vpop.eup %5439 }
 0x7af   :  { %5136 = vmatpush3.msra.mxu0 %v1900_v53  ;;  %v1806_v53 = vadd.f32 1.0, %v5438_v51  ;;  %v1805_v56 = vadd.f32 1.0, %v5440_v52 }
 0x7b0   :  { %5138 = vmatmul.mubr.msk.f32.vlgmr.msra.gmra.mxu0 %vm7001_vm11, %v5649_v3  ;;  %5140 = vmatprep.subr.mxu0 %v5478_v4 }
 0x7b1   :  { %5142 = vmatprep.mubr.msk.f32.mxu0 %vm7001_vm11, %v5639_v15  ;;  %5141 = vmatpush3.msra.mxu0 %v5478_v4  ;;  %5441 = vrcp.f32 %v1806_v53 }
 0x7b2   :  { %5145 = vmatprep.subr.msk.mxu0 %vm6043_vm8, %v5489_v60  ;;  %5443 = vrcp.f32 %v1805_v56 }
 0x7b4   :  { %5143 = vmatmul.mubr.msk.f32.vlgmr.msra.gmra.mxu0 %vm7001_vm11, %v5649_v3  ;;  %vm202_vm11 = vcmp.eq.s32.totalorder %v152_v12, %v191_v11 }
 0x7b5   :  { %5146 = vmatpush3.msk.msra.mxu0 %vm6043_vm8, %v5489_v60  ;;  %vm6111_vm9 = vmor %vm189_vm4, %vm202_vm11  ;;  %vm161_vm11 = vcmp.eq.s32.totalorder %v150_v19, %v5573_v20  ;;  %vm174_vm4 = vcmp.eq.s32.totalorder %v150_v19, %v166_v10  ;;  %vm171_vm8 = vcmp.eq.s32.totalorder %v116_v25, %v166_v10 }
 0x7b6   :  { %5147 = vmatprep.subr.msk.mxu0 %vm6058_vm12, %v5489_v60  ;;  %5099 = vmatpush3.msk.msra.mxu1 %vm6111_vm9, %v5489_v60  ;;  %vm6140_vm3 = vmor %vm161_vm11, %vm174_vm4  ;;  %vm158_vm4 = vcmp.eq.s32.totalorder %v116_v25, %v5573_v20 }
 0x7b7   :  { %5148 = vmatpush3.msk.msra.mxu0 %vm6058_vm12, %v5489_v60  ;;  %5100 = vmatprep.subr.mxu1 %v5478_v4  ;;  %vm173_vm12 = vcmp.eq.s32.totalorder %v149_v21, %v166_v10  ;;  %vm6156_vm11 = vmor %vm159_vm1, %vm172_vm14  ;;  %vm7022_vm1 = vcmp.eq.s32.totalorder %v6036_v57, %v5573_v20  ;;  %vm7017_vm14 = vcmp.eq.s32.totalorder %v5598_v37, %v5573_v20 }
 0x7b8   :  { %5149 = vmatprep.subr.msk.mxu0 %vm6070_vm2, %v5489_v60  ;;  %5101 = vmatpush3.msk.msra.mxu1 %vm6121_vm5, %v5489_v60 }
 0x7b9   :  { %5150 = vmatpush3.msk.msra.mxu0 %vm6070_vm2, %v5489_v60  ;;  %vm160_vm2 = vcmp.eq.s32.totalorder %v149_v21, %v5573_v20  ;;  %5102 = vmatprep.subr.mxu1 %v5478_v4 }
 0x7ba   :  { %5151 = vmatprep.subr.msk.mxu0 %vm6082_vm6, %v5489_v60 }
 0x7bb   :  { %5152 = vmatpush3.msk.msra.mxu0 %vm6082_vm6, %v5489_v60  ;;  %vm187_vm6 = vmor %vm162_vm10, %vm175_vm13  ;;  %vm112_vm10 = vcmp.eq.s32.totalorder %v5573_v20, %v5598_v37  ;;  %vm120_vm13 = vcmp.eq.s32.totalorder %v5573_v20, %v116_v25 }
 0x7bc   :  { %vm6132_vm0 = vmor %vm187_vm6, %vm200_vm15  ;;  %vm132_vm15 = vcmp.eq.s32.totalorder %v5573_v20, %v128_v16 }
 0x7bd   :  { %v7040_v28 = vsel %vm6132_vm0, 4294967295, %v7039_v28  ;;  %5103 = vmatpush3.msk.msra.mxu1 %vm6132_vm0, %v5489_v60  ;;  %vm6148_vm6 = vmor %vm160_vm2, %vm173_vm12 }
 0x7be   :  { %5104 = vmatprep.subr.mxu1 %v5478_v4  ;;  %vm124_vm0 = vmor %vm112_vm10, %vm120_vm13  ;;  %vm7051_vm10 = vcmask 261120   ;;  %vm7052_vm13 = vcmask 785408   ;;  %v5442_v1 = vpop.eup %5441 }
 0x7bf   :  { %5105 = vmatpush3.msk.msra.mxu1 %vm6140_vm3, %v5489_v60  ;;  %vm6165_vm12 = vmor %vm124_vm0, %vm132_vm15  ;;  %vm7018_vm0 = vcmp.eq.s32.totalorder %v6053_v61, %v5573_v20  ;;  %v5444_v8 = vpop.eup %5443  ;;  %v1812_v11 = vmul.f32 %v5442_v1, %v1796_v44 }
 0x7c0   :  { %5106 = vmatprep.subr.mxu1 %v5478_v4  ;;  %v7048_v32 = vsel %vm6165_vm12, 4294967295, %v7047_v32  ;;  %vm6170_vm2 = vmor %vm158_vm4, %vm171_vm8  ;;  %vm7020_vm8 = vcmp.eq.s32.totalorder %v6041_v17, %v5573_v20  ;;  %v1811_v6 = vmul.f32 %v5444_v8, %v1791_v45 }
 0x7c1   :  { %5107 = vmatpush3.msk.msra.mxu1 %vm6148_vm6, %v5489_v60  ;;  %vm7053_vm15 = vmmov %vm7051_vm10 }
 0x7c2   :  { %5108 = vmatprep.subr.mxu1 %v5478_v4  ;;  %vm7054_vm4 = vmmov %vm7051_vm10 }
 0x7c3   :  { %5109 = vmatpush3.msk.msra.mxu1 %vm6156_vm11, %v5489_v60 }
 0x7c4   :  { %5110 = vmatprep.subr.mxu1 %v5478_v4 }
 0x7c5   :  { %5111 = vmatpush3.msk.msra.mxu1 %vm6170_vm2, %v5489_v60 }
 0x7c6   :  { %5112 = vmatprep.subr.mxu1 %v5478_v4 }
 0x7c7   :  { %5113 = vmatpush3.msk.msra.mxu1 %vm7022_vm1, %v5489_v60 }
 0x7c8   :  { %5114 = vmatprep.subr.mxu1 %v5478_v4 }
 0x7c9   :  { %5115 = vmatpush3.msk.msra.mxu1 %vm7020_vm8, %v5489_v60 }
 0x7ca   :  { %5116 = vmatprep.subr.mxu1 %v5478_v4 }
 0x7cb   :  { %5117 = vmatpush3.msk.msra.mxu1 %vm7018_vm0, %v5489_v60  ;;  %vm7019_vm0 = vcmask 1043456  }
 0x7cc   :  { %5118 = vmatprep.subr.mxu1 %v5478_v4 }
 0x7cd   :  { %5119 = vmatpush3.msk.msra.mxu1 %vm7017_vm14, %v5489_v60 }
 0x7ce   :  { %v1631_v34 = vpop.permute.xlu1 %1630 }
 0x7d2   :  { %v1633_v35 = vpop.permute.xlu1 %1632 }
 0x7d3   :  { %v1634_v36 = vsel %vm7051_vm10, %v1631_v34, %v1633_v35  ;;  %v105_v34 = vmul.u32 8, %v5598_v37 }
 0x7d4   :  { %v1636_v38 = vmul.f32 %v1634_v36, %v6026_v54 }
 0x7d5   :  { %v107_v35 = vadd.s32 8, %v105_v34  ;;  %vm106_vm10 = vcmp.ge.s32.totalorder %v5573_v20, %v105_v34  ;;  %v130_v34 = vadd.s32 64, %v6041_v17 }
 0x7d6   :  { %5121 = vmatmul.mubr.msk.f32.vlgmr.msra.gmra.mxu1 %vm7052_vm13, %v1636_v38 }
 0x7d7   :  { %vm108_vm13 = vcmp.lt.s32.totalorder %v5573_v20, %v107_v35 }
 0x7d8   :  { %vm109_vm14 = vmand %vm106_vm10, %vm108_vm13 }
 0x7d9   :  { %v6229_v36 = vsel %vm109_vm14, 1.0, %v5478_v4  ;;  %vm7021_vm14 = vcmask 31744  }
 0x7da   :  { %5156 = vmatprep.subr.msk.mxu1 %vm7019_vm0, %v6229_v36 }
 0x7db   :  { %5157 = vmatpush3.msk.msra.mxu1 %vm7019_vm0, %v6229_v36 }
 0x7f8   :  { %v5134_v54 = vpop.f32.mrf.mxu0 }
 0x7fa   :  { %v1885_v10 = vpop.f32.mrf.mxu0 }
 0x870   :  { %v5139_v12 = vpop.f32.mrf.mxu0 }
 0x871   :  { %v6215_v16 = vmul.f32 %v5139_v12, %v1812_v11 }
 0x872   :  { %v1968_v19 = vpop.f32.mrf.mxu0 }
 0x873   :  { %v6217_v21 = vmul.f32 %v1968_v19, %v1811_v6  ;;  %v2055_v25 = vmul.f32 %v5134_v54, %v6215_v16  ;;  %v119_v19 = vadd.s32 32, %v6036_v57 }
 0x874   :  { %v6237_v41 = vpop.f32.mrf.mxu0 }
 0x875   :  { %2251 = vrot.lane.b32.xlu0 %v6217_v21, %s5490_s21  ;;  %v2054_v23 = vmul.f32 %v6217_v21, %v1885_v10  ;;  %vm123_vm10 = vcmp.eq.s32.totalorder %v5573_v20, %v119_v19 }
 0x876   :  { %v6239_v42 = vpop.f32.mrf.mxu0 }
 0x877   :  { %5153 = vmatprep.mubr.msk.f32.mxu0 %vm7053_vm15, %v2054_v23  ;;  %vm7055_vm15 = vmmov %vm7054_vm4  ;;  %v131_v23 = vadd.s32 64, %v6036_v57 }
 0x878   :  { %5154 = vmatmul.mubr.msk.f32.vlgmr.msra.gmra.mxu0 %vm7054_vm4, %v2055_v25  ;;  %vm115_vm4 = vcmp.eq.s32.totalorder %v5573_v20, %v6036_v57  ;;  %v118_v25 = vadd.s32 32, %v6041_v17 }
 0x879   :  { %vm127_vm13 = vmor %vm115_vm4, %vm123_vm10  ;;  %vm135_vm0 = vcmp.eq.s32.totalorder %v5573_v20, %v131_v23  ;;  %vm134_vm10 = vcmp.eq.s32.totalorder %v5573_v20, %v130_v34  ;;  %v2572_v23 = vld [vmem:[%s6999_s6 + $0x78] sm:$0xff] }
 0x87a   :  { %vm6254_vm8 = vmor %vm127_vm13, %vm135_vm0  ;;  %vm113_vm13 = vcmp.eq.s32.totalorder %v5573_v20, %v6053_v61 }
 0x87b   :  { %5161 = vmatprep.subr.msk.mxu1 %vm6254_vm8, %v5489_v60  ;;  %5172 = vmatprep.subr.msk.mxu0 %vm6254_vm8, %v5489_v60 }
 0x87c   :  { %5173 = vmatpush3.msk.msra.mxu0 %vm6254_vm8, %v5489_v60 }
 0x896   :  { %v6235_v38 = vpop.f32.mrf.mxu1 }
 0x898   :  { %v5122_v39 = vpop.f32.mrf.mxu1 }
 0x899   :  { %v117_v39 = vadd.s32 32, %v6053_v61 }
 0x8e7   :  { %v2252_v6 = vpop.permute.xlu0 %2251 }
 0x938   :  { %v5155_v44 = vpop.f32.mrf.mxu0 }
 0x939   :  { %v4694_v45 = vmul.f32 -1.442695, %v5155_v44 }
 0x93a   :  { %v2128_v48 = vpop.f32.mrf.mxu0 }
 0x93b   :  { %5445 = vpow2.f32 %v4694_v45  ;;  %v4693_v50 = vmul.f32 -1.442695, %v2128_v48 }
 0x93d   :  { %5447 = vpow2.f32 %v4693_v50 }
 0x948   :  { %v5446_v51 = vpop.eup %5445 }
 0x949   :  { %v2144_v52 = vadd.f32 1.0, %v5446_v51 }
 0x94a   :  { %v5448_v53 = vpop.eup %5447 }
 0x94b   :  { %5449 = vrcp.f32 %v2144_v52  ;;  %v2143_v56 = vadd.f32 1.0, %v5448_v53 }
 0x94d   :  { %5451 = vrcp.f32 %v2143_v56 }
 0x958   :  { %v5450_v54 = vpop.eup %5449 }
 0x959   :  { %v2150_v8 = vmul.f32 %v5450_v54, %v5155_v44  ;;  %v129_v44 = vadd.s32 64, %v6053_v61 }
 0x95a   :  { %v5452_v1 = vpop.eup %5451 }
 0x95b   :  { %v2149_v10 = vmul.f32 %v5452_v1, %v2128_v48  ;;  %v2152_v12 = vmul.f32 %v2150_v8, %v5619_v59  ;;  %vm133_vm1 = vcmp.eq.s32.totalorder %v5573_v20, %v129_v44  ;;  %v2574_v8 = vld [vmem:[%s6999_s6 + $0xa8] sm:$0xff]  ;;  %v2584_v44 = vrot.slane %v2572_v23, 1  ;;  %v2576_v23 = vld [vmem:[%s6999_s6 + $0xc1] ss:$0 sm:$0xff] }
 0x95d   :  { %v2151_v11 = vmul.f32 %v2149_v10, %v5622_v0  ;;  %v2575_v10 = vld [vmem:[%s6999_s6 + $0xc0] sm:$0x1] }
 0x95e   :  { %v2590_v19 = vrot.slane %v2575_v10, 1 }
 0x95f   :  { %5158 = vmatprep.mubr.msk.f32.mxu1 %vm7021_vm14, %v2151_v11  ;;  %v2573_v11 = vld [vmem:[%s6999_s6 + $0x90] sm:$0xff] }
 0x960   :  { %5159 = vmatmul.mubr.msk.f32.vlgmr.msra.gmra.mxu1 %vm7021_vm14, %v2152_v12  ;;  %vm122_vm14 = vcmp.eq.s32.totalorder %v5573_v20, %v118_v25  ;;  %v2586_v25 = vrot.slane %v2573_v11, 1  ;;  %v2768_v11 = vld [vmem:[%s6997_s5 + $0x5d] sm:$0xff] }
 0x961   :  { %5169 = vmatprep.mubr.msk.f32.mxu1 %vm7055_vm15, %v2252_v6  ;;  %vm114_vm15 = vcmp.eq.s32.totalorder %v5573_v20, %v6041_v17  ;;  %5162 = vmatpush3.msk.msra.mxu1 %vm6254_vm8, %v5489_v60  ;;  %v2588_v6 = vrot.slane %v2574_v8, 1 }
 0x962   :  { %vm126_vm4 = vmor %vm114_vm15, %vm122_vm14  ;;  %vm121_vm14 = vcmp.eq.s32.totalorder %v5573_v20, %v117_v39 }
 0x963   :  { %vm6273_vm0 = vmor %vm126_vm4, %vm134_vm10  ;;  %vm7063_vm10 = vmmov 0  }
 0x964   :  { %5163 = vmatprep.subr.msk.mxu1 %vm6273_vm0, %v5489_v60  ;;  %vm125_vm15 = vmor %vm113_vm13, %vm121_vm14  ;;  %5174 = vmatprep.subr.msk.mxu0 %vm6273_vm0, %v5489_v60  ;;  %vm2582_vm13 = vcmask 1046528   ;;  %vm7064_vm14 = vcmask 130048  }
 0x965   :  { %5164 = vmatpush3.msk.msra.mxu1 %vm6273_vm0, %v5489_v60  ;;  %vm6293_vm4 = vmor %vm125_vm15, %vm133_vm1  ;;  %5175 = vmatpush3.msk.msra.mxu0 %vm6273_vm0, %v5489_v60  ;;  %vm7062_vm1 = vcmask 261120   ;;  %v2591_v39 = vsel %vm2582_vm13, %v2588_v6, %v2590_v19  ;;  %v2765_v19 = vld [vmem:[%s6997_s5 + $0x45] sm:$0xff] }
 0x966   :  { %5165 = vmatprep.subr.msk.mxu1 %vm6293_vm4, %v5489_v60  ;;  %5176 = vmatprep.subr.msk.mxu0 %vm6293_vm4, %v5489_v60  ;;  %vm7065_vm15 = vmmov %vm7062_vm1 }
 0x967   :  { %5166 = vmatpush3.msk.msra.mxu1 %vm6293_vm4, %v5489_v60  ;;  %5177 = vmatpush3.msk.msra.mxu0 %vm6293_vm4, %v5489_v60 }
 0x968   :  { %5167 = vmatprep.subr.msk.mxu1 %vm6165_vm12, %v5489_v60  ;;  %5178 = vmatprep.subr.msk.mxu0 %vm6165_vm12, %v5489_v60 }
 0x969   :  { %5168 = vmatpush3.msk.msra.mxu1 %vm6165_vm12, %v5489_v60  ;;  %5179 = vmatpush3.msk.msra.mxu0 %vm6165_vm12, %v5489_v60 }
 0x96a   :  { %5183 = vmatprep.subr.mxu1 %v5478_v4  ;;  %5190 = vmatprep.subr.mxu0 %v5478_v4 }
 0xa20   :  { %v5160_v50 = vpop.f32.mrf.mxu1 }
 0xa21   :  { %2243 = vrot.lane.b32.xlu1 %v5160_v50, %s5488_s18  ;;  %v2589_v50 = vsel %vm2582_vm13, %v2586_v25, %v2588_v6  ;;  %v2766_v6 = vld [vmem:[%s6997_s5 + $0x4d] sm:$0xff] }
 0xa22   :  { %v2230_v51 = vpop.f32.mrf.mxu1 }
 0xa25   :  { %2241 = vrot.lane.b32.xlu1 %v2230_v51, %s5488_s18  ;;  %v2587_v51 = vsel %vm2582_vm13, %v2584_v44, %v2586_v25 }
 0xa29   :  { %2253 = vrot.lane.b32.xlu1 %v6215_v16, %s5490_s21 }
 0xa93   :  { %v2244_v52 = vpop.permute.xlu1 %2243 }
 0xa94   :  { %v2248_v53 = vmul.f32 %v2244_v52, %v6215_v16  ;;  %v2571_v52 = vld [vmem:[%s6999_s6 + $0x60] sm:$0xfe] }
 0xa96   :  { %2427 = vrot.lane.b32.xlu0 %v2248_v53, %s5487_s17  ;;  %v2583_v53 = vrot.slane %v2571_v52, 1 }
 0xa97   :  { %v2242_v56 = vpop.permute.xlu1 %2241 }
 0xa98   :  { %v2247_v54 = vmul.f32 %v2242_v56, %v6217_v21  ;;  %v2585_v56 = vsel %vm2582_vm13, %v2583_v53, %v2584_v44  ;;  %vm7066_vm13 = vmmov %vm7062_vm1 }
 0xa9a   :  { %2425 = vrot.lane.b32.xlu1 %v2247_v54, %s5487_s17 }
 0xa9b   :  { %v2254_v1 = vpop.permute.xlu1 %2253 }
 0xa9c   :  { %5170 = vmatmul.mubr.msk.f32.vlgmr.msra.gmra.mxu1 %vm7062_vm1, %v2254_v1 }
 0xa9d   :  { %5187 = vmatprep.mubr.msk.f32.mxu1 %vm7063_vm10, %v5478_v4 }
 0xb08   :  { %v2428_v12 = vpop.permute.xlu0 %2427 }
 0xb09   :  { %5184 = vmatpush3.msra.mxu1 %v2428_v12  ;;  %v2767_v12 = vld [vmem:[%s6997_s5 + $0x55] sm:$0xff] }
 0xb0a   :  { %5185 = vmatprep.subr.mxu1 %v5478_v4 }
 0xb0c   :  { %v2426_v34 = vpop.permute.xlu1 %2425 }
 0xb0d   :  { %5186 = vmatpush3.msra.mxu1 %v2426_v34 }
 0xb0e   :  { %5188 = vmatmul.mubr.msk.f32.vlgmr.msra.gmra.mxu1 %vm7064_vm14, %v5680_v43  ;;  %5197 = vmatprep.subr.mxu1 %v5478_v4  ;;  %vm7067_vm14 = vmmov %vm7062_vm1 }
 0xb0f   :  { %5198 = vmatpush3.msra.mxu1 %v2591_v39  ;;  %5205 = vmatprep.mubr.msk.f32.mxu1 %vm7063_vm10, %v5478_v4 }
 0xb10   :  { %5199 = vmatprep.subr.mxu1 %v5478_v4 }
 0xb11   :  { %5200 = vmatpush3.msra.mxu1 %v2589_v50 }
 0xb12   :  { %5201 = vmatprep.subr.mxu1 %v5478_v4 }
 0xb13   :  { %5202 = vmatpush3.msra.mxu1 %v2587_v51 }
 0xb14   :  { %5203 = vmatprep.subr.mxu1 %v5478_v4 }
 0xb15   :  { %5204 = vmatpush3.msra.mxu1 %v2585_v56 }
 0xb16   :  { %5219 = vmatprep.subr.mxu1 %v5478_v4 }
 0xb5c   :  { %v5171_v54 = vpop.f32.mrf.mxu1 }
 0xb5e   :  { %v2325_v1 = vpop.f32.mrf.mxu1 }
 0xbce   :  { %v2497_v8 = vpop.f32.mrf.mxu1 }
 0xbcf   :  { %5206 = vmatmul.mubr.msk.f32.vlgmr.msra.gmra.mxu1 %vm7065_vm15, %v2497_v8  ;;  %vm7068_vm15 = vcmask 130048  }
 0xbd0   :  { %v5189_v10 = vpop.f32.mrf.mxu1  ;;  %5227 = vmatprep.mubr.msk.f32.mxu1 %vm7063_vm10, %v5478_v4  ;;  %5220 = vmatpush3.msra.mxu1 %v2768_v11 }
 0xbd1   :  { %5221 = vmatprep.subr.mxu1 %v5478_v4 }
 0xbd2   :  { %5222 = vmatpush3.msra.mxu1 %v2767_v12  ;;  %v4720_v12 = vld [vmem:[%s6997_s5 + $0x86] ss:$0 sm:$0xff] }
 0xbd3   :  { %5223 = vmatprep.subr.mxu1 %v5478_v4 }
 0xbd4   :  { %5224 = vmatpush3.msra.mxu1 %v2766_v6 }
 0xbd5   :  { %5225 = vmatprep.subr.mxu1 %v5478_v4 }
 0xbd6   :  { %5226 = vmatpush3.msra.mxu1 %v2765_v19 }
 0xc8f   :  { %v2665_v25 = vpop.f32.mrf.mxu1 }
 0xc90   :  { %v2666_v34 = vadd.f32 %v2665_v25, %v2576_v23  ;;  %v2334_v23 = vmul.f32 %v2325_v1, %v6239_v42  ;;  %v2863_v42 = vld [vmem:[%s6997_s5 + $0x75] sm:$0xff]  ;;  %v2861_v1 = vld [vmem:[%s6997_s5 + $0x65] sm:$0xff] }
 0xc91   :  { %v5207_v39 = vpop.f32.mrf.mxu1 }
 0xc92   :  { %2675 = vrot.lane.b32.xlu1 %v2666_v34, %s5490_s21  ;;  %2670 = vrot.lane.b32.xlu0 %v2666_v34, %s5487_s17 }
 0xc96   :  { %2338 = vrot.lane.b32.xlu1 %v6215_v16, %s5488_s18  ;;  %2336 = vrot.lane.b32.xlu0 %v6217_v21, %s5488_s18 }
 0xd04   :  { %v2676_v44 = vpop.permute.xlu1 %2675  ;;  %v2671_v50 = vpop.permute.xlu0 %2670 }
 0xd05   :  { %v2673_v51 = vmul.f32 %v2671_v50, %v6235_v38  ;;  %v2335_v38 = vmul.f32 %v5171_v54, %v6237_v41  ;;  %v2864_v41 = vld [vmem:[%s6997_s5 + $0x7d] sm:$0xff]  ;;  %v2862_v54 = vld [vmem:[%s6997_s5 + $0x6d] sm:$0xff] }
 0xd07   :  { %v2674_v52 = vadd.f32 %v2673_v51, %v5735_v5  ;;  %v4718_v5 = vld [vmem:[%s6997_s5 + $0x85] ss:$0 sm:$0xff] }
 0xd08   :  { %v2339_v53 = vpop.permute.xlu1 %2338  ;;  %v2337_v56 = vpop.permute.xlu0 %2336  ;;  %v2774_v16 = vmul.f32 %v4718_v5, %v5758_v14 }
 0xd09   :  { %v6395_v8 = vadd.f32 %v2676_v44, %v2674_v52  ;;  %5180 = vmatprep.mubr.msk.f32.mxu0 %vm7062_vm1, %v2337_v56 }
 0xd0a   :  { %5181 = vmatmul.mubr.msk.f32.vlgmr.msra.gmra.mxu0 %vm7066_vm13, %v2339_v53  ;;  %vm7069_vm13 = vmmov %vm7062_vm1 }
 0xd0b   :  { %5228 = vmatmul.mubr.msk.f32.vlgmr.msra.gmra.mxu1 %vm7067_vm14, %v6395_v8  ;;  %5194 = vmatprep.mubr.msk.f32.mxu0 %vm7063_vm10, %v5478_v4  ;;  %vm7070_vm14 = vmmov %vm7062_vm1 }
 0xd0c   :  { %3095 = vmatprep.mubr.f32.mxu1 %v5478_v4 }
 0xdca   :  { %v5182_v21 = vpop.f32.mrf.mxu0 }
 0xdcb   :  { %v2420_v10 = vmul.f32 %v5182_v21, %v5668_v26  ;;  %v2844_v11 = vpop.f32.mrf.mxu1 }
 0xdcc   :  { %v2845_v6 = vadd.f32 %v2844_v11, %v2774_v16  ;;  %v2410_v19 = vpop.f32.mrf.mxu0 }
 0xdcd   :  { %v2422_v25 = vadd.f32 %v2420_v10, %v2335_v38  ;;  %v2419_v39 = vmul.f32 %v2410_v19, %v5670_v27  ;;  %v5229_v44 = vpop.f32.mrf.mxu1  ;;  %v4722_v10 = vld [vmem:[%s6997_s5 + $0x87] ss:$0 sm:$0xff] }
 0xdce   :  { %v2853_v50 = vadd.f32 %v4720_v12, %v2845_v6 }
 0xdcf   :  { %v2421_v14 = vadd.f32 %v2419_v39, %v2334_v23  ;;  %5191 = vmatpush3.msra.mxu0 %v2422_v25 }
 0xdd0   :  { %v4721_v51 = vmul.f32 -1.442695, %v2853_v50  ;;  %5192 = vmatprep.subr.mxu0 %v5478_v4 }
 0xdd1   :  { %5193 = vmatpush3.msra.mxu0 %v2421_v14  ;;  %v2975_v14 = vld [vmem:[%s6999_s6 + $0x260] sm:$0xff] }
 0xdd2   :  { %5453 = vpow2.f32 %v4721_v51  ;;  %5208 = vmatprep.subr.mxu0 %v5478_v4  ;;  %5195 = vmatmul.mubr.msk.f32.vlgmr.msra.gmra.mxu0 %vm7068_vm15, %v5680_v43  ;;  %vm7071_vm15 = vmmov %vm7062_vm1  ;;  %v2977_v51 = vld [vmem:[%s6999_s6 + $0x278] sm:$0x7] }
 0xdd3   :  { %5209 = vmatpush3.msk.msra.mxu0 %vm6254_vm8, %v5489_v60  ;;  %5216 = vmatprep.mubr.msk.f32.mxu0 %vm7063_vm10, %v5478_v4 }
 0xdd4   :  { %5210 = vmatprep.subr.mxu0 %v5478_v4 }
 0xdd5   :  { %5211 = vmatpush3.msk.msra.mxu0 %vm6273_vm0, %v5489_v60 }
 0xdd6   :  { %5212 = vmatprep.subr.mxu0 %v5478_v4 }
 0xdd7   :  { %5213 = vmatpush3.msk.msra.mxu0 %vm6293_vm4, %v5489_v60 }
 0xdd8   :  { %5214 = vmatprep.subr.mxu0 %v5478_v4 }
 0xdd9   :  { %5215 = vmatpush3.msk.msra.mxu0 %vm6165_vm12, %v5489_v60  ;;  %vm7102_vm12 = vcmask 785408  }
 0xdda   :  { %5217 = vmatmul.mubr.msk.f32.vlgmr.msra.gmra.mxu0 %vm7062_vm1, %v2666_v34  ;;  %5230 = vmatprep.subr.mxu0 %v5478_v4  ;;  %vm3001_vm1 = vcmask 1044480  }
 0xddb   :  { %5231 = vmatpush3.msra.mxu0 %v2864_v41  ;;  %5238 = vmatprep.mubr.msk.f32.mxu0 %vm7063_vm10, %v5478_v4  ;;  %v3014_v41 = vrot.slane %v2975_v14, 3 }
 0xddc   :  { %5232 = vmatprep.subr.mxu0 %v5478_v4 }
 0xddd   :  { %5233 = vmatpush3.msra.mxu0 %v2863_v42  ;;  %v3018_v42 = vrot.slane %v2977_v51, 3 }
 0xdde   :  { %5234 = vmatprep.subr.mxu0 %v5478_v4 }
 0xddf   :  { %v5454_v34 = vpop.eup %5453  ;;  %5235 = vmatpush3.msra.mxu0 %v2862_v54  ;;  %v2974_v54 = vld [vmem:[%s6999_s6 + $0x258] sm:$0xff] }
 0xde0   :  { %v2857_v52 = vadd.f32 1.0, %v5454_v34  ;;  %5236 = vmatprep.subr.mxu0 %v5478_v4  ;;  %v3012_v34 = vrot.slane %v2974_v54, 3 }
 0xde1   :  { %5237 = vmatpush3.msra.mxu0 %v2861_v1  ;;  %v2976_v1 = vld [vmem:[%s6999_s6 + $0x270] sm:$0x7] }
 0xde2   :  { %5455 = vrcp.f32 %v2857_v52  ;;  %v3016_v52 = vrot.slane %v2976_v1, 3  ;;  %v3136_v1 = vld [vmem:[%s6999_s6 + $0x3e0] sm:$0xff] }
 0xdef   :  { %v5456_v53 = vpop.eup %5455 }
 0xdf0   :  { %v2860_v56 = vmul.f32 %v5456_v53, %v2853_v50  ;;  %v2973_v53 = vld [vmem:[%s6999_s6 + $0x248] sm:$0xff] }
 0xdf2   :  { %5239 = vmatmul.mubr.msk.f32.vlgmr.msra.gmra.mxu0 %vm7069_vm13, %v2860_v56  ;;  %v3019_v56 = vsel %vm3001_vm1, %v3014_v41, %v3018_v42  ;;  %vm7072_vm13 = vcmask 1042432  }
 0xdf3   :  { %3365 = vmatprep.mubr.f32.mxu0 %v5478_v4  ;;  %3055 = vmatprep.subr.mxu1 %v3019_v56 }
 0xe92   :  { %v2567_v5 = vpop.f32.mrf.mxu0 }
 0xe94   :  { %v5196_v16 = vpop.f32.mrf.mxu0 }
 0xe95   :  { %v2972_v16 = vld [vmem:[%s6999_s6 + $0x240] sm:$0xff] }
 0xe9a   :  { %v2747_v21 = vpop.f32.mrf.mxu0 }
 0xe9c   :  { %v5218_v38 = vpop.f32.mrf.mxu0 }
 0xe9d   :  { %v3008_v38 = vrot.slane %v2972_v16, 3 }
 0xeb2   :  { %v2939_v11 = vpop.f32.mrf.mxu0 }
 0xeb3   :  { %v2940_v12 = vadd.f32 %v4722_v10, %v2939_v11  ;;  %v2971_v10 = vld [vmem:[%s6999_s6 + $0x230] sm:$0xff] }
 0xeb4   :  { %v5240_v6 = vpop.f32.mrf.mxu0 }
 0xeb5   :  { %v2945_v19 = vsel %vm7070_vm14, %v2940_v12, 0.0  ;;  %v2970_v6 = vld [vmem:[%s6999_s6 + $0x228] sm:$0xff]  ;;  %vm7073_vm14 = vmmov %vm7072_vm13 }
 0xeb6   :  { %2946 = vadd.xlane.f32.xlu0 %v2945_v19  ;;  %v2969_v19 = vld [vmem:[%s6999_s6 + $0x218] sm:$0xf8] }
 0xecc   :  { %2752 = vrot.lane.b32.xlu0 %v2747_v21, %s5490_s21  ;;  %v3017_v21 = vsel %vm3001_vm1, %v3012_v34, %v3016_v52  ;;  %v3135_v52 = vld [vmem:[%s6999_s6 + $0x3d8] sm:$0xff] }
 0xecd   :  { %3056 = vmatpush1.msra.mxu1 %v3017_v21  ;;  %v3251_v16 = vrot.slane %v3135_v52, 5 }
 0xf3f   :  { %v2947_v23 = vpop.xlane.xlu0 %2946 }
 0xf40   :  { %v2948_v25 = vmul.f32 0.03125, %v2947_v23  ;;  %v2968_v23 = vld [vmem:[%s6999_s6 + $0x210] sm:$0xf8] }
 0xf41   :  { %v3002_v14 = vrot.slane %v2968_v23, 3 }
 0xf42   :  { %v6462_v39 = vsub.f32 %v2940_v12, %v2948_v25  ;;  %v3006_v12 = vrot.slane %v2971_v10, 3  ;;  %v3013_v25 = vsel %vm3001_vm1, %v3008_v38, %v3012_v34  ;;  %v3139_v34 = vld [vmem:[%s6999_s6 + $0x3f8] sm:$0x1f]  ;;  %v3132_v10 = vld [vmem:[%s6999_s6 + $0x3c0] sm:$0xff] }
 0xf43   :  { %v3259_v56 = vrot.slane %v3139_v34, 5 }
 0xf44   :  { %v2950_v44 = vmul.f32 %v6462_v39, %v6462_v39 }
 0xf46   :  { %v2951_v50 = vsel %vm7071_vm15, %v2950_v44, 0.0  ;;  %v3003_v44 = vrot.slane %v2970_v6, 3  ;;  %v3245_v6 = vrot.slane %v3132_v10, 5  ;;  %vm7074_vm15 = vmmov %vm7072_vm13  ;;  %v3121_v10 = vld [vmem:[%s6999_s6 + $0x368] sm:$0xff] }
 0xf47   :  { %2952 = vadd.xlane.f32.xlu1 %v2951_v50  ;;  %v3005_v50 = vrot.slane %v2969_v19, 3  ;;  %v3130_v19 = vld [vmem:[%s6999_s6 + $0x3b0] sm:$0xff] }
 0xf48   :  { %v3004_v54 = vsel %vm3001_vm1, %v3002_v14, %v3003_v44 }
 0xf49   :  { %v3007_v42 = vsel %vm3001_vm1, %v3005_v50, %v3006_v12 }
 0xf58   :  { %2760 = vrot.lane.b32.xlu1 %v2567_v5, %s5490_s21  ;;  %v3010_v5 = vrot.slane %v2973_v53, 3  ;;  %v3253_v53 = vrot.slane %v3136_v1, 5  ;;  %v3126_v1 = vld [vmem:[%s6999_s6 + $0x390] sm:$0xff] }
 0xf59   :  { %v3233_v52 = vrot.slane %v3126_v1, 5 }
 0xf5a   :  { %v3015_v11 = vsel %vm3001_vm1, %v3010_v5, %v3014_v41  ;;  %v3011_v51 = vsel %vm3001_vm1, %v3006_v12, %v3010_v5  ;;  %v3009_v41 = vsel %vm3001_vm1, %v3003_v44, %v3008_v38  ;;  %v3138_v5 = vld [vmem:[%s6999_s6 + $0x3f0] sm:$0x1f]  ;;  %v3133_v38 = vld [vmem:[%s6999_s6 + $0x3c8] sm:$0xff]  ;;  %vm7075_vm1 = vmmov %vm7072_vm13 }
 0xf5b   :  { %3057 = vmatprep.subr.mxu1 %v3015_v11  ;;  %v3257_v21 = vrot.slane %v3138_v5, 5  ;;  %v3260_v11 = vsel %vm7072_vm13, %v3253_v53, %v3259_v56  ;;  %v3247_v12 = vrot.slane %v3133_v38, 5  ;;  %v3129_v44 = vld [vmem:[%s6999_s6 + $0x3a8] sm:$0xff]  ;;  %v3252_v14 = vsel %vm7075_vm1, %v3245_v6, %v3251_v16  ;;  %vm7076_vm13 = vmmov %vm7075_vm1 }
 0xf5c   :  { %3058 = vmatpush1.msra.mxu1 %v3013_v25  ;;  %3309 = vmatprep.subr.mxu0 %v3260_v11  ;;  %v3241_v25 = vrot.slane %v3130_v19, 5 }
 0xf5d   :  { %3059 = vmatprep.subr.mxu1 %v3011_v51  ;;  %v3258_v23 = vsel %vm7073_vm14, %v3251_v16, %v3257_v21  ;;  %v3254_v50 = vsel %vm7074_vm15, %v3247_v12, %v3253_v53  ;;  %v3239_v51 = vrot.slane %v3129_v44, 5  ;;  %vm7077_vm14 = vmmov %vm7075_vm1  ;;  %v3124_v53 = vld [vmem:[%s6999_s6 + $0x380] sm:$0xff]  ;;  %v3123_v16 = vld [vmem:[%s6999_s6 + $0x378] sm:$0xff] }
 0xf5e   :  { %3060 = vmatpush1.msra.mxu1 %v3009_v41  ;;  %3310 = vmatpush1.msra.mxu0 %v3258_v23  ;;  %v3127_v41 = vld [vmem:[%s6999_s6 + $0x398] sm:$0xff]  ;;  %vm7078_vm15 = vmmov %vm7075_vm1  ;;  %v3229_v5 = vrot.slane %v3124_v53, 5  ;;  %v3227_v38 = vrot.slane %v3123_v16, 5 }
 0xf5f   :  { %3061 = vmatprep.subr.mxu1 %v3007_v42  ;;  %3311 = vmatprep.subr.mxu0 %v3254_v50  ;;  %v3248_v42 = vsel %vm7076_vm13, %v3241_v25, %v3247_v12  ;;  %v3246_v34 = vsel %vm7077_vm14, %v3239_v51, %v3245_v6  ;;  %v3240_v21 = vsel %vm7075_vm1, %v3233_v52, %v3239_v51  ;;  %vm7079_vm13 = vmmov %vm7075_vm1  ;;  %v3223_v12 = vrot.slane %v3121_v10, 5  ;;  %v3120_v6 = vld [vmem:[%s6999_s6 + $0x360] sm:$0xff] }
 0xf60   :  { %3062 = vmatpush1.msra.mxu1 %v3004_v54  ;;  %v3235_v54 = vrot.slane %v3127_v41, 5  ;;  %3312 = vmatpush1.msra.mxu0 %v3252_v14  ;;  %vm7080_vm14 = vmmov %vm7075_vm1  ;;  %v3221_v23 = vrot.slane %v3120_v6, 5  ;;  %v3117_v14 = vld [vmem:[%s6999_s6 + $0x348] sm:$0xff] }
 0xf61   :  { %5241 = vmatprep.subr.mxu1 %v5478_v4  ;;  %3313 = vmatprep.subr.mxu0 %v3248_v42  ;;  %v3234_v19 = vsel %vm7080_vm14, %v3227_v38, %v3233_v52  ;;  %v3215_v41 = vrot.slane %v3117_v14, 5  ;;  %v3115_v42 = vld [vmem:[%s6999_s6 + $0x338] sm:$0xff]  ;;  %vm7083_vm14 = vmmov %vm7075_vm1 }
 0xf62   :  { %v3242_v56 = vsel %vm7078_vm15, %v3235_v54, %v3241_v25  ;;  %3314 = vmatpush1.msra.mxu0 %v3246_v34  ;;  %v3236_v11 = vsel %vm7079_vm13, %v3229_v5, %v3235_v54  ;;  %v3118_v25 = vld [vmem:[%s6999_s6 + $0x350] sm:$0xff]  ;;  %vm7081_vm15 = vmmov %vm7075_vm1  ;;  %v3228_v51 = vsel %vm7075_vm1, %v3221_v23, %v3227_v38  ;;  %v3211_v1 = vrot.slane %v3115_v42, 5 }
 0xf63   :  { %3315 = vmatprep.subr.mxu0 %v3242_v56  ;;  %v3230_v44 = vsel %vm7081_vm15, %v3223_v12, %v3229_v5  ;;  %v3217_v50 = vrot.slane %v3118_v25, 5  ;;  %vm7082_vm13 = vmmov %vm7075_vm1  ;;  %v3114_v34 = vld [vmem:[%s6999_s6 + $0x330] sm:$0xff]  ;;  %v3222_v52 = vsel %vm7083_vm14, %v3215_v41, %v3221_v23  ;;  %v3112_v56 = vld [vmem:[%s6999_s6 + $0x320] sm:$0xff] }
 0xf64   :  { %3316 = vmatpush1.msra.mxu0 %v3240_v21  ;;  %v3209_v53 = vrot.slane %v3114_v34, 5  ;;  %vm7084_vm15 = vmmov %vm7075_vm1  ;;  %v3205_v16 = vrot.slane %v3112_v56, 5  ;;  %v3111_v21 = vld [vmem:[%s6999_s6 + $0x318] sm:$0xff]  ;;  %v3102_v56 = vld [vmem:[%s6999_s6 + $0x2d0] sm:$0xe0] }
 0xf65   :  { %3317 = vmatprep.subr.mxu0 %v3236_v11  ;;  %v3224_v54 = vsel %vm7082_vm13, %v3217_v50, %v3223_v12  ;;  %v3218_v5 = vsel %vm7084_vm15, %v3211_v1, %v3217_v50  ;;  %v3203_v10 = vrot.slane %v3111_v21, 5  ;;  %v3109_v11 = vld [vmem:[%s6999_s6 + $0x308] sm:$0xff]  ;;  %vm7085_vm13 = vmmov %vm7075_vm1  ;;  %v2753_v21 = vpop.permute.xlu0 %2752 }
 0xf66   :  { %3318 = vmatpush1.msra.mxu0 %v3234_v19  ;;  %v3216_v38 = vsel %vm7075_vm1, %v3209_v53, %v3215_v41  ;;  %v3212_v12 = vsel %vm7085_vm13, %v3205_v16, %v3211_v1  ;;  %v3199_v6 = vrot.slane %v3109_v11, 5  ;;  %v3108_v19 = vld [vmem:[%s6999_s6 + $0x300] sm:$0xff]  ;;  %vm7086_vm14 = vmmov %vm7075_vm1  ;;  %v2755_v11 = vmul.f32 %v2753_v21, %v6030_v55 }
 0xf67   :  { %3319 = vmatprep.subr.mxu0 %v3230_v44  ;;  %v3210_v23 = vsel %vm7086_vm14, %v3203_v10, %v3209_v53  ;;  %v3197_v25 = vrot.slane %v3108_v19, 5  ;;  %v3106_v44 = vld [vmem:[%s6999_s6 + $0x2f0] sm:$0xff]  ;;  %vm7087_vm15 = vmmov %vm7075_vm1 }
 0xf68   :  { %3320 = vmatpush1.msra.mxu0 %v3228_v51  ;;  %v3206_v50 = vsel %vm7087_vm15, %v3199_v6, %v3205_v16  ;;  %v3192_v14 = vrot.slane %v3106_v44, 5  ;;  %v3105_v51 = vld [vmem:[%s6999_s6 + $0x2e8] sm:$0xff]  ;;  %vm7088_vm13 = vmmov %vm7075_vm1 }
 0xf69   :  { %3321 = vmatprep.subr.mxu0 %v3224_v54  ;;  %v3204_v41 = vsel %vm7075_vm1, %v3197_v25, %v3203_v10  ;;  %v3189_v42 = vrot.slane %v3105_v51, 5  ;;  %v3103_v54 = vld [vmem:[%s6999_s6 + $0x2d8] sm:$0xe0]  ;;  %vm7089_vm14 = vmmov %vm7075_vm1  ;;  %v3137_v44 = vld [vmem:[%s6999_s6 + $0x3e8] sm:$0xff] }
 0xf6a   :  { %3322 = vmatpush1.msra.mxu0 %v3222_v52  ;;  %v3200_v1 = vsel %vm7088_vm13, %v3192_v14, %v3199_v6  ;;  %v3191_v34 = vrot.slane %v3103_v54, 5  ;;  %vm7090_vm15 = vmmov %vm7075_vm1  ;;  %v4725_v54 = vld [vmem:[%s6997_s5 + $0x89] ss:$0 sm:$0xff] }
 0xf6b   :  { %3323 = vmatprep.subr.mxu0 %v3218_v5  ;;  %v3198_v52 = vsel %vm7089_vm14, %v3189_v42, %v3197_v25  ;;  %v3188_v5 = vrot.slane %v3102_v56, 5  ;;  %vm7091_vm13 = vmmov %vm7075_vm1  ;;  %vm7092_vm14 = vcmask 261120  }
 0xf6c   :  { %3324 = vmatpush1.msra.mxu0 %v3216_v38  ;;  %v3193_v53 = vsel %vm7090_vm15, %v3191_v34, %v3192_v14  ;;  %v3134_v14 = vld [vmem:[%s6999_s6 + $0x3d0] sm:$0xff]  ;;  %vm7093_vm15 = vmmov %vm7075_vm1 }
 0xf6d   :  { %3325 = vmatprep.subr.mxu0 %v3212_v12  ;;  %v3190_v16 = vsel %vm7075_vm1, %v3188_v5, %v3189_v42  ;;  %v2756_v12 = vmul.f32 %v2753_v21, %v6015_v49  ;;  %v3140_v49 = vld [vmem:[%s6999_s6 + $0x400] sm:$0x1f] }
 0xf6e   :  { %3326 = vmatpush1.msra.mxu0 %v3210_v23  ;;  %v3261_v42 = vrot.slane %v3140_v49, 5  ;;  %v3116_v49 = vld [vmem:[%s6999_s6 + $0x340] sm:$0xff] }
 0xf6f   :  { %3327 = vmatprep.subr.mxu0 %v3206_v50  ;;  %v4724_v50 = vld [vmem:[%s6997_s5 + $0x88] ss:$0 sm:$0xff] }
 0xf70   :  { %3328 = vmatpush1.msra.mxu0 %v3204_v41  ;;  %v3255_v41 = vrot.slane %v3137_v44, 5 }
 0xf71   :  { %3329 = vmatprep.subr.mxu0 %v3200_v1  ;;  %v3131_v1 = vld [vmem:[%s6999_s6 + $0x3b8] sm:$0xff] }
 0xf72   :  { %3330 = vmatpush1.msra.mxu0 %v3198_v52  ;;  %v3249_v52 = vrot.slane %v3134_v14, 5  ;;  %v3262_v5 = vsel %vm7091_vm13, %v3255_v41, %v3261_v42  ;;  %vm7094_vm13 = vmmov %vm7075_vm1  ;;  %v3113_v14 = vld [vmem:[%s6999_s6 + $0x328] sm:$0xff]  ;;  %v3110_v42 = vld [vmem:[%s6999_s6 + $0x310] sm:$0xff] }
 0xf73   :  { %3331 = vmatprep.subr.mxu0 %v3193_v53  ;;  %v3128_v53 = vld [vmem:[%s6999_s6 + $0x3a0] sm:$0xff] }
 0xf74   :  { %3332 = vmatpush1.msra.mxu0 %v3190_v16  ;;  %v3125_v16 = vld [vmem:[%s6999_s6 + $0x388] sm:$0xff]  ;;  %v3256_v21 = vsel %vm7093_vm15, %v3249_v52, %v3255_v41  ;;  %vm7096_vm15 = vmmov %vm7075_vm1  ;;  %v3213_v41 = vrot.slane %v3116_v49, 5  ;;  %v3524_v49 = vld [vmem:[%s6999_s6 + $0x3f0] sm:$0xe0] }
 0xf75   :  { %5268 = vmatprep.subr.mxu0 %v5478_v4 }
 0xfd0   :  { %v2953_v38 = vpop.xlane.xlu1 %2952 }
 0xfd1   :  { %v2954_v10 = vmul.f32 0.03125, %v2953_v38  ;;  %v3237_v38 = vrot.slane %v3128_v53, 5  ;;  %v3201_v53 = vrot.slane %v3110_v42, 5 }
 0xfd3   :  { %v2955_v6 = vadd.f32 1e-05, %v2954_v10  ;;  %v3122_v10 = vld [vmem:[%s6999_s6 + $0x370] sm:$0xff] }
 0xfd4   :  { %v2761_v19 = vpop.permute.xlu1 %2760  ;;  %v3225_v44 = vrot.slane %v3122_v10, 5 }
 0xfd5   :  { %5457 = vrsqrt.f32 %v2955_v6  ;;  %v6612_v23 = vadd.f32 %v2761_v19, %v2755_v11  ;;  %v6614_v25 = vadd.f32 %v2761_v19, %v2756_v12  ;;  %v3231_v12 = vrot.slane %v3125_v16, 5  ;;  %v3119_v6 = vld [vmem:[%s6999_s6 + $0x358] sm:$0xff]  ;;  %v3525_v16 = vld [vmem:[%s6999_s6 + $0x408] sm:$0xff] }
 0xfd7   :  { %3145 = vrot.lane.b32.xlu1 %v6614_v25, %s5490_s21  ;;  %3143 = vrot.lane.b32.xlu0 %v6612_v23, %s5490_s21 }
 0xfe2   :  { %v5458_v55 = vpop.eup %5457 }
 0xfe3   :  { %v2957_v51 = vmul.f32 %v5458_v55, %v6462_v39  ;;  %v3243_v39 = vrot.slane %v3131_v1, 5  ;;  %v3207_v1 = vrot.slane %v3113_v14, 5 }
 0xfe5   :  { %v2962_v34 = vmul.f32 %v4724_v50, %v2957_v51  ;;  %v3250_v11 = vsel %vm7075_vm1, %v3243_v39, %v3249_v52  ;;  %v3244_v19 = vsel %vm7094_vm13, %v3237_v38, %v3243_v39  ;;  %v3219_v50 = vrot.slane %v3119_v6, 5  ;;  %vm7097_vm13 = vmmov %vm7075_vm1 }
 0xfe6   :  { %v3232_v51 = vsel %vm7096_vm15, %v3225_v44, %v3231_v12  ;;  %vm7099_vm15 = vmmov %vm7075_vm1 }
 0xfe7   :  { %v2967_v56 = vadd.f32 %v4725_v54, %v2962_v34  ;;  %v3226_v54 = vsel %vm7075_vm1, %v3219_v50, %v3225_v44  ;;  %v3107_v34 = vld [vmem:[%s6999_s6 + $0x2f8] sm:$0xff]  ;;  %v3220_v52 = vsel %vm7097_vm13, %v3213_v41, %v3219_v50  ;;  %vm7100_vm13 = vmmov %vm7075_vm1 }
 0xfe8   :  { %v3195_v39 = vrot.slane %v3107_v34, 5 }
 0xfe9   :  { %4727 = vmatmul.mubr.msk.f32.vlgmr.msra.gmra.mxu1 %vm7092_vm14, %v2967_v56  ;;  %vm7095_vm14 = vmmov %vm7075_vm1  ;;  %v3104_v56 = vld [vmem:[%s6999_s6 + $0x2e0] sm:$0xe0] }
 0xfea   :  { %5242 = vmatpush3.msra.mxu1 %v3262_v5  ;;  %5265 = vmatprep.mubr.msk.f32.mxu1 %vm7063_vm10, %v5478_v4  ;;  %v3238_v55 = vsel %vm7095_vm14, %v3231_v12, %v3237_v38  ;;  %vm7098_vm14 = vmmov %vm7075_vm1  ;;  %v3208_v38 = vsel %vm7099_vm15, %v3201_v53, %v3207_v1  ;;  %v3194_v10 = vrot.slane %v3104_v56, 5  ;;  %v3202_v6 = vsel %vm7075_vm1, %v3195_v39, %v3201_v53 }
 0xfeb   :  { %5243 = vmatprep.subr.mxu1 %v5478_v4  ;;  %v3214_v5 = vsel %vm7098_vm14, %v3207_v1, %v3213_v41  ;;  %vm7101_vm14 = vmmov %vm7075_vm1  ;;  %vm3147_vm15 = vcmask 523264  }
 0xfec   :  { %5244 = vmatpush3.msra.mxu1 %v3256_v21  ;;  %v3526_v21 = vld [vmem:[%s6999_s6 + $0x420] sm:$0x1f] }
 0xfed   :  { %5245 = vmatprep.subr.mxu1 %v5478_v4  ;;  %v3534_v12 = vrot.slane %v3526_v21, 5 }
 0xfee   :  { %5246 = vmatpush3.msra.mxu1 %v3250_v11  ;;  %v3532_v11 = vrot.slane %v3525_v16, 5 }
 0xfef   :  { %5247 = vmatprep.subr.mxu1 %v5478_v4 }
 0xff0   :  { %5248 = vmatpush3.msra.mxu1 %v3244_v19  ;;  %v3196_v19 = vsel %vm7100_vm13, %v3194_v10, %v3195_v39  ;;  %v3535_v44 = vsel %vm7101_vm14, %v3532_v11, %v3534_v12  ;;  %vm7103_vm13 = vmmov %vm7102_vm12  ;;  %vm7104_vm14 = vcmask 130048  }
 0xff1   :  { %5249 = vmatprep.subr.mxu1 %v5478_v4 }
 0xff2   :  { %5250 = vmatpush3.msra.mxu1 %v3238_v55  ;;  %v3531_v55 = vrot.slane %v3524_v49, 5 }
 0xff3   :  { %5251 = vmatprep.subr.mxu1 %v5478_v4 }
 0xff4   :  { %5252 = vmatpush3.msra.mxu1 %v3232_v51  ;;  %v3533_v41 = vsel %vm7075_vm1, %v3531_v55, %v3532_v11 }
 0xff5   :  { %5253 = vmatprep.subr.mxu1 %v5478_v4 }
 0xff6   :  { %5254 = vmatpush3.msra.mxu1 %v3226_v54 }
 0xff7   :  { %5255 = vmatprep.subr.mxu1 %v5478_v4 }
 0xff8   :  { %5256 = vmatpush3.msra.mxu1 %v3220_v52 }
 0xff9   :  { %5257 = vmatprep.subr.mxu1 %v5478_v4 }
 0xffa   :  { %5258 = vmatpush3.msra.mxu1 %v3214_v5 }
 0xffb   :  { %5259 = vmatprep.subr.mxu1 %v5478_v4 }
 0xffc   :  { %5260 = vmatpush3.msra.mxu1 %v3208_v38 }
 0xffd   :  { %5261 = vmatprep.subr.mxu1 %v5478_v4 }
 0xffe   :  { %5262 = vmatpush3.msra.mxu1 %v3202_v6 }
 0xfff   :  { %5263 = vmatprep.subr.mxu1 %v5478_v4 }
0x1000   :  { %5264 = vmatpush3.msra.mxu1 %v3196_v19 }
0x1001   :  { %5295 = vmatprep.subr.mxu1 %v3535_v44 }
0x1049   :  { %v3146_v50 = vpop.permute.xlu1 %3145  ;;  %v3144_v14 = vpop.permute.xlu0 %3143 }
0x104a   :  { %v3148_v51 = vsel %vm3147_vm15, %v3144_v14, %v3146_v50  ;;  %vm7105_vm15 = vmmov %vm7104_vm14 }
0x104b   :  { %4728 = vmatmul.mubr.msk.f32.vlgmr.msra.gmra.mxu0 %vm7102_vm12, %v3148_v51  ;;  %5266 = vmatmul.mubr.msk.f32.vlgmr.msra.gmra.mxu1 %vm7103_vm13, %v3148_v51  ;;  %vm7106_vm12 = vcmask 64512  }
0x104c   :  { %5296 = vmatpush3.msra.mxu1 %v3535_v44  ;;  %5299 = vmatprep.mubr.msk.f32.mxu1 %vm7104_vm14, %v5625_v9  ;;  %v4726_v9 = vld [vmem:[%s6999_s6 + $0x273] ss:$8 sm:$0x3] }
0x104d   :  { %5297 = vmatprep.subr.mxu1 %v3533_v41  ;;  %5269 = vmatpush3.msk.msra.mxu0 %vm6100_vm7, %v5489_v60  ;;  %vm7107_vm7 = vnez %v7040_v28 }
0x104e   :  { %5298 = vmatpush3.msra.mxu1 %v3533_v41  ;;  %5270 = vmatprep.subr.mxu0 %v5478_v4 }
0x104f   :  { %5300 = vmatmul.mubr.msk.f32.vlgmr.msra.gmra.mxu1 %vm7105_vm15, %v5634_v13  ;;  %5271 = vmatpush3.msk.msra.mxu0 %vm6111_vm9, %v5489_v60  ;;  %vm7108_vm9 = vcmp.eq.s32.totalorder %v6036_v57, %v5573_v20  ;;  %v2984_v13 = vrot.slane %v4726_v9, %v5616_v47 }
0x1050   :  { %5304 = vmatprep.mubr.msk.f32.mxu1 %vm7106_vm12, %v5888_v2  ;;  %5272 = vmatprep.subr.mxu0 %v5478_v4  ;;  %v2988_v2 = vrot.slane %v4726_v9, %v1215_v40 }
0x1051   :  { %5273 = vmatpush3.msk.msra.mxu0 %vm6121_vm5, %v5489_v60  ;;  %5292 = vmatprep.mubr.msk.f32.mxu0 %vm7063_vm10, %v5478_v4  ;;  %vm7109_vm5 = vcmp.eq.s32.totalorder %v6041_v17, %v5573_v20 }
0x1052   :  { %5274 = vmatprep.subr.mxu0 %v5478_v4 }
0x1053   :  { %5275 = vmatpush3.msk.msra.mxu0 %vm7107_vm7, %v5489_v60 }
0x1054   :  { %5276 = vmatprep.subr.mxu0 %v5478_v4 }
0x1055   :  { %5277 = vmatpush3.msk.msra.mxu0 %vm6140_vm3, %v5489_v60  ;;  %vm7110_vm3 = vcmp.eq.s32.totalorder %v6053_v61, %v5573_v20 }
0x1056   :  { %5278 = vmatprep.subr.mxu0 %v5478_v4 }
0x1057   :  { %5279 = vmatpush3.msk.msra.mxu0 %vm6148_vm6, %v5489_v60  ;;  %vm7111_vm6 = vcmp.eq.s32.totalorder %v5598_v37, %v5573_v20 }
0x1058   :  { %5280 = vmatprep.subr.mxu0 %v5478_v4 }
0x1059   :  { %5281 = vmatpush3.msk.msra.mxu0 %vm6156_vm11, %v5489_v60  ;;  %vm7112_vm11 = vcmask 1043456  }
0x105a   :  { %5282 = vmatprep.subr.mxu0 %v5478_v4 }
0x105b   :  { %5283 = vmatpush3.msk.msra.mxu0 %vm6170_vm2, %v5489_v60  ;;  %vm7113_vm2 = vmmov %vm7106_vm12  ;;  %vm7117_vm12 = vnez %v7026_v58 }
0x105c   :  { %5284 = vmatprep.subr.mxu0 %v5478_v4  ;;  %vm7114_vm1 = vmmov %vm7113_vm2 }
0x105d   :  { %5285 = vmatpush3.msk.msra.mxu0 %vm7108_vm9, %v5489_v60  ;;  %vm7115_vm14 = vmmov %vm7114_vm1  ;;  %vm7119_vm9 = vnez %v7028_v62 }
0x105e   :  { %5286 = vmatprep.subr.mxu0 %v5478_v4  ;;  %vm7116_vm15 = vmmov %vm7114_vm1 }
0x105f   :  { %5287 = vmatpush3.msk.msra.mxu0 %vm7109_vm5, %v5489_v60  ;;  %vm7118_vm7 = vmmov %vm7114_vm1  ;;  %vm7120_vm5 = vnez %v7030_v63  ;;  %v3527_v63 = vld [vmem:[%s6999_s6 + $0x425] ss:$0 sm:$0xff] }
0x1060   :  { %5288 = vmatprep.subr.mxu0 %v5478_v4 }
0x1061   :  { %5289 = vmatpush3.msk.msra.mxu0 %vm7110_vm3, %v5489_v60  ;;  %vm7121_vm3 = vnez %v7032_v7 }
0x1062   :  { %5290 = vmatprep.subr.mxu0 %v5478_v4 }
0x1063   :  { %5291 = vmatpush3.msk.msra.mxu0 %vm7111_vm6, %v5489_v60  ;;  %vm7122_vm6 = vcmask 261120  }
0x1064   :  { %5328 = vmatprep.subr.msk.mxu0 %vm7112_vm11, %v6229_v36  ;;  %vm7123_vm11 = vmmov %vm7103_vm13 }
0x10a9   :  { %v3097_v57 = vpop.f32.mrf.mxu1 }
0x10aa   :  { %v3098_v17 = vadd.f32 %v3097_v57, %v2984_v13 }
0x10ab   :  { %v3099_v61 = vpop.f32.mrf.mxu1 }
0x10ac   :  { %v3100_v18 = vadd.f32 %v3099_v61, %v2988_v2  ;;  %3704 = vrot.lane.b32.xlu0 %v3098_v17, %s5487_s17  ;;  %5302 = vmatprep.subr.mxu1 %v3098_v17 }
0x10ad   :  { %5303 = vmatpush3.msra.mxu1 %v3098_v17 }
0x10ae   :  { %3706 = vrot.lane.b32.xlu1 %v3100_v18, %s5487_s17  ;;  %5305 = vmatmul.mubr.msk.f32.vlgmr.msra.gmra.mxu1 %vm7113_vm2, %v6007_v46  ;;  %vm7124_vm2 = vcmask 1043456  }
0x10af   :  { %5309 = vmatprep.mubr.msk.f32.mxu1 %vm7114_vm1, %v5639_v15  ;;  %vm7125_vm1 = vmmov %vm7122_vm6 }
0x110b   :  { %v3367_v20 = vpop.f32.mrf.mxu0  ;;  %v6778_v47 = vpop.f32.mrf.mxu1 }
0x110c   :  { %3444 = vrot.lane.b32.xlu0 %v3367_v20, %s5488_s18 }
0x110d   :  { %v6781_v37 = vpop.f32.mrf.mxu0  ;;  %v5267_v40 = vpop.f32.mrf.mxu1 }
0x110e   :  { %3446 = vrot.lane.b32.xlu1 %v6781_v37, %s5488_s18 }
0x110f   :  { %v5301_v62 = vpop.f32.mrf.mxu1 }
0x1110   :  { %v3610_v29 = vadd.f32 %v5301_v62, %v3527_v63  ;;  %v4379_v62 = vld [vmem:[%s6999_s6 + $0x2d0] sm:$0xf] }
0x1111   :  { %v3604_v7 = vpop.f32.mrf.mxu1 }
0x1112   :  { %v3605_v30 = vadd.f32 %v3604_v7, %v3527_v63  ;;  %v4746_v31 = vmul.f32 -1.442695, %v3610_v29  ;;  %v4377_v63 = vld [vmem:[%s6999_s6 + $0x2a0] sm:$0xff] }
0x1114   :  { %v4745_v33 = vmul.f32 -1.442695, %v3605_v30  ;;  %5459 = vpow2.f32 %v4746_v31 }
0x1116   :  { %5461 = vpow2.f32 %v4745_v33  ;;  %v4389_v33 = vrot.slane %v4377_v63, 4 }
0x111e   :  { %v3705_v22 = vpop.permute.xlu0 %3704 }
0x1120   :  { %v3707_v24 = vpop.permute.xlu1 %3706 }
0x1121   :  { %v3708_v28 = vsel %vm7103_vm13, %v3705_v22, %v3707_v24  ;;  %v5460_v42 = vpop.eup %5459  ;;  %vm7126_vm13 = vmmov %vm7125_vm1 }
0x1122   :  { %5307 = vmatprep.subr.mxu1 %v3708_v28  ;;  %v3620_v1 = vadd.f32 1.0, %v5460_v42 }
0x1123   :  { %5308 = vmatpush3.msra.mxu1 %v3708_v28  ;;  %v5462_v54 = vpop.eup %5461 }
0x1124   :  { %5310 = vmatmul.mubr.msk.f32.vlgmr.msra.gmra.mxu1 %vm7115_vm14, %v5649_v3  ;;  %5312 = vmatprep.subr.mxu1 %v3148_v51  ;;  %5463 = vrcp.f32 %v3620_v1  ;;  %vm7127_vm14 = vnez %v7048_v32 }
0x1125   :  { %5313 = vmatpush3.msra.mxu1 %v3148_v51  ;;  %5314 = vmatprep.mubr.msk.f32.mxu1 %vm7116_vm15, %v5639_v15  ;;  %vm7128_vm15 = vcmask 31744  }
0x1126   :  { %5317 = vmatprep.subr.msk.mxu1 %vm7117_vm12, %v5489_v60 }
0x1128   :  { %5315 = vmatmul.mubr.msk.f32.vlgmr.msra.gmra.mxu1 %vm7118_vm7, %v5649_v3  ;;  %vm7130_vm7 = vmmov %vm7125_vm1 }
0x1129   :  { %5318 = vmatpush3.msk.msra.mxu1 %vm7117_vm12, %v5489_v60  ;;  %vm7129_vm12 = vmmov %vm7128_vm15 }
0x112a   :  { %5319 = vmatprep.subr.msk.mxu1 %vm7119_vm9, %v5489_v60 }
0x112b   :  { %5320 = vmatpush3.msk.msra.mxu1 %vm7119_vm9, %v5489_v60  ;;  %vm7131_vm9 = vmmov %vm7125_vm1 }
0x112c   :  { %5321 = vmatprep.subr.msk.mxu1 %vm7120_vm5, %v5489_v60 }
0x112d   :  { %5322 = vmatpush3.msk.msra.mxu1 %vm7120_vm5, %v5489_v60  ;;  %vm7132_vm5 = vmmov %vm7124_vm2 }
0x112e   :  { %5323 = vmatprep.subr.msk.mxu1 %vm7121_vm3, %v5489_v60 }
0x112f   :  { %5324 = vmatpush3.msk.msra.mxu1 %vm7121_vm3, %v5489_v60  ;;  %vm7133_vm3 = vcmask 130048  }
0x1130   :  { %5344 = vmatprep.subr.msk.mxu1 %vm6254_vm8, %v5489_v60 }
0x1131   :  { %v5464_v52 = vpop.eup %5463 }
0x1132   :  { %v3626_v5 = vmul.f32 %v5464_v52, %v3610_v29  ;;  %v4393_v29 = vrot.slane %v4379_v62, 4 }
0x116e   :  { %v5306_v34 = vpop.f32.mrf.mxu1 }
0x1170   :  { %v3693_v56 = vpop.f32.mrf.mxu1 }
0x117e   :  { %v3445_v15 = vpop.permute.xlu0 %3444 }
0x1180   :  { %v3447_v3 = vpop.permute.xlu1 %3446 }
0x1181   :  { %v3448_v46 = vsel %vm7122_vm6, %v3445_v15, %v3447_v3  ;;  %vm7134_vm6 = vmmov %vm7124_vm2 }
0x1182   :  { %v3450_v58 = vmul.f32 %v3448_v46, %v3367_v20 }
0x1184   :  { %5293 = vmatmul.mubr.msk.f32.vlgmr.msra.gmra.mxu0 %vm7123_vm11, %v3450_v58  ;;  %v4378_v58 = vld [vmem:[%s6999_s6 + $0x2b8] sm:$0xff]  ;;  %vm7135_vm11 = vmmov %vm7125_vm1 }
0x1185   :  { %5329 = vmatpush3.msk.msra.mxu0 %vm7124_vm2, %v6229_v36  ;;  %v3619_v36 = vadd.f32 1.0, %v5462_v54  ;;  %v4391_v7 = vrot.slane %v4378_v58, 4 }
0x1186   :  { %5333 = vmatprep.subr.msk.mxu0 %vm6254_vm8, %v5489_v60 }
0x1187   :  { %5465 = vrcp.f32 %v3619_v36  ;;  %v4394_v54 = vsel %vm7132_vm5, %v4391_v7, %v4393_v29 }
0x1194   :  { %v5466_v53 = vpop.eup %5465 }
0x1195   :  { %v3625_v16 = vmul.f32 %v5466_v53, %v3605_v30  ;;  %v4376_v30 = vld [vmem:[%s6999_s6 + $0x288] sm:$0xff] }
0x1196   :  { %v4387_v1 = vrot.slane %v4376_v30, 4 }
0x1198   :  { %v4390_v53 = vsel %vm7124_vm2, %v4387_v1, %v4389_v33 }
0x11e4   :  { %v5311_v39 = vpop.f32.mrf.mxu1 }
0x11e5   :  { %v6829_v21 = vmul.f32 %v5311_v39, %v3626_v5 }
0x11e6   :  { %v3776_v38 = vpop.f32.mrf.mxu1 }
0x11e7   :  { %v3861_v10 = vmul.f32 %v3776_v38, %v3625_v16  ;;  %v3864_v12 = vmul.f32 %v5306_v34, %v6829_v21  ;;  %v4392_v34 = vsel %vm7134_vm6, %v4389_v33, %v4391_v7 }
0x11e8   :  { %v6858_v44 = vpop.f32.mrf.mxu1 }
0x11e9   :  { %v3863_v11 = vmul.f32 %v3861_v10, %v3693_v56  ;;  %v4375_v56 = vld [vmem:[%s6999_s6 + $0x270] sm:$0xf0] }
0x11ea   :  { %v6860_v49 = vpop.f32.mrf.mxu1  ;;  %v4386_v5 = vrot.slane %v4375_v56, 4 }
0x11eb   :  { %5325 = vmatprep.mubr.msk.f32.mxu1 %vm7125_vm1, %v3863_v11 }
0x11ec   :  { %5326 = vmatmul.mubr.msk.f32.vlgmr.msra.gmra.mxu1 %vm7126_vm13, %v3864_v12  ;;  %vm7136_vm13 = vmmov %vm7124_vm2 }
0x11ed   :  { %5345 = vmatpush3.msk.msra.mxu1 %vm6254_vm8, %v5489_v60  ;;  %v4388_v39 = vsel %vm7136_vm13, %v4386_v5, %v4387_v1 }
0x11ee   :  { %5346 = vmatprep.subr.msk.mxu1 %vm6273_vm0, %v5489_v60 }
0x11ef   :  { %5347 = vmatpush3.msk.msra.mxu1 %vm6273_vm0, %v5489_v60 }
0x11f0   :  { %5348 = vmatprep.subr.msk.mxu1 %vm6293_vm4, %v5489_v60 }
0x11f1   :  { %5349 = vmatpush3.msk.msra.mxu1 %vm6293_vm4, %v5489_v60 }
0x11f2   :  { %5350 = vmatprep.subr.msk.mxu1 %vm7127_vm14, %v5489_v60 }
0x11f3   :  { %5351 = vmatpush3.msk.msra.mxu1 %vm7127_vm14, %v5489_v60 }
0x11f4   :  { %5362 = vmatprep.subr.mxu1 %v5478_v4 }
0x1244   :  { %v6856_v6 = vpop.f32.mrf.mxu0 }
0x1246   :  { %v5294_v19 = vpop.f32.mrf.mxu0 }
0x12ac   :  { %v5327_v55 = vpop.f32.mrf.mxu1 }
0x12ad   :  { %v4760_v50 = vmul.f32 -1.442695, %v5327_v55 }
0x12ae   :  { %v3937_v14 = vpop.f32.mrf.mxu1 }
0x12af   :  { %5467 = vpow2.f32 %v4760_v50  ;;  %v4759_v51 = vmul.f32 -1.442695, %v3937_v14 }
0x12b1   :  { %5469 = vpow2.f32 %v4759_v51 }
0x12bc   :  { %v5468_v41 = vpop.eup %5467 }
0x12bd   :  { %v3953_v9 = vadd.f32 1.0, %v5468_v41 }
0x12be   :  { %v5470_v13 = vpop.eup %5469 }
0x12bf   :  { %5471 = vrcp.f32 %v3953_v9  ;;  %v3952_v2 = vadd.f32 1.0, %v5470_v13 }
0x12c1   :  { %5473 = vrcp.f32 %v3952_v2 }
0x12cc   :  { %v5472_v57 = vpop.eup %5471 }
0x12cd   :  { %v3959_v61 = vmul.f32 %v5472_v57, %v5327_v55 }
0x12ce   :  { %v5474_v17 = vpop.eup %5473 }
0x12cf   :  { %v3958_v18 = vmul.f32 %v5474_v17, %v3937_v14  ;;  %v3961_v40 = vmul.f32 %v3959_v61, %v5619_v59 }
0x12d1   :  { %v3960_v20 = vmul.f32 %v3958_v18, %v5622_v0 }
0x12d3   :  { %5330 = vmatprep.mubr.msk.f32.mxu0 %vm7128_vm15, %v3960_v20  ;;  %vm7137_vm15 = vmmov %vm7125_vm1 }
0x12d4   :  { %5331 = vmatmul.mubr.msk.f32.vlgmr.msra.gmra.mxu0 %vm7129_vm12, %v3961_v40  ;;  %vm7138_vm12 = vmmov %vm7133_vm3 }
0x12d5   :  { %5334 = vmatpush3.msk.msra.mxu0 %vm6254_vm8, %v5489_v60 }
0x12d6   :  { %5335 = vmatprep.subr.msk.mxu0 %vm6273_vm0, %v5489_v60 }
0x12d7   :  { %5336 = vmatpush3.msk.msra.mxu0 %vm6273_vm0, %v5489_v60 }
0x12d8   :  { %5337 = vmatprep.subr.msk.mxu0 %vm6293_vm4, %v5489_v60 }
0x12d9   :  { %5338 = vmatpush3.msk.msra.mxu0 %vm6293_vm4, %v5489_v60 }
0x12da   :  { %5339 = vmatprep.subr.msk.mxu0 %vm7127_vm14, %v5489_v60 }
0x12db   :  { %5340 = vmatpush3.msk.msra.mxu0 %vm7127_vm14, %v5489_v60 }
0x12dc   :  { %5355 = vmatprep.subr.mxu0 %v5478_v4 }
0x1394   :  { %v5332_v59 = vpop.f32.mrf.mxu0 }
0x1395   :  { %4047 = vrot.lane.b32.xlu0 %v5332_v59, %s5488_s18 }
0x1396   :  { %v4034_v0 = vpop.f32.mrf.mxu0 }
0x1397   :  { %4045 = vrot.lane.b32.xlu1 %v4034_v0, %s5488_s18 }
0x1399   :  { %4055 = vrot.lane.b32.xlu0 %v3861_v10, %s5490_s21 }
0x139b   :  { %4057 = vrot.lane.b32.xlu1 %v6829_v21, %s5490_s21 }
0x1407   :  { %v4048_v22 = vpop.permute.xlu0 %4047 }
0x1408   :  { %v4052_v24 = vmul.f32 %v4048_v22, %v6829_v21 }
0x1409   :  { %v4046_v28 = vpop.permute.xlu1 %4045 }
0x140a   :  { %v4051_v15 = vmul.f32 %v4046_v28, %v3861_v10  ;;  %4231 = vrot.lane.b32.xlu0 %v4052_v24, %s5487_s17 }
0x140b   :  { %v4056_v3 = vpop.permute.xlu0 %4055 }
0x140c   :  { %5341 = vmatprep.mubr.msk.f32.mxu0 %vm7130_vm7, %v4056_v3  ;;  %4229 = vrot.lane.b32.xlu1 %v4051_v15, %s5487_s17  ;;  %vm7143_vm7 = vcmask 785408  }
0x140d   :  { %v4058_v46 = vpop.permute.xlu1 %4057 }
0x140e   :  { %4140 = vrot.lane.b32.xlu0 %v3861_v10, %s5488_s18  ;;  %5342 = vmatmul.mubr.msk.f32.vlgmr.msra.gmra.mxu0 %vm7131_vm9, %v4058_v46 }
0x140f   :  { %5359 = vmatprep.mubr.msk.f32.mxu0 %vm7063_vm10, %v5478_v4 }
0x1410   :  { %4142 = vrot.lane.b32.xlu1 %v6829_v21, %s5488_s18 }
0x147c   :  { %v4232_v31 = vpop.permute.xlu0 %4231 }
0x147d   :  { %5356 = vmatpush3.msra.mxu0 %v4232_v31 }
0x147e   :  { %5357 = vmatprep.subr.mxu0 %v5478_v4  ;;  %v4230_v42 = vpop.permute.xlu1 %4229 }
0x147f   :  { %5358 = vmatpush3.msra.mxu0 %v4230_v42 }
0x1480   :  { %v4141_v36 = vpop.permute.xlu0 %4140  ;;  %5360 = vmatmul.mubr.msk.f32.vlgmr.msra.gmra.mxu0 %vm7133_vm3, %v5680_v43  ;;  %5369 = vmatprep.subr.mxu0 %v5478_v4 }
0x1481   :  { %5352 = vmatprep.mubr.msk.f32.mxu1 %vm7135_vm11, %v4141_v36  ;;  %5370 = vmatpush3.msra.mxu0 %v4394_v54 }
0x1482   :  { %v4143_v52 = vpop.permute.xlu1 %4142  ;;  %5371 = vmatprep.subr.mxu0 %v5478_v4  ;;  %5377 = vmatprep.mubr.msk.f32.mxu0 %vm7063_vm10, %v5478_v4 }
0x1483   :  { %5353 = vmatmul.mubr.msk.f32.vlgmr.msra.gmra.mxu1 %vm7125_vm1, %v4143_v52  ;;  %5372 = vmatpush3.msra.mxu0 %v4392_v34 }
0x1484   :  { %5373 = vmatprep.subr.mxu0 %v5478_v4  ;;  %5366 = vmatprep.mubr.msk.f32.mxu1 %vm7063_vm10, %v5478_v4 }
0x1485   :  { %5374 = vmatpush3.msra.mxu0 %v4390_v53 }
0x1486   :  { %5375 = vmatprep.subr.mxu0 %v5478_v4 }
0x1487   :  { %5376 = vmatpush3.msra.mxu0 %v4388_v39 }
0x14ce   :  { %v5343_v16 = vpop.f32.mrf.mxu0 }
0x14cf   :  { %v4139_v12 = vmul.f32 %v5343_v16, %v6858_v44 }
0x14d0   :  { %v4129_v21 = vpop.f32.mrf.mxu0 }
0x14d1   :  { %v4138_v50 = vmul.f32 %v4129_v21, %v6860_v49 }
0x1540   :  { %v4301_v38 = vpop.f32.mrf.mxu0 }
0x1541   :  { %5378 = vmatmul.mubr.msk.f32.vlgmr.msra.gmra.mxu0 %vm7137_vm15, %v4301_v38 }
0x1542   :  { %v5361_v10 = vpop.f32.mrf.mxu0 }
0x1543   :  { %v5354_v11 = vpop.f32.mrf.mxu1 }
0x1544   :  { %v4224_v19 = vmul.f32 %v5354_v11, %v5668_v26  ;;  %v4380_v26 = vld [vmem:[%s6999_s6 + $0x2d4] ss:$0 sm:$0xff] }
0x1545   :  { %v4214_v55 = vpop.f32.mrf.mxu1 }
0x1546   :  { %v4226_v14 = vadd.f32 %v4224_v19, %v4139_v12  ;;  %v4223_v51 = vmul.f32 %v4214_v55, %v5670_v27 }
0x1548   :  { %v4225_v41 = vadd.f32 %v4223_v51, %v4138_v50  ;;  %5363 = vmatpush3.msra.mxu1 %v4226_v14 }
0x1549   :  { %5364 = vmatprep.subr.mxu1 %v5478_v4 }
0x154a   :  { %5365 = vmatpush3.msra.mxu1 %v4225_v41 }
0x154b   :  { %5380 = vmatprep.subr.mxu1 %v5478_v4  ;;  %5367 = vmatmul.mubr.msk.f32.vlgmr.msra.gmra.mxu1 %vm7138_vm12, %v5680_v43 }
0x154c   :  { %5381 = vmatpush3.msk.msra.mxu1 %vm6254_vm8, %v5489_v60  ;;  %5388 = vmatprep.mubr.msk.f32.mxu1 %vm7063_vm10, %v5478_v4  ;;  %vm7139_vm8 = vmmov %vm7125_vm1  ;;  %vm4602_vm10 = vcmask 1047808  }
0x154d   :  { %5382 = vmatprep.subr.mxu1 %v5478_v4 }
0x154e   :  { %5383 = vmatpush3.msk.msra.mxu1 %vm6273_vm0, %v5489_v60  ;;  %vm7140_vm0 = vmmov %vm7125_vm1 }
0x154f   :  { %5384 = vmatprep.subr.mxu1 %v5478_v4 }
0x1550   :  { %5385 = vmatpush3.msk.msra.mxu1 %vm6293_vm4, %v5489_v60  ;;  %vm7141_vm4 = vmmov %vm7140_vm0 }
0x1551   :  { %5386 = vmatprep.subr.mxu1 %v5478_v4 }
0x1552   :  { %5387 = vmatpush3.msk.msra.mxu1 %vm7127_vm14, %v5489_v60  ;;  %vm7142_vm14 = vmmov %vm7140_vm0 }
0x1601   :  { %v4468_v27 = vpop.f32.mrf.mxu0 }
0x1602   :  { %v4469_v43 = vadd.f32 %v4468_v27, %v4380_v26 }
0x1603   :  { %v5379_v35 = vpop.f32.mrf.mxu0 }
0x1604   :  { %4473 = vrot.lane.b32.xlu0 %v4469_v43, %s5487_s17  ;;  %5389 = vmatmul.mubr.msk.f32.vlgmr.msra.gmra.mxu1 %vm7139_vm8, %v4469_v43 }
0x1605   :  { %4478 = vrot.lane.b32.xlu1 %v4469_v43, %s5490_s21 }
0x160b   :  { %v4371_v45 = vpop.f32.mrf.mxu1 }
0x160d   :  { %v5368_v48 = vpop.f32.mrf.mxu1 }
0x1676   :  { %v4474_v4 = vpop.permute.xlu0 %4473 }
0x1677   :  { %v4476_v44 = vmul.f32 %v4474_v4, %v6856_v6  ;;  %v4479_v32 = vpop.permute.xlu1 %4478 }
0x1679   :  { %v4477_v60 = vadd.f32 %v4476_v44, %v6395_v8 }
0x167b   :  { %v4481_v49 = vadd.f32 %v4479_v32, %v4477_v60 }
0x167d   :  { %v4570_v9 = vsel %vm7140_vm0, %v4481_v49, 0.0 }
0x167e   :  { %4571 = vadd.xlane.f32.xlu0 %v4570_v9 }
0x16c4   :  { %v4550_v13 = vpop.f32.mrf.mxu1 }
0x16c5   :  { %4555 = vrot.lane.b32.xlu1 %v4550_v13, %s5490_s21 }
0x16c6   :  { %v5390_v2 = vpop.f32.mrf.mxu1 }
0x16c9   :  { %4563 = vrot.lane.b32.xlu1 %v4371_v45, %s5490_s21 }
0x1707   :  { %v4572_v57 = vpop.xlane.xlu0 %4571 }
0x1708   :  { %v4573_v17 = vmul.f32 0.03125, %v4572_v57 }
0x170a   :  { %v4574_v61 = vsub.f32 %v4481_v49, %v4573_v17 }
0x170c   :  { %v4575_v18 = vmul.f32 %v4574_v61, %v4574_v61 }
0x170e   :  { %v4576_v20 = vsel %vm7141_vm4, %v4575_v18, 0.0 }
0x170f   :  { %4577 = vadd.xlane.f32.xlu1 %v4576_v20 }
0x1737   :  { %v4556_v6 = vpop.permute.xlu1 %4555 }
0x1738   :  { %v4558_v8 = vmul.f32 %v4556_v6, %v6781_v37  ;;  %v4559_v40 = vmul.f32 %v4556_v6, %v6778_v47  ;;  %v4784_v47 = vld [vmem:[%s6995_s4 + $0x72] ss:$0 sm:$0xff] }
0x173a   :  { %v4560_v59 = vadd.f32 %v4558_v8, %v6612_v23  ;;  %v4561_v0 = vadd.f32 %v4559_v40, %v6614_v25  ;;  %v4785_v23 = vld [vmem:[%s6995_s4 + $0x73] ss:$0 sm:$0xff] }
0x173b   :  { %v4564_v22 = vpop.permute.xlu1 %4563 }
0x173c   :  { %v4566_v24 = vadd.f32 %v4564_v22, %v4560_v59  ;;  %v4567_v28 = vadd.f32 %v4564_v22, %v4561_v0 }
0x173e   :  { %4598 = vrot.lane.b32.xlu1 %v4567_v28, %s5487_s17  ;;  %4596 = vrot.lane.b32.xlu0 %v4566_v24, %s5487_s17 }
0x1798   :  { %v4578_v15 = vpop.xlane.xlu1 %4577 }
0x1799   :  { %v4579_v3 = vmul.f32 0.03125, %v4578_v15 }
0x179b   :  { %v4580_v46 = vadd.f32 1e-05, %v4579_v3 }
0x179d   :  { %5475 = vrsqrt.f32 %v4580_v46 }
0x17aa   :  { %v5476_v58 = vpop.eup %5475 }
0x17ab   :  { %v4582_v37 = vmul.f32 %v5476_v58, %v4574_v61 }
0x17ad   :  { %v4587_v25 = vmul.f32 %v4784_v47, %v4582_v37 }
0x17af   :  { %v4592_v62 = vadd.f32 %v4785_v23, %v4587_v25 }
0x17b0   :  { %v4597_v63 = vpop.permute.xlu0 %4596  ;;  %v4599_v7 = vpop.permute.xlu1 %4598 }
0x17b1   :  { %4593 = vst.msk [vmem:[%s7000_s7] sm:$0xff] %vm7142_vm14, %v4592_v62  ;;  %v4600_v29 = vsel %vm7143_vm7, %v4597_v63, %v4599_v7 }
0x17b2   :  { %4603 = vst.msk [vmem:[%s7000_s7] sm:$0xff] %vm4602_vm10, %v4600_v29 }

</bundles_post_ra>
